<compile_context>
chip_gen: v7x
topology: tpu7x:2x2x1
jax: 0.10.0
libtpu: 0.0.40
codegen_flags: <defaults>
</compile_context>

<pallas_src>
import functools
from math import floor

import numpy as np
import jax
import jax.numpy as jnp
from jax.experimental import pallas as pl
from jax.experimental.pallas import tpu as pltpu


SENS_LANES = 128   # numeric-branch input padded to a full lane group
OUT_LANES = 128    # head output padded to a full lane group (sliced outside)
TB_MAX = 32        # samples per grid step (multiple of 8)


# ---------------------------------------------------------------- size math --
def calc_conv_layer_size(W, H, C, kernel_num, kernel_size, stride, padding):
    new_W = floor((W - kernel_size + 2 * padding) / stride + 1)
    new_H = floor((H - kernel_size + 2 * padding) / stride + 1)
    return (new_W, new_H, kernel_num)


def calc_max_pool_size(W, H, C, pool_size, stride):
    new_W = floor((W - pool_size) / stride + 1)
    new_H = floor((H - pool_size) / stride + 1)
    return (new_W, new_H, C)


def _round_up(x, m):
    return ((x + m - 1) // m) * m


# ----------------------------------------------------------- fused forward ---
def make_mixed_network_forward(B, channel, height, width, numeric_inputs, outputs,
                               tb_max=TB_MAX):
    # Mirror the module's layer-size arithmetic.
    W1, H1, C1 = calc_conv_layer_size(width, height, channel, 16, 5, 2, 2)
    P1w, P1h, _ = calc_max_pool_size(W1, H1, C1, 3, 2)
    W2, H2, C2 = calc_conv_layer_size(P1w, P1h, C1, 64, 5, 2, 2)
    P2w, P2h, _ = calc_max_pool_size(W2, H2, C2, 3, 2)

    assert P2w == 1 and P2h == 1, "fused kernel assumes pool2 covers the whole conv2 map"
    # pooling windows must stay inside the conv1 map (review correctness concern)
    assert 2 * (P1h - 1) + 2 <= H1 - 1 and 2 * (P1w - 1) + 2 <= W1 - 1
    # conv2 receptive fields must stay inside the zero-padded pooled map
    assert 2 * (H2 - 1) + 4 <= P1h + 3 and 2 * (W2 - 1) + 4 <= P1w + 3
    assert numeric_inputs <= SENS_LANES and numeric_inputs <= height * width
    assert outputs <= OUT_LANES

    K1 = channel * 25
    K1p = _round_up(K1, 128)     # conv1 K padded to full lanes (unmasked loads)
    W1p = _round_up(W1, 8)       # conv1 W padded so (H1,W1p) flattens with no relayout
    fc_in = C2 * P2h * P2w       # == 64 for the reference config
    NPOS = H2 * W2               # conv2 output positions (pool2 covers all of them)

    # ---- batch tiling: TB samples per grid step ------------------------------
    if B <= 8:
        TB = B                                            # single step, block == full dim
    else:
        TB = min(tb_max, 8 * pl.cdiv(pl.cdiv(B, 2), 8))   # multiple of 8, >= 2 steps
    GRID = pl.cdiv(B, TB)
    Bpad = TB * GRID

    def kernel(p1_ref, sens_ref,
               w1_ref, b1_ref, w2_ref, b2_ref, wfc_ref, bfc_ref,
               wc1_ref, bc1_ref, wc2_ref, bc2_ref, wc3_ref, bc3_ref,
               out_ref):
        f32 = jnp.float32

        # ---- conv1: one GEMM over the whole tile, bias + ReLU epilogue ------
        p1 = p1_ref[...].reshape(TB * H1 * W1p, K1p)     # layout-preserving (W1p % 8 == 0)
        a = jnp.dot(p1, w1_ref[...], preferred_element_type=f32)       # (TB*H1*W1p, C1)
        a = jnp.maximum(a + b1_ref[...], 0.0)
        a = a.reshape(TB, H1, W1p, C1)

        # ---- maxpool1 (3x3, stride 2), separable; H first (leading dim) -----
        hs = []
        for ph in range(P1h):
            r0 = 2 * ph
            hs.append(jnp.maximum(jnp.maximum(a[:, r0:r0 + 1], a[:, r0 + 1:r0 + 2]),
                                  a[:, r0 + 2:r0 + 3]))
        ah = jnp.concatenate(hs, axis=1)                 # (TB, P1h, W1p, C1)
        ws = []
        for pw in range(P1w):
            c0 = 2 * pw
            ws.append(jnp.maximum(jnp.maximum(ah[:, :, c0:c0 + 1], ah[:, :, c0 + 1:c0 + 2]),
                                  ah[:, :, c0 + 2:c0 + 3]))
        m = jnp.concatenate(ws, axis=2)                  # (TB, P1h, P1w, C1)
        # (padded W positions of conv1 are never read: max column index is 2*(P1w-1)+2 < W1)

        # ---- zero-pad (pad=2) for conv2, kept as a value (no VMEM scratch) ---
        zw = jnp.zeros((TB, P1h, 2, C1), f32)
        mpad = jnp.concatenate([zw, m, zw], axis=2)      # (TB, P1h, P1w+4, C1)
        zh = jnp.zeros((TB, 2, P1w + 4, C1), f32)
        mpad = jnp.concatenate([zh, mpad, zh], axis=1)   # (TB, P1h+4, P1w+4, C1)

        # ---- conv2: 25 per-tap GEMM accumulations, maxpool2 fused as row max -
        acc = jnp.zeros((TB * NPOS, C2), f32)
        for kh in range(5):
            rows = jnp.concatenate(
                [mpad[:, 2 * o + kh:2 * o + kh + 1] for o in range(H2)], axis=1)
            # rows: (TB, H2, P1w+4, C1) -- leading-dim gather, cheap
            for kw in range(5):
                cols = jnp.concatenate(
                    [rows[:, :, 2 * o + kw:2 * o + kw + 1] for o in range(W2)], axis=2)
                # cols: (TB, H2, W2, C1)
                acc = acc + jnp.dot(cols.reshape(TB * NPOS, C1),
                                    w2_ref[kh * 5 + kw],
                                    preferred_element_type=f32)        # (TB*NPOS, C2)

        c2 = acc.reshape(TB, NPOS, C2)
        # maxpool2 covers the whole conv2 map; bias is shared and ReLU monotone,
        # so max-before-(bias,ReLU) is exact.
        feat = jnp.max(c2, axis=1)                                      # (TB, C2)
        feat = jnp.maximum(feat + b2_ref[...], 0.0)

        # ---- fused [image-FC | numeric-FC] (block-diagonal weight) + head ----
        zin = jnp.concatenate([feat, sens_ref[...]], axis=1)            # (TB, fc_in+128)
        z = jnp.maximum(jnp.dot(zin, wfc_ref[...],
                                preferred_element_type=f32) + bfc_ref[...], 0.0)
        z = jnp.maximum(jnp.dot(z, wc1_ref[...],
                                preferred_element_type=f32) + bc1_ref[...], 0.0)
        z = jnp.maximum(jnp.dot(z, wc2_ref[...],
                                preferred_element_type=f32) + bc2_ref[...], 0.0)
        out_ref[...] = jnp.dot(z, wc3_ref[...],
                               preferred_element_type=f32) + bc3_ref[...]

    # ---- specs ----------------------------------------------------------------
    wshapes = [
        ("w1", (K1p, C1)), ("b1", (1, C1)),
        ("w2", (25, C1, C2)), ("b2", (1, C2)),
        ("wfc", (fc_in + SENS_LANES, 256)), ("bfc", (1, 256)),
        ("wc1", (256, 256)), ("bc1", (1, 256)),
        ("wc2", (256, 128)), ("bc2", (1, 128)),
        ("wc3", (128, OUT_LANES)), ("bc3", (1, OUT_LANES)),
    ]
    order = tuple(n for n, _ in wshapes)

    def _const_map(nd):
        return lambda i, _nd=nd: (0,) * _nd

    in_specs = ([pl.BlockSpec((TB, H1, W1p, K1p), lambda i: (i, 0, 0, 0)),
                 pl.BlockSpec((TB, SENS_LANES), lambda i: (i, 0))]
                + [pl.BlockSpec(shape, _const_map(len(shape))) for _, shape in wshapes])
    out_specs = pl.BlockSpec((TB, OUT_LANES), lambda i: (i, 0))

    call = pl.pallas_call(
        kernel,
        out_shape=jax.ShapeDtypeStruct((Bpad, OUT_LANES), jnp.float32),
        grid=(GRID,),
        in_specs=in_specs,
        out_specs=out_specs,
        compiler_params=pltpu.CompilerParams(dimension_semantics=("parallel",)),
    )

    # ---- host-side glue (XLA): tile-aligned conv1 im2col --------------------
    def conv1_patches(img):
        # img (B,C,H,W) -> (B, H1, W1p, K1p); columns ordered (c, kh, kw).
        k, stride, pad = 5, 2, 2
        xp = jnp.pad(img, ((0, 0), (0, 0), (pad, pad), (pad, pad)))
        slabs = [xp[:, :,
                    kh:kh + (H1 - 1) * stride + 1:stride,
                    kw:kw + (W1 - 1) * stride + 1:stride]
                 for kh in range(k) for kw in range(k)]            # (B,C,H1,W1) each
        p = jnp.stack(slabs, axis=2)                               # (B,C,25,H1,W1)
        p = p.transpose(0, 3, 4, 1, 2).reshape(img.shape[0], H1, W1, K1)
        return jnp.pad(p, ((0, 0), (0, 0), (0, W1p - W1), (0, K1p - K1)))

    def forward(kparams, obs):
        img = obs[:, :channel]                                     # (B, C, H, W)
        sens = obs[:, channel].reshape(B, height * width)          # flattened last channel
        if height * width >= SENS_LANES:
            sens = sens[:, :SENS_LANES]
        else:
            sens = jnp.pad(sens, ((0, 0), (0, SENS_LANES - height * width)))
        patches = conv1_patches(img)
        if Bpad != B:
            patches = jnp.pad(patches, ((0, Bpad - B), (0, 0), (0, 0), (0, 0)))
            sens = jnp.pad(sens, ((0, Bpad - B), (0, 0)))
        out = call(patches, sens, *[kparams[name] for name in order])
        return out[:B, :outputs]

    return jax.jit(forward)


# -------------------------------------------------------------------- params --
def init_params(key, channel, numeric_inputs, fc_layer_num, outputs):
    """PyTorch-layout parameters (same init ranges as nn.Conv2d / nn.Linear)."""
    def uni(k, shape, fan_in):
        bound = 1.0 / np.sqrt(fan_in)
        return jax.random.uniform(k, shape, jnp.float32, -bound, bound)

    ks = jax.random.split(key, 14)
    p = {}
    p["conv1_w"] = uni(ks[0], (16, channel, 5, 5), channel * 25)
    p["conv1_b"] = uni(ks[1], (16,), channel * 25)
    p["conv2_w"] = uni(ks[2], (64, 16, 5, 5), 16 * 25)
    p["conv2_b"] = uni(ks[3], (64,), 16 * 25)
    # Linear weights stored as (in, out) so forward is x @ W.
    p["imgfc_w"] = uni(ks[4], (fc_layer_num, 128), fc_layer_num)
    p["imgfc_b"] = uni(ks[5], (128,), fc_layer_num)
    p["numfc_w"] = uni(ks[6], (numeric_inputs, 128), numeric_inputs)
    p["numfc_b"] = uni(ks[7], (128,), numeric_inputs)
    p["c1_w"] = uni(ks[8], (256, 256), 256)
    p["c1_b"] = uni(ks[9], (256,), 256)
    p["c2_w"] = uni(ks[10], (256, 128), 256)
    p["c2_b"] = uni(ks[11], (128,), 256)
    p["c3_w"] = uni(ks[12], (128, outputs), 128)
    p["c3_b"] = uni(ks[13], (outputs,), 128)
    return p


def prepare_kernel_params(p, channel, numeric_inputs, outputs):
    """One-time weight prep: GEMM layouts, tap-major conv2, block-diag fused FC,
    (1,N) biases, zero padding to tile-aligned shapes."""
    K1 = channel * 25
    K1p = _round_up(K1, 128)
    fc_in = p["imgfc_w"].shape[0]
    kp = {}
    kp["w1"] = jnp.zeros((K1p, 16), jnp.float32).at[:K1].set(
        p["conv1_w"].reshape(16, K1).T)                                   # (K1p, 16)
    kp["b1"] = p["conv1_b"].reshape(1, 16)
    # conv2 weights tap-major: (25, in=16, out=64); tap index = kh*5 + kw
    kp["w2"] = jnp.transpose(p["conv2_w"], (2, 3, 1, 0)).reshape(25, 16, 64)
    kp["b2"] = p["conv2_b"].reshape(1, 64)
    # fused [image-FC | numeric-FC]: block-diagonal (fc_in + 128, 256) weight
    wfc = jnp.zeros((fc_in + SENS_LANES, 256), jnp.float32)
    wfc = wfc.at[:fc_in, :128].set(p["imgfc_w"])
    wfc = wfc.at[fc_in:fc_in + numeric_inputs, 128:].set(p["numfc_w"])
    kp["wfc"] = wfc
    kp["bfc"] = jnp.concatenate([p["imgfc_b"], p["numfc_b"]]).reshape(1, 256)
    kp["wc1"] = p["c1_w"]
    kp["bc1"] = p["c1_b"].reshape(1, 256)
    kp["wc2"] = p["c2_w"]
    kp["bc2"] = p["c2_b"].reshape(1, 128)
    # head output padded to 128 lanes for a lane-dense store; sliced outside the kernel.
    kp["wc3"] = jnp.zeros((128, OUT_LANES), jnp.float32).at[:, :outputs].set(p["c3_w"])
    kp["bc3"] = jnp.zeros((1, OUT_LANES), jnp.float32).at[0, :outputs].set(p["c3_b"])
    return kp


# ------------------------------------------------------------ pure-JAX check --
def reference_forward(params, obs, channel, numeric_inputs):
    B = obs.shape[0]
    img = obs[:, :channel]
    sensors = obs[:, channel].reshape(B, -1)[:, :numeric_inputs]

    def conv(x, w, b, stride, pad):
        y = jax.lax.conv_general_dilated(
            x, w, window_strides=(stride, stride),
            padding=((pad, pad), (pad, pad)),
            dimension_numbers=("NCHW", "OIHW", "NCHW"))
        return jax.nn.relu(y + b[None, :, None, None])

    def pool(x, k, stride):
        return jax.lax.reduce_window(
            x, -jnp.inf, jax.lax.max,
            window_dimensions=(1, 1, k, k),
            window_strides=(1, 1, stride, stride), padding="VALID")

    x = conv(img, params["conv1_w"], params["conv1_b"], 2, 2)
    x = pool(x, 3, 2)
    x = conv(x, params["conv2_w"], params["conv2_b"], 2, 2)
    x = pool(x, 3, 2)
    x = x.reshape(B, -1)
    x = jax.nn.relu(x @ params["imgfc_w"] + params["imgfc_b"])
    y = jax.nn.relu(sensors @ params["numfc_w"] + params["numfc_b"])
    z = jnp.concatenate([x, y], axis=1)
    z = jax.nn.relu(z @ params["c1_w"] + params["c1_b"])
    z = jax.nn.relu(z @ params["c2_w"] + params["c2_b"])
    return z @ params["c3_w"] + params["c3_b"]


# --------------------------------------------------------------------- main ---
if __name__ == "__main__":
    channel, width, height = 3, 25, 25      # rgb 25x25 image (module docstring example)
    numeric_inputs = 64
    outputs = 4

    # Replicate the module's layer-size arithmetic -> fc_layer_num.
    w, h, c = calc_conv_layer_size(width, height, channel, 16, 5, 2, 2)
    w, h, c = calc_max_pool_size(w, h, c, 3, 2)
    w, h, c = calc_conv_layer_size(w, h, c, 64, 5, 2, 2)
    w, h, c = calc_max_pool_size(w, h, c, 3, 2)
    fc_layer_num = w * h * c                # = 64

    key = jax.random.PRNGKey(0)
    k_obs, k_par = jax.random.split(key)
    params = init_params(k_par, channel, numeric_inputs, fc_layer_num, outputs)
    kparams = prepare_kernel_params(params, channel, numeric_inputs, outputs)
    ref_fn = jax.jit(functools.partial(reference_forward,
                                       channel=channel, numeric_inputs=numeric_inputs))

    # B=2: tiny-batch path (single grid step);  B=64: batched path (TB=32, grid=2).
    for B in (2, 64):
        obs = jax.random.normal(jax.random.fold_in(k_obs, B),
                                (B, channel + 1, height, width), jnp.float32)
        forward = make_mixed_network_forward(B, channel, height, width,
                                             numeric_inputs, outputs)
        out = jax.block_until_ready(forward(kparams, obs))
        ref = jax.block_until_ready(ref_fn(params, obs))
        assert out.shape == (B, outputs)
        np.testing.assert_allclose(np.asarray(out), np.asarray(ref),
                                   rtol=5e-4, atol=5e-4)

    print("KERNEL_OK")
</pallas_src>

<mosaic_0001>
module attributes {stable_mosaic.version = 11 : i64} {
  func.func @kernel(%arg0: i32, %arg1: memref<2x13x16x128xf32, #tpu.memory_space<vmem>>, %arg2: memref<2x128xf32, #tpu.memory_space<vmem>>, %arg3: memref<128x16xf32, #tpu.memory_space<vmem>>, %arg4: memref<1x16xf32, #tpu.memory_space<vmem>>, %arg5: memref<25x16x64xf32, #tpu.memory_space<vmem>>, %arg6: memref<1x64xf32, #tpu.memory_space<vmem>>, %arg7: memref<192x256xf32, #tpu.memory_space<vmem>>, %arg8: memref<1x256xf32, #tpu.memory_space<vmem>>, %arg9: memref<256x256xf32, #tpu.memory_space<vmem>>, %arg10: memref<1x256xf32, #tpu.memory_space<vmem>>, %arg11: memref<256x128xf32, #tpu.memory_space<vmem>>, %arg12: memref<1x128xf32, #tpu.memory_space<vmem>>, %arg13: memref<128x128xf32, #tpu.memory_space<vmem>>, %arg14: memref<1x128xf32, #tpu.memory_space<vmem>>, %arg15: memref<2x128xf32, #tpu.memory_space<vmem>>) attributes {dimension_semantics = [#tpu.dimension_semantics<parallel>], iteration_bounds = array<i64: 1>, scalar_prefetch = 0 : i64, scratch_operands = 0 : i64, tpu.core_type = #tpu.core_type<tc>, window_params = [{transform_indices = @transform_0, window_bounds = array<i64: 2, 13, 16, 128>}, {transform_indices = @transform_1, window_bounds = array<i64: 2, 128>}, {pipeline_mode = #tpu.pipeline_mode<synchronous>, transform_indices = @transform_2, window_bounds = array<i64: 128, 16>}, {pipeline_mode = #tpu.pipeline_mode<synchronous>, transform_indices = @transform_3, window_bounds = array<i64: 1, 16>}, {pipeline_mode = #tpu.pipeline_mode<synchronous>, transform_indices = @transform_4, window_bounds = array<i64: 25, 16, 64>}, {pipeline_mode = #tpu.pipeline_mode<synchronous>, transform_indices = @transform_5, window_bounds = array<i64: 1, 64>}, {pipeline_mode = #tpu.pipeline_mode<synchronous>, transform_indices = @transform_6, window_bounds = array<i64: 192, 256>}, {pipeline_mode = #tpu.pipeline_mode<synchronous>, transform_indices = @transform_7, window_bounds = array<i64: 1, 256>}, {pipeline_mode = #tpu.pipeline_mode<synchronous>, transform_indices = @transform_8, window_bounds = array<i64: 256, 256>}, {pipeline_mode = #tpu.pipeline_mode<synchronous>, transform_indices = @transform_9, window_bounds = array<i64: 1, 256>}, {pipeline_mode = #tpu.pipeline_mode<synchronous>, transform_indices = @transform_10, window_bounds = array<i64: 256, 128>}, {pipeline_mode = #tpu.pipeline_mode<synchronous>, transform_indices = @transform_11, window_bounds = array<i64: 1, 128>}, {pipeline_mode = #tpu.pipeline_mode<synchronous>, transform_indices = @transform_12, window_bounds = array<i64: 128, 128>}, {pipeline_mode = #tpu.pipeline_mode<synchronous>, transform_indices = @transform_13, window_bounds = array<i64: 1, 128>}, {transform_indices = @transform_14, window_bounds = array<i64: 2, 128>}]} {
    %c0 = arith.constant 0 : index
    %c0_0 = arith.constant 0 : index
    %c0_1 = arith.constant 0 : index
    %c0_2 = arith.constant 0 : index
    %0 = vector.load %arg1[%c0, %c0_0, %c0_1, %c0_2] : memref<2x13x16x128xf32, #tpu.memory_space<vmem>>, vector<2x13x16x128xf32>
    %1 = vector.shape_cast %0 : vector<2x13x16x128xf32> to vector<416x128xf32>
    %c0_3 = arith.constant 0 : index
    %c0_4 = arith.constant 0 : index
    %2 = vector.load %arg3[%c0_3, %c0_4] : memref<128x16xf32, #tpu.memory_space<vmem>>, vector<128x16xf32>
    %cst = arith.constant dense<0.000000e+00> : vector<416x16xf32>
    %3 = tpu.matmul %1, %2, %cst {dimension_numbers = #tpu.dot_dimension_numbers<[1], [0], [0], [1], [0, 0, 1, 1], [], []>} : vector<416x128xf32>, vector<128x16xf32>, vector<416x16xf32> -> vector<416x16xf32>
    %c0_5 = arith.constant 0 : index
    %c0_6 = arith.constant 0 : index
    %4 = vector.load %arg4[%c0_5, %c0_6] : memref<1x16xf32, #tpu.memory_space<vmem>>, vector<1x16xf32>
    %5 = vector.broadcast %4 : vector<1x16xf32> to vector<416x16xf32>
    %6 = arith.addf %3, %5 : vector<416x16xf32>
    %cst_7 = arith.constant 0.000000e+00 : f32
    %7 = vector.broadcast %cst_7 : f32 to vector<416x16xf32>
    %8 = arith.maximumf %6, %7 : vector<416x16xf32>
    %9 = vector.shape_cast %8 : vector<416x16xf32> to vector<2x13x16x16xf32>
    %10 = vector.extract_strided_slice %9 {offsets = [0, 0, 0, 0], sizes = [2, 1, 16, 16], strides = [1, 1, 1, 1]} : vector<2x13x16x16xf32> to vector<2x1x16x16xf32>
    %11 = vector.extract_strided_slice %9 {offsets = [0, 1, 0, 0], sizes = [2, 1, 16, 16], strides = [1, 1, 1, 1]} : vector<2x13x16x16xf32> to vector<2x1x16x16xf32>
    %12 = arith.maximumf %10, %11 : vector<2x1x16x16xf32>
    %13 = vector.extract_strided_slice %9 {offsets = [0, 2, 0, 0], sizes = [2, 1, 16, 16], strides = [1, 1, 1, 1]} : vector<2x13x16x16xf32> to vector<2x1x16x16xf32>
    %14 = arith.maximumf %12, %13 : vector<2x1x16x16xf32>
    %15 = vector.extract_strided_slice %9 {offsets = [0, 2, 0, 0], sizes = [2, 1, 16, 16], strides = [1, 1, 1, 1]} : vector<2x13x16x16xf32> to vector<2x1x16x16xf32>
    %16 = vector.extract_strided_slice %9 {offsets = [0, 3, 0, 0], sizes = [2, 1, 16, 16], strides = [1, 1, 1, 1]} : vector<2x13x16x16xf32> to vector<2x1x16x16xf32>
    %17 = arith.maximumf %15, %16 : vector<2x1x16x16xf32>
    %18 = vector.extract_strided_slice %9 {offsets = [0, 4, 0, 0], sizes = [2, 1, 16, 16], strides = [1, 1, 1, 1]} : vector<2x13x16x16xf32> to vector<2x1x16x16xf32>
    %19 = arith.maximumf %17, %18 : vector<2x1x16x16xf32>
    %20 = vector.extract_strided_slice %9 {offsets = [0, 4, 0, 0], sizes = [2, 1, 16, 16], strides = [1, 1, 1, 1]} : vector<2x13x16x16xf32> to vector<2x1x16x16xf32>
    %21 = vector.extract_strided_slice %9 {offsets = [0, 5, 0, 0], sizes = [2, 1, 16, 16], strides = [1, 1, 1, 1]} : vector<2x13x16x16xf32> to vector<2x1x16x16xf32>
    %22 = arith.maximumf %20, %21 : vector<2x1x16x16xf32>
    %23 = vector.extract_strided_slice %9 {offsets = [0, 6, 0, 0], sizes = [2, 1, 16, 16], strides = [1, 1, 1, 1]} : vector<2x13x16x16xf32> to vector<2x1x16x16xf32>
    %24 = arith.maximumf %22, %23 : vector<2x1x16x16xf32>
    %25 = vector.extract_strided_slice %9 {offsets = [0, 6, 0, 0], sizes = [2, 1, 16, 16], strides = [1, 1, 1, 1]} : vector<2x13x16x16xf32> to vector<2x1x16x16xf32>
    %26 = vector.extract_strided_slice %9 {offsets = [0, 7, 0, 0], sizes = [2, 1, 16, 16], strides = [1, 1, 1, 1]} : vector<2x13x16x16xf32> to vector<2x1x16x16xf32>
    %27 = arith.maximumf %25, %26 : vector<2x1x16x16xf32>
    %28 = vector.extract_strided_slice %9 {offsets = [0, 8, 0, 0], sizes = [2, 1, 16, 16], strides = [1, 1, 1, 1]} : vector<2x13x16x16xf32> to vector<2x1x16x16xf32>
    %29 = arith.maximumf %27, %28 : vector<2x1x16x16xf32>
    %30 = vector.extract_strided_slice %9 {offsets = [0, 8, 0, 0], sizes = [2, 1, 16, 16], strides = [1, 1, 1, 1]} : vector<2x13x16x16xf32> to vector<2x1x16x16xf32>
    %31 = vector.extract_strided_slice %9 {offsets = [0, 9, 0, 0], sizes = [2, 1, 16, 16], strides = [1, 1, 1, 1]} : vector<2x13x16x16xf32> to vector<2x1x16x16xf32>
    %32 = arith.maximumf %30, %31 : vector<2x1x16x16xf32>
    %33 = vector.extract_strided_slice %9 {offsets = [0, 10, 0, 0], sizes = [2, 1, 16, 16], strides = [1, 1, 1, 1]} : vector<2x13x16x16xf32> to vector<2x1x16x16xf32>
    %34 = arith.maximumf %32, %33 : vector<2x1x16x16xf32>
    %35 = vector.extract_strided_slice %9 {offsets = [0, 10, 0, 0], sizes = [2, 1, 16, 16], strides = [1, 1, 1, 1]} : vector<2x13x16x16xf32> to vector<2x1x16x16xf32>
    %36 = vector.extract_strided_slice %9 {offsets = [0, 11, 0, 0], sizes = [2, 1, 16, 16], strides = [1, 1, 1, 1]} : vector<2x13x16x16xf32> to vector<2x1x16x16xf32>
    %37 = arith.maximumf %35, %36 : vector<2x1x16x16xf32>
    %38 = vector.extract_strided_slice %9 {offsets = [0, 12, 0, 0], sizes = [2, 1, 16, 16], strides = [1, 1, 1, 1]} : vector<2x13x16x16xf32> to vector<2x1x16x16xf32>
    %39 = arith.maximumf %37, %38 : vector<2x1x16x16xf32>
    %40 = tpu.concatenate %14, %19, %24, %29, %34, %39 in 1 : vector<2x1x16x16xf32>, vector<2x1x16x16xf32>, vector<2x1x16x16xf32>, vector<2x1x16x16xf32>, vector<2x1x16x16xf32>, vector<2x1x16x16xf32> -> vector<2x6x16x16xf32>
    %41 = vector.extract_strided_slice %40 {offsets = [0, 0, 0, 0], sizes = [2, 6, 1, 16], strides = [1, 1, 1, 1]} : vector<2x6x16x16xf32> to vector<2x6x1x16xf32>
    %42 = vector.extract_strided_slice %40 {offsets = [0, 0, 1, 0], sizes = [2, 6, 1, 16], strides = [1, 1, 1, 1]} : vector<2x6x16x16xf32> to vector<2x6x1x16xf32>
    %43 = arith.maximumf %41, %42 : vector<2x6x1x16xf32>
    %44 = vector.extract_strided_slice %40 {offsets = [0, 0, 2, 0], sizes = [2, 6, 1, 16], strides = [1, 1, 1, 1]} : vector<2x6x16x16xf32> to vector<2x6x1x16xf32>
    %45 = arith.maximumf %43, %44 : vector<2x6x1x16xf32>
    %46 = vector.extract_strided_slice %40 {offsets = [0, 0, 2, 0], sizes = [2, 6, 1, 16], strides = [1, 1, 1, 1]} : vector<2x6x16x16xf32> to vector<2x6x1x16xf32>
    %47 = vector.extract_strided_slice %40 {offsets = [0, 0, 3, 0], sizes = [2, 6, 1, 16], strides = [1, 1, 1, 1]} : vector<2x6x16x16xf32> to vector<2x6x1x16xf32>
    %48 = arith.maximumf %46, %47 : vector<2x6x1x16xf32>
    %49 = vector.extract_strided_slice %40 {offsets = [0, 0, 4, 0], sizes = [2, 6, 1, 16], strides = [1, 1, 1, 1]} : vector<2x6x16x16xf32> to vector<2x6x1x16xf32>
    %50 = arith.maximumf %48, %49 : vector<2x6x1x16xf32>
    %51 = vector.extract_strided_slice %40 {offsets = [0, 0, 4, 0], sizes = [2, 6, 1, 16], strides = [1, 1, 1, 1]} : vector<2x6x16x16xf32> to vector<2x6x1x16xf32>
    %52 = vector.extract_strided_slice %40 {offsets = [0, 0, 5, 0], sizes = [2, 6, 1, 16], strides = [1, 1, 1, 1]} : vector<2x6x16x16xf32> to vector<2x6x1x16xf32>
    %53 = arith.maximumf %51, %52 : vector<2x6x1x16xf32>
    %54 = vector.extract_strided_slice %40 {offsets = [0, 0, 6, 0], sizes = [2, 6, 1, 16], strides = [1, 1, 1, 1]} : vector<2x6x16x16xf32> to vector<2x6x1x16xf32>
    %55 = arith.maximumf %53, %54 : vector<2x6x1x16xf32>
    %56 = vector.extract_strided_slice %40 {offsets = [0, 0, 6, 0], sizes = [2, 6, 1, 16], strides = [1, 1, 1, 1]} : vector<2x6x16x16xf32> to vector<2x6x1x16xf32>
    %57 = vector.extract_strided_slice %40 {offsets = [0, 0, 7, 0], sizes = [2, 6, 1, 16], strides = [1, 1, 1, 1]} : vector<2x6x16x16xf32> to vector<2x6x1x16xf32>
    %58 = arith.maximumf %56, %57 : vector<2x6x1x16xf32>
    %59 = vector.extract_strided_slice %40 {offsets = [0, 0, 8, 0], sizes = [2, 6, 1, 16], strides = [1, 1, 1, 1]} : vector<2x6x16x16xf32> to vector<2x6x1x16xf32>
    %60 = arith.maximumf %58, %59 : vector<2x6x1x16xf32>
    %61 = vector.extract_strided_slice %40 {offsets = [0, 0, 8, 0], sizes = [2, 6, 1, 16], strides = [1, 1, 1, 1]} : vector<2x6x16x16xf32> to vector<2x6x1x16xf32>
    %62 = vector.extract_strided_slice %40 {offsets = [0, 0, 9, 0], sizes = [2, 6, 1, 16], strides = [1, 1, 1, 1]} : vector<2x6x16x16xf32> to vector<2x6x1x16xf32>
    %63 = arith.maximumf %61, %62 : vector<2x6x1x16xf32>
    %64 = vector.extract_strided_slice %40 {offsets = [0, 0, 10, 0], sizes = [2, 6, 1, 16], strides = [1, 1, 1, 1]} : vector<2x6x16x16xf32> to vector<2x6x1x16xf32>
    %65 = arith.maximumf %63, %64 : vector<2x6x1x16xf32>
    %66 = vector.extract_strided_slice %40 {offsets = [0, 0, 10, 0], sizes = [2, 6, 1, 16], strides = [1, 1, 1, 1]} : vector<2x6x16x16xf32> to vector<2x6x1x16xf32>
    %67 = vector.extract_strided_slice %40 {offsets = [0, 0, 11, 0], sizes = [2, 6, 1, 16], strides = [1, 1, 1, 1]} : vector<2x6x16x16xf32> to vector<2x6x1x16xf32>
    %68 = arith.maximumf %66, %67 : vector<2x6x1x16xf32>
    %69 = vector.extract_strided_slice %40 {offsets = [0, 0, 12, 0], sizes = [2, 6, 1, 16], strides = [1, 1, 1, 1]} : vector<2x6x16x16xf32> to vector<2x6x1x16xf32>
    %70 = arith.maximumf %68, %69 : vector<2x6x1x16xf32>
    %71 = tpu.concatenate %45, %50, %55, %60, %65, %70 in 2 : vector<2x6x1x16xf32>, vector<2x6x1x16xf32>, vector<2x6x1x16xf32>, vector<2x6x1x16xf32>, vector<2x6x1x16xf32>, vector<2x6x1x16xf32> -> vector<2x6x6x16xf32>
    %cst_8 = arith.constant 0.000000e+00 : f32
    %72 = vector.broadcast %cst_8 : f32 to vector<2x6x2x16xf32>
    %73 = tpu.concatenate %72, %71, %72 in 2 : vector<2x6x2x16xf32>, vector<2x6x6x16xf32>, vector<2x6x2x16xf32> -> vector<2x6x10x16xf32>
    %cst_9 = arith.constant 0.000000e+00 : f32
    %74 = vector.broadcast %cst_9 : f32 to vector<2x2x10x16xf32>
    %75 = tpu.concatenate %74, %73, %74 in 1 : vector<2x2x10x16xf32>, vector<2x6x10x16xf32>, vector<2x2x10x16xf32> -> vector<2x10x10x16xf32>
    %cst_10 = arith.constant 0.000000e+00 : f32
    %76 = vector.broadcast %cst_10 : f32 to vector<18x64xf32>
    %77 = vector.extract_strided_slice %75 {offsets = [0, 0, 0, 0], sizes = [2, 1, 10, 16], strides = [1, 1, 1, 1]} : vector<2x10x10x16xf32> to vector<2x1x10x16xf32>
    %78 = vector.extract_strided_slice %75 {offsets = [0, 2, 0, 0], sizes = [2, 1, 10, 16], strides = [1, 1, 1, 1]} : vector<2x10x10x16xf32> to vector<2x1x10x16xf32>
    %79 = vector.extract_strided_slice %75 {offsets = [0, 4, 0, 0], sizes = [2, 1, 10, 16], strides = [1, 1, 1, 1]} : vector<2x10x10x16xf32> to vector<2x1x10x16xf32>
    %80 = tpu.concatenate %77, %78, %79 in 1 : vector<2x1x10x16xf32>, vector<2x1x10x16xf32>, vector<2x1x10x16xf32> -> vector<2x3x10x16xf32>
    %81 = vector.extract_strided_slice %80 {offsets = [0, 0, 0, 0], sizes = [2, 3, 1, 16], strides = [1, 1, 1, 1]} : vector<2x3x10x16xf32> to vector<2x3x1x16xf32>
    %82 = vector.extract_strided_slice %80 {offsets = [0, 0, 2, 0], sizes = [2, 3, 1, 16], strides = [1, 1, 1, 1]} : vector<2x3x10x16xf32> to vector<2x3x1x16xf32>
    %83 = vector.extract_strided_slice %80 {offsets = [0, 0, 4, 0], sizes = [2, 3, 1, 16], strides = [1, 1, 1, 1]} : vector<2x3x10x16xf32> to vector<2x3x1x16xf32>
    %84 = tpu.concatenate %81, %82, %83 in 2 : vector<2x3x1x16xf32>, vector<2x3x1x16xf32>, vector<2x3x1x16xf32> -> vector<2x3x3x16xf32>
    %85 = vector.shape_cast %84 : vector<2x3x3x16xf32> to vector<18x16xf32>
    %c0_11 = arith.constant 0 : index
    %c0_12 = arith.constant 0 : index
    %c0_13 = arith.constant 0 : index
    %86 = vector.load %arg5[%c0_11, %c0_12, %c0_13] : memref<25x16x64xf32, #tpu.memory_space<vmem>>, vector<1x16x64xf32>
    %87 = vector.shape_cast %86 : vector<1x16x64xf32> to vector<16x64xf32>
    %cst_14 = arith.constant dense<0.000000e+00> : vector<18x64xf32>
    %88 = tpu.matmul %85, %87, %cst_14 {dimension_numbers = #tpu.dot_dimension_numbers<[1], [0], [0], [1], [0, 0, 1, 1], [], []>} : vector<18x16xf32>, vector<16x64xf32>, vector<18x64xf32> -> vector<18x64xf32>
    %89 = arith.addf %76, %88 : vector<18x64xf32>
    %90 = vector.extract_strided_slice %80 {offsets = [0, 0, 1, 0], sizes = [2, 3, 1, 16], strides = [1, 1, 1, 1]} : vector<2x3x10x16xf32> to vector<2x3x1x16xf32>
    %91 = vector.extract_strided_slice %80 {offsets = [0, 0, 3, 0], sizes = [2, 3, 1, 16], strides = [1, 1, 1, 1]} : vector<2x3x10x16xf32> to vector<2x3x1x16xf32>
    %92 = vector.extract_strided_slice %80 {offsets = [0, 0, 5, 0], sizes = [2, 3, 1, 16], strides = [1, 1, 1, 1]} : vector<2x3x10x16xf32> to vector<2x3x1x16xf32>
    %93 = tpu.concatenate %90, %91, %92 in 2 : vector<2x3x1x16xf32>, vector<2x3x1x16xf32>, vector<2x3x1x16xf32> -> vector<2x3x3x16xf32>
    %94 = vector.shape_cast %93 : vector<2x3x3x16xf32> to vector<18x16xf32>
    %c1 = arith.constant 1 : index
    %c0_15 = arith.constant 0 : index
    %c0_16 = arith.constant 0 : index
    %95 = vector.load %arg5[%c1, %c0_15, %c0_16] : memref<25x16x64xf32, #tpu.memory_space<vmem>>, vector<1x16x64xf32>
    %96 = vector.shape_cast %95 : vector<1x16x64xf32> to vector<16x64xf32>
    %cst_17 = arith.constant dense<0.000000e+00> : vector<18x64xf32>
    %97 = tpu.matmul %94, %96, %cst_17 {dimension_numbers = #tpu.dot_dimension_numbers<[1], [0], [0], [1], [0, 0, 1, 1], [], []>} : vector<18x16xf32>, vector<16x64xf32>, vector<18x64xf32> -> vector<18x64xf32>
    %98 = arith.addf %89, %97 : vector<18x64xf32>
    %99 = vector.extract_strided_slice %80 {offsets = [0, 0, 2, 0], sizes = [2, 3, 1, 16], strides = [1, 1, 1, 1]} : vector<2x3x10x16xf32> to vector<2x3x1x16xf32>
    %100 = vector.extract_strided_slice %80 {offsets = [0, 0, 4, 0], sizes = [2, 3, 1, 16], strides = [1, 1, 1, 1]} : vector<2x3x10x16xf32> to vector<2x3x1x16xf32>
    %101 = vector.extract_strided_slice %80 {offsets = [0, 0, 6, 0], sizes = [2, 3, 1, 16], strides = [1, 1, 1, 1]} : vector<2x3x10x16xf32> to vector<2x3x1x16xf32>
    %102 = tpu.concatenate %99, %100, %101 in 2 : vector<2x3x1x16xf32>, vector<2x3x1x16xf32>, vector<2x3x1x16xf32> -> vector<2x3x3x16xf32>
    %103 = vector.shape_cast %102 : vector<2x3x3x16xf32> to vector<18x16xf32>
    %c2 = arith.constant 2 : index
    %c0_18 = arith.constant 0 : index
    %c0_19 = arith.constant 0 : index
    %104 = vector.load %arg5[%c2, %c0_18, %c0_19] : memref<25x16x64xf32, #tpu.memory_space<vmem>>, vector<1x16x64xf32>
    %105 = vector.shape_cast %104 : vector<1x16x64xf32> to vector<16x64xf32>
    %cst_20 = arith.constant dense<0.000000e+00> : vector<18x64xf32>
    %106 = tpu.matmul %103, %105, %cst_20 {dimension_numbers = #tpu.dot_dimension_numbers<[1], [0], [0], [1], [0, 0, 1, 1], [], []>} : vector<18x16xf32>, vector<16x64xf32>, vector<18x64xf32> -> vector<18x64xf32>
    %107 = arith.addf %98, %106 : vector<18x64xf32>
    %108 = vector.extract_strided_slice %80 {offsets = [0, 0, 3, 0], sizes = [2, 3, 1, 16], strides = [1, 1, 1, 1]} : vector<2x3x10x16xf32> to vector<2x3x1x16xf32>
    %109 = vector.extract_strided_slice %80 {offsets = [0, 0, 5, 0], sizes = [2, 3, 1, 16], strides = [1, 1, 1, 1]} : vector<2x3x10x16xf32> to vector<2x3x1x16xf32>
    %110 = vector.extract_strided_slice %80 {offsets = [0, 0, 7, 0], sizes = [2, 3, 1, 16], strides = [1, 1, 1, 1]} : vector<2x3x10x16xf32> to vector<2x3x1x16xf32>
    %111 = tpu.concatenate %108, %109, %110 in 2 : vector<2x3x1x16xf32>, vector<2x3x1x16xf32>, vector<2x3x1x16xf32> -> vector<2x3x3x16xf32>
    %112 = vector.shape_cast %111 : vector<2x3x3x16xf32> to vector<18x16xf32>
    %c3 = arith.constant 3 : index
    %c0_21 = arith.constant 0 : index
    %c0_22 = arith.constant 0 : index
    %113 = vector.load %arg5[%c3, %c0_21, %c0_22] : memref<25x16x64xf32, #tpu.memory_space<vmem>>, vector<1x16x64xf32>
    %114 = vector.shape_cast %113 : vector<1x16x64xf32> to vector<16x64xf32>
    %cst_23 = arith.constant dense<0.000000e+00> : vector<18x64xf32>
    %115 = tpu.matmul %112, %114, %cst_23 {dimension_numbers = #tpu.dot_dimension_numbers<[1], [0], [0], [1], [0, 0, 1, 1], [], []>} : vector<18x16xf32>, vector<16x64xf32>, vector<18x64xf32> -> vector<18x64xf32>
    %116 = arith.addf %107, %115 : vector<18x64xf32>
    %117 = vector.extract_strided_slice %80 {offsets = [0, 0, 4, 0], sizes = [2, 3, 1, 16], strides = [1, 1, 1, 1]} : vector<2x3x10x16xf32> to vector<2x3x1x16xf32>
    %118 = vector.extract_strided_slice %80 {offsets = [0, 0, 6, 0], sizes = [2, 3, 1, 16], strides = [1, 1, 1, 1]} : vector<2x3x10x16xf32> to vector<2x3x1x16xf32>
    %119 = vector.extract_strided_slice %80 {offsets = [0, 0, 8, 0], sizes = [2, 3, 1, 16], strides = [1, 1, 1, 1]} : vector<2x3x10x16xf32> to vector<2x3x1x16xf32>
    %120 = tpu.concatenate %117, %118, %119 in 2 : vector<2x3x1x16xf32>, vector<2x3x1x16xf32>, vector<2x3x1x16xf32> -> vector<2x3x3x16xf32>
    %121 = vector.shape_cast %120 : vector<2x3x3x16xf32> to vector<18x16xf32>
    %c4 = arith.constant 4 : index
    %c0_24 = arith.constant 0 : index
    %c0_25 = arith.constant 0 : index
    %122 = vector.load %arg5[%c4, %c0_24, %c0_25] : memref<25x16x64xf32, #tpu.memory_space<vmem>>, vector<1x16x64xf32>
    %123 = vector.shape_cast %122 : vector<1x16x64xf32> to vector<16x64xf32>
    %cst_26 = arith.constant dense<0.000000e+00> : vector<18x64xf32>
    %124 = tpu.matmul %121, %123, %cst_26 {dimension_numbers = #tpu.dot_dimension_numbers<[1], [0], [0], [1], [0, 0, 1, 1], [], []>} : vector<18x16xf32>, vector<16x64xf32>, vector<18x64xf32> -> vector<18x64xf32>
    %125 = arith.addf %116, %124 : vector<18x64xf32>
    %126 = vector.extract_strided_slice %75 {offsets = [0, 1, 0, 0], sizes = [2, 1, 10, 16], strides = [1, 1, 1, 1]} : vector<2x10x10x16xf32> to vector<2x1x10x16xf32>
    %127 = vector.extract_strided_slice %75 {offsets = [0, 3, 0, 0], sizes = [2, 1, 10, 16], strides = [1, 1, 1, 1]} : vector<2x10x10x16xf32> to vector<2x1x10x16xf32>
    %128 = vector.extract_strided_slice %75 {offsets = [0, 5, 0, 0], sizes = [2, 1, 10, 16], strides = [1, 1, 1, 1]} : vector<2x10x10x16xf32> to vector<2x1x10x16xf32>
    %129 = tpu.concatenate %126, %127, %128 in 1 : vector<2x1x10x16xf32>, vector<2x1x10x16xf32>, vector<2x1x10x16xf32> -> vector<2x3x10x16xf32>
    %130 = vector.extract_strided_slice %129 {offsets = [0, 0, 0, 0], sizes = [2, 3, 1, 16], strides = [1, 1, 1, 1]} : vector<2x3x10x16xf32> to vector<2x3x1x16xf32>
    %131 = vector.extract_strided_slice %129 {offsets = [0, 0, 2, 0], sizes = [2, 3, 1, 16], strides = [1, 1, 1, 1]} : vector<2x3x10x16xf32> to vector<2x3x1x16xf32>
    %132 = vector.extract_strided_slice %129 {offsets = [0, 0, 4, 0], sizes = [2, 3, 1, 16], strides = [1, 1, 1, 1]} : vector<2x3x10x16xf32> to vector<2x3x1x16xf32>
    %133 = tpu.concatenate %130, %131, %132 in 2 : vector<2x3x1x16xf32>, vector<2x3x1x16xf32>, vector<2x3x1x16xf32> -> vector<2x3x3x16xf32>
    %134 = vector.shape_cast %133 : vector<2x3x3x16xf32> to vector<18x16xf32>
    %c5 = arith.constant 5 : index
    %c0_27 = arith.constant 0 : index
    %c0_28 = arith.constant 0 : index
    %135 = vector.load %arg5[%c5, %c0_27, %c0_28] : memref<25x16x64xf32, #tpu.memory_space<vmem>>, vector<1x16x64xf32>
    %136 = vector.shape_cast %135 : vector<1x16x64xf32> to vector<16x64xf32>
    %cst_29 = arith.constant dense<0.000000e+00> : vector<18x64xf32>
    %137 = tpu.matmul %134, %136, %cst_29 {dimension_numbers = #tpu.dot_dimension_numbers<[1], [0], [0], [1], [0, 0, 1, 1], [], []>} : vector<18x16xf32>, vector<16x64xf32>, vector<18x64xf32> -> vector<18x64xf32>
    %138 = arith.addf %125, %137 : vector<18x64xf32>
    %139 = vector.extract_strided_slice %129 {offsets = [0, 0, 1, 0], sizes = [2, 3, 1, 16], strides = [1, 1, 1, 1]} : vector<2x3x10x16xf32> to vector<2x3x1x16xf32>
    %140 = vector.extract_strided_slice %129 {offsets = [0, 0, 3, 0], sizes = [2, 3, 1, 16], strides = [1, 1, 1, 1]} : vector<2x3x10x16xf32> to vector<2x3x1x16xf32>
    %141 = vector.extract_strided_slice %129 {offsets = [0, 0, 5, 0], sizes = [2, 3, 1, 16], strides = [1, 1, 1, 1]} : vector<2x3x10x16xf32> to vector<2x3x1x16xf32>
    %142 = tpu.concatenate %139, %140, %141 in 2 : vector<2x3x1x16xf32>, vector<2x3x1x16xf32>, vector<2x3x1x16xf32> -> vector<2x3x3x16xf32>
    %143 = vector.shape_cast %142 : vector<2x3x3x16xf32> to vector<18x16xf32>
    %c6 = arith.constant 6 : index
    %c0_30 = arith.constant 0 : index
    %c0_31 = arith.constant 0 : index
    %144 = vector.load %arg5[%c6, %c0_30, %c0_31] : memref<25x16x64xf32, #tpu.memory_space<vmem>>, vector<1x16x64xf32>
    %145 = vector.shape_cast %144 : vector<1x16x64xf32> to vector<16x64xf32>
    %cst_32 = arith.constant dense<0.000000e+00> : vector<18x64xf32>
    %146 = tpu.matmul %143, %145, %cst_32 {dimension_numbers = #tpu.dot_dimension_numbers<[1], [0], [0], [1], [0, 0, 1, 1], [], []>} : vector<18x16xf32>, vector<16x64xf32>, vector<18x64xf32> -> vector<18x64xf32>
    %147 = arith.addf %138, %146 : vector<18x64xf32>
    %148 = vector.extract_strided_slice %129 {offsets = [0, 0, 2, 0], sizes = [2, 3, 1, 16], strides = [1, 1, 1, 1]} : vector<2x3x10x16xf32> to vector<2x3x1x16xf32>
    %149 = vector.extract_strided_slice %129 {offsets = [0, 0, 4, 0], sizes = [2, 3, 1, 16], strides = [1, 1, 1, 1]} : vector<2x3x10x16xf32> to vector<2x3x1x16xf32>
    %150 = vector.extract_strided_slice %129 {offsets = [0, 0, 6, 0], sizes = [2, 3, 1, 16], strides = [1, 1, 1, 1]} : vector<2x3x10x16xf32> to vector<2x3x1x16xf32>
    %151 = tpu.concatenate %148, %149, %150 in 2 : vector<2x3x1x16xf32>, vector<2x3x1x16xf32>, vector<2x3x1x16xf32> -> vector<2x3x3x16xf32>
    %152 = vector.shape_cast %151 : vector<2x3x3x16xf32> to vector<18x16xf32>
    %c7 = arith.constant 7 : index
    %c0_33 = arith.constant 0 : index
    %c0_34 = arith.constant 0 : index
    %153 = vector.load %arg5[%c7, %c0_33, %c0_34] : memref<25x16x64xf32, #tpu.memory_space<vmem>>, vector<1x16x64xf32>
    %154 = vector.shape_cast %153 : vector<1x16x64xf32> to vector<16x64xf32>
    %cst_35 = arith.constant dense<0.000000e+00> : vector<18x64xf32>
    %155 = tpu.matmul %152, %154, %cst_35 {dimension_numbers = #tpu.dot_dimension_numbers<[1], [0], [0], [1], [0, 0, 1, 1], [], []>} : vector<18x16xf32>, vector<16x64xf32>, vector<18x64xf32> -> vector<18x64xf32>
    %156 = arith.addf %147, %155 : vector<18x64xf32>
    %157 = vector.extract_strided_slice %129 {offsets = [0, 0, 3, 0], sizes = [2, 3, 1, 16], strides = [1, 1, 1, 1]} : vector<2x3x10x16xf32> to vector<2x3x1x16xf32>
    %158 = vector.extract_strided_slice %129 {offsets = [0, 0, 5, 0], sizes = [2, 3, 1, 16], strides = [1, 1, 1, 1]} : vector<2x3x10x16xf32> to vector<2x3x1x16xf32>
    %159 = vector.extract_strided_slice %129 {offsets = [0, 0, 7, 0], sizes = [2, 3, 1, 16], strides = [1, 1, 1, 1]} : vector<2x3x10x16xf32> to vector<2x3x1x16xf32>
    %160 = tpu.concatenate %157, %158, %159 in 2 : vector<2x3x1x16xf32>, vector<2x3x1x16xf32>, vector<2x3x1x16xf32> -> vector<2x3x3x16xf32>
    %161 = vector.shape_cast %160 : vector<2x3x3x16xf32> to vector<18x16xf32>
    %c8 = arith.constant 8 : index
    %c0_36 = arith.constant 0 : index
    %c0_37 = arith.constant 0 : index
    %162 = vector.load %arg5[%c8, %c0_36, %c0_37] : memref<25x16x64xf32, #tpu.memory_space<vmem>>, vector<1x16x64xf32>
    %163 = vector.shape_cast %162 : vector<1x16x64xf32> to vector<16x64xf32>
    %cst_38 = arith.constant dense<0.000000e+00> : vector<18x64xf32>
    %164 = tpu.matmul %161, %163, %cst_38 {dimension_numbers = #tpu.dot_dimension_numbers<[1], [0], [0], [1], [0, 0, 1, 1], [], []>} : vector<18x16xf32>, vector<16x64xf32>, vector<18x64xf32> -> vector<18x64xf32>
    %165 = arith.addf %156, %164 : vector<18x64xf32>
    %166 = vector.extract_strided_slice %129 {offsets = [0, 0, 4, 0], sizes = [2, 3, 1, 16], strides = [1, 1, 1, 1]} : vector<2x3x10x16xf32> to vector<2x3x1x16xf32>
    %167 = vector.extract_strided_slice %129 {offsets = [0, 0, 6, 0], sizes = [2, 3, 1, 16], strides = [1, 1, 1, 1]} : vector<2x3x10x16xf32> to vector<2x3x1x16xf32>
    %168 = vector.extract_strided_slice %129 {offsets = [0, 0, 8, 0], sizes = [2, 3, 1, 16], strides = [1, 1, 1, 1]} : vector<2x3x10x16xf32> to vector<2x3x1x16xf32>
    %169 = tpu.concatenate %166, %167, %168 in 2 : vector<2x3x1x16xf32>, vector<2x3x1x16xf32>, vector<2x3x1x16xf32> -> vector<2x3x3x16xf32>
    %170 = vector.shape_cast %169 : vector<2x3x3x16xf32> to vector<18x16xf32>
    %c9 = arith.constant 9 : index
    %c0_39 = arith.constant 0 : index
    %c0_40 = arith.constant 0 : index
    %171 = vector.load %arg5[%c9, %c0_39, %c0_40] : memref<25x16x64xf32, #tpu.memory_space<vmem>>, vector<1x16x64xf32>
    %172 = vector.shape_cast %171 : vector<1x16x64xf32> to vector<16x64xf32>
    %cst_41 = arith.constant dense<0.000000e+00> : vector<18x64xf32>
    %173 = tpu.matmul %170, %172, %cst_41 {dimension_numbers = #tpu.dot_dimension_numbers<[1], [0], [0], [1], [0, 0, 1, 1], [], []>} : vector<18x16xf32>, vector<16x64xf32>, vector<18x64xf32> -> vector<18x64xf32>
    %174 = arith.addf %165, %173 : vector<18x64xf32>
    %175 = vector.extract_strided_slice %75 {offsets = [0, 2, 0, 0], sizes = [2, 1, 10, 16], strides = [1, 1, 1, 1]} : vector<2x10x10x16xf32> to vector<2x1x10x16xf32>
    %176 = vector.extract_strided_slice %75 {offsets = [0, 4, 0, 0], sizes = [2, 1, 10, 16], strides = [1, 1, 1, 1]} : vector<2x10x10x16xf32> to vector<2x1x10x16xf32>
    %177 = vector.extract_strided_slice %75 {offsets = [0, 6, 0, 0], sizes = [2, 1, 10, 16], strides = [1, 1, 1, 1]} : vector<2x10x10x16xf32> to vector<2x1x10x16xf32>
    %178 = tpu.concatenate %175, %176, %177 in 1 : vector<2x1x10x16xf32>, vector<2x1x10x16xf32>, vector<2x1x10x16xf32> -> vector<2x3x10x16xf32>
    %179 = vector.extract_strided_slice %178 {offsets = [0, 0, 0, 0], sizes = [2, 3, 1, 16], strides = [1, 1, 1, 1]} : vector<2x3x10x16xf32> to vector<2x3x1x16xf32>
    %180 = vector.extract_strided_slice %178 {offsets = [0, 0, 2, 0], sizes = [2, 3, 1, 16], strides = [1, 1, 1, 1]} : vector<2x3x10x16xf32> to vector<2x3x1x16xf32>
    %181 = vector.extract_strided_slice %178 {offsets = [0, 0, 4, 0], sizes = [2, 3, 1, 16], strides = [1, 1, 1, 1]} : vector<2x3x10x16xf32> to vector<2x3x1x16xf32>
    %182 = tpu.concatenate %179, %180, %181 in 2 : vector<2x3x1x16xf32>, vector<2x3x1x16xf32>, vector<2x3x1x16xf32> -> vector<2x3x3x16xf32>
    %183 = vector.shape_cast %182 : vector<2x3x3x16xf32> to vector<18x16xf32>
    %c10 = arith.constant 10 : index
    %c0_42 = arith.constant 0 : index
    %c0_43 = arith.constant 0 : index
    %184 = vector.load %arg5[%c10, %c0_42, %c0_43] : memref<25x16x64xf32, #tpu.memory_space<vmem>>, vector<1x16x64xf32>
    %185 = vector.shape_cast %184 : vector<1x16x64xf32> to vector<16x64xf32>
    %cst_44 = arith.constant dense<0.000000e+00> : vector<18x64xf32>
    %186 = tpu.matmul %183, %185, %cst_44 {dimension_numbers = #tpu.dot_dimension_numbers<[1], [0], [0], [1], [0, 0, 1, 1], [], []>} : vector<18x16xf32>, vector<16x64xf32>, vector<18x64xf32> -> vector<18x64xf32>
    %187 = arith.addf %174, %186 : vector<18x64xf32>
    %188 = vector.extract_strided_slice %178 {offsets = [0, 0, 1, 0], sizes = [2, 3, 1, 16], strides = [1, 1, 1, 1]} : vector<2x3x10x16xf32> to vector<2x3x1x16xf32>
    %189 = vector.extract_strided_slice %178 {offsets = [0, 0, 3, 0], sizes = [2, 3, 1, 16], strides = [1, 1, 1, 1]} : vector<2x3x10x16xf32> to vector<2x3x1x16xf32>
    %190 = vector.extract_strided_slice %178 {offsets = [0, 0, 5, 0], sizes = [2, 3, 1, 16], strides = [1, 1, 1, 1]} : vector<2x3x10x16xf32> to vector<2x3x1x16xf32>
    %191 = tpu.concatenate %188, %189, %190 in 2 : vector<2x3x1x16xf32>, vector<2x3x1x16xf32>, vector<2x3x1x16xf32> -> vector<2x3x3x16xf32>
    %192 = vector.shape_cast %191 : vector<2x3x3x16xf32> to vector<18x16xf32>
    %c11 = arith.constant 11 : index
    %c0_45 = arith.constant 0 : index
    %c0_46 = arith.constant 0 : index
    %193 = vector.load %arg5[%c11, %c0_45, %c0_46] : memref<25x16x64xf32, #tpu.memory_space<vmem>>, vector<1x16x64xf32>
    %194 = vector.shape_cast %193 : vector<1x16x64xf32> to vector<16x64xf32>
    %cst_47 = arith.constant dense<0.000000e+00> : vector<18x64xf32>
    %195 = tpu.matmul %192, %194, %cst_47 {dimension_numbers = #tpu.dot_dimension_numbers<[1], [0], [0], [1], [0, 0, 1, 1], [], []>} : vector<18x16xf32>, vector<16x64xf32>, vector<18x64xf32> -> vector<18x64xf32>
    %196 = arith.addf %187, %195 : vector<18x64xf32>
    %197 = vector.extract_strided_slice %178 {offsets = [0, 0, 2, 0], sizes = [2, 3, 1, 16], strides = [1, 1, 1, 1]} : vector<2x3x10x16xf32> to vector<2x3x1x16xf32>
    %198 = vector.extract_strided_slice %178 {offsets = [0, 0, 4, 0], sizes = [2, 3, 1, 16], strides = [1, 1, 1, 1]} : vector<2x3x10x16xf32> to vector<2x3x1x16xf32>
    %199 = vector.extract_strided_slice %178 {offsets = [0, 0, 6, 0], sizes = [2, 3, 1, 16], strides = [1, 1, 1, 1]} : vector<2x3x10x16xf32> to vector<2x3x1x16xf32>
    %200 = tpu.concatenate %197, %198, %199 in 2 : vector<2x3x1x16xf32>, vector<2x3x1x16xf32>, vector<2x3x1x16xf32> -> vector<2x3x3x16xf32>
    %201 = vector.shape_cast %200 : vector<2x3x3x16xf32> to vector<18x16xf32>
    %c12 = arith.constant 12 : index
    %c0_48 = arith.constant 0 : index
    %c0_49 = arith.constant 0 : index
    %202 = vector.load %arg5[%c12, %c0_48, %c0_49] : memref<25x16x64xf32, #tpu.memory_space<vmem>>, vector<1x16x64xf32>
    %203 = vector.shape_cast %202 : vector<1x16x64xf32> to vector<16x64xf32>
    %cst_50 = arith.constant dense<0.000000e+00> : vector<18x64xf32>
    %204 = tpu.matmul %201, %203, %cst_50 {dimension_numbers = #tpu.dot_dimension_numbers<[1], [0], [0], [1], [0, 0, 1, 1], [], []>} : vector<18x16xf32>, vector<16x64xf32>, vector<18x64xf32> -> vector<18x64xf32>
    %205 = arith.addf %196, %204 : vector<18x64xf32>
    %206 = vector.extract_strided_slice %178 {offsets = [0, 0, 3, 0], sizes = [2, 3, 1, 16], strides = [1, 1, 1, 1]} : vector<2x3x10x16xf32> to vector<2x3x1x16xf32>
    %207 = vector.extract_strided_slice %178 {offsets = [0, 0, 5, 0], sizes = [2, 3, 1, 16], strides = [1, 1, 1, 1]} : vector<2x3x10x16xf32> to vector<2x3x1x16xf32>
    %208 = vector.extract_strided_slice %178 {offsets = [0, 0, 7, 0], sizes = [2, 3, 1, 16], strides = [1, 1, 1, 1]} : vector<2x3x10x16xf32> to vector<2x3x1x16xf32>
    %209 = tpu.concatenate %206, %207, %208 in 2 : vector<2x3x1x16xf32>, vector<2x3x1x16xf32>, vector<2x3x1x16xf32> -> vector<2x3x3x16xf32>
    %210 = vector.shape_cast %209 : vector<2x3x3x16xf32> to vector<18x16xf32>
    %c13 = arith.constant 13 : index
    %c0_51 = arith.constant 0 : index
    %c0_52 = arith.constant 0 : index
    %211 = vector.load %arg5[%c13, %c0_51, %c0_52] : memref<25x16x64xf32, #tpu.memory_space<vmem>>, vector<1x16x64xf32>
    %212 = vector.shape_cast %211 : vector<1x16x64xf32> to vector<16x64xf32>
    %cst_53 = arith.constant dense<0.000000e+00> : vector<18x64xf32>
    %213 = tpu.matmul %210, %212, %cst_53 {dimension_numbers = #tpu.dot_dimension_numbers<[1], [0], [0], [1], [0, 0, 1, 1], [], []>} : vector<18x16xf32>, vector<16x64xf32>, vector<18x64xf32> -> vector<18x64xf32>
    %214 = arith.addf %205, %213 : vector<18x64xf32>
    %215 = vector.extract_strided_slice %178 {offsets = [0, 0, 4, 0], sizes = [2, 3, 1, 16], strides = [1, 1, 1, 1]} : vector<2x3x10x16xf32> to vector<2x3x1x16xf32>
    %216 = vector.extract_strided_slice %178 {offsets = [0, 0, 6, 0], sizes = [2, 3, 1, 16], strides = [1, 1, 1, 1]} : vector<2x3x10x16xf32> to vector<2x3x1x16xf32>
    %217 = vector.extract_strided_slice %178 {offsets = [0, 0, 8, 0], sizes = [2, 3, 1, 16], strides = [1, 1, 1, 1]} : vector<2x3x10x16xf32> to vector<2x3x1x16xf32>
    %218 = tpu.concatenate %215, %216, %217 in 2 : vector<2x3x1x16xf32>, vector<2x3x1x16xf32>, vector<2x3x1x16xf32> -> vector<2x3x3x16xf32>
    %219 = vector.shape_cast %218 : vector<2x3x3x16xf32> to vector<18x16xf32>
    %c14 = arith.constant 14 : index
    %c0_54 = arith.constant 0 : index
    %c0_55 = arith.constant 0 : index
    %220 = vector.load %arg5[%c14, %c0_54, %c0_55] : memref<25x16x64xf32, #tpu.memory_space<vmem>>, vector<1x16x64xf32>
    %221 = vector.shape_cast %220 : vector<1x16x64xf32> to vector<16x64xf32>
    %cst_56 = arith.constant dense<0.000000e+00> : vector<18x64xf32>
    %222 = tpu.matmul %219, %221, %cst_56 {dimension_numbers = #tpu.dot_dimension_numbers<[1], [0], [0], [1], [0, 0, 1, 1], [], []>} : vector<18x16xf32>, vector<16x64xf32>, vector<18x64xf32> -> vector<18x64xf32>
    %223 = arith.addf %214, %222 : vector<18x64xf32>
    %224 = vector.extract_strided_slice %75 {offsets = [0, 3, 0, 0], sizes = [2, 1, 10, 16], strides = [1, 1, 1, 1]} : vector<2x10x10x16xf32> to vector<2x1x10x16xf32>
    %225 = vector.extract_strided_slice %75 {offsets = [0, 5, 0, 0], sizes = [2, 1, 10, 16], strides = [1, 1, 1, 1]} : vector<2x10x10x16xf32> to vector<2x1x10x16xf32>
    %226 = vector.extract_strided_slice %75 {offsets = [0, 7, 0, 0], sizes = [2, 1, 10, 16], strides = [1, 1, 1, 1]} : vector<2x10x10x16xf32> to vector<2x1x10x16xf32>
    %227 = tpu.concatenate %224, %225, %226 in 1 : vector<2x1x10x16xf32>, vector<2x1x10x16xf32>, vector<2x1x10x16xf32> -> vector<2x3x10x16xf32>
    %228 = vector.extract_strided_slice %227 {offsets = [0, 0, 0, 0], sizes = [2, 3, 1, 16], strides = [1, 1, 1, 1]} : vector<2x3x10x16xf32> to vector<2x3x1x16xf32>
    %229 = vector.extract_strided_slice %227 {offsets = [0, 0, 2, 0], sizes = [2, 3, 1, 16], strides = [1, 1, 1, 1]} : vector<2x3x10x16xf32> to vector<2x3x1x16xf32>
    %230 = vector.extract_strided_slice %227 {offsets = [0, 0, 4, 0], sizes = [2, 3, 1, 16], strides = [1, 1, 1, 1]} : vector<2x3x10x16xf32> to vector<2x3x1x16xf32>
    %231 = tpu.concatenate %228, %229, %230 in 2 : vector<2x3x1x16xf32>, vector<2x3x1x16xf32>, vector<2x3x1x16xf32> -> vector<2x3x3x16xf32>
    %232 = vector.shape_cast %231 : vector<2x3x3x16xf32> to vector<18x16xf32>
    %c15 = arith.constant 15 : index
    %c0_57 = arith.constant 0 : index
    %c0_58 = arith.constant 0 : index
    %233 = vector.load %arg5[%c15, %c0_57, %c0_58] : memref<25x16x64xf32, #tpu.memory_space<vmem>>, vector<1x16x64xf32>
    %234 = vector.shape_cast %233 : vector<1x16x64xf32> to vector<16x64xf32>
    %cst_59 = arith.constant dense<0.000000e+00> : vector<18x64xf32>
    %235 = tpu.matmul %232, %234, %cst_59 {dimension_numbers = #tpu.dot_dimension_numbers<[1], [0], [0], [1], [0, 0, 1, 1], [], []>} : vector<18x16xf32>, vector<16x64xf32>, vector<18x64xf32> -> vector<18x64xf32>
    %236 = arith.addf %223, %235 : vector<18x64xf32>
    %237 = vector.extract_strided_slice %227 {offsets = [0, 0, 1, 0], sizes = [2, 3, 1, 16], strides = [1, 1, 1, 1]} : vector<2x3x10x16xf32> to vector<2x3x1x16xf32>
    %238 = vector.extract_strided_slice %227 {offsets = [0, 0, 3, 0], sizes = [2, 3, 1, 16], strides = [1, 1, 1, 1]} : vector<2x3x10x16xf32> to vector<2x3x1x16xf32>
    %239 = vector.extract_strided_slice %227 {offsets = [0, 0, 5, 0], sizes = [2, 3, 1, 16], strides = [1, 1, 1, 1]} : vector<2x3x10x16xf32> to vector<2x3x1x16xf32>
    %240 = tpu.concatenate %237, %238, %239 in 2 : vector<2x3x1x16xf32>, vector<2x3x1x16xf32>, vector<2x3x1x16xf32> -> vector<2x3x3x16xf32>
    %241 = vector.shape_cast %240 : vector<2x3x3x16xf32> to vector<18x16xf32>
    %c16 = arith.constant 16 : index
    %c0_60 = arith.constant 0 : index
    %c0_61 = arith.constant 0 : index
    %242 = vector.load %arg5[%c16, %c0_60, %c0_61] : memref<25x16x64xf32, #tpu.memory_space<vmem>>, vector<1x16x64xf32>
    %243 = vector.shape_cast %242 : vector<1x16x64xf32> to vector<16x64xf32>
    %cst_62 = arith.constant dense<0.000000e+00> : vector<18x64xf32>
    %244 = tpu.matmul %241, %243, %cst_62 {dimension_numbers = #tpu.dot_dimension_numbers<[1], [0], [0], [1], [0, 0, 1, 1], [], []>} : vector<18x16xf32>, vector<16x64xf32>, vector<18x64xf32> -> vector<18x64xf32>
    %245 = arith.addf %236, %244 : vector<18x64xf32>
    %246 = vector.extract_strided_slice %227 {offsets = [0, 0, 2, 0], sizes = [2, 3, 1, 16], strides = [1, 1, 1, 1]} : vector<2x3x10x16xf32> to vector<2x3x1x16xf32>
    %247 = vector.extract_strided_slice %227 {offsets = [0, 0, 4, 0], sizes = [2, 3, 1, 16], strides = [1, 1, 1, 1]} : vector<2x3x10x16xf32> to vector<2x3x1x16xf32>
    %248 = vector.extract_strided_slice %227 {offsets = [0, 0, 6, 0], sizes = [2, 3, 1, 16], strides = [1, 1, 1, 1]} : vector<2x3x10x16xf32> to vector<2x3x1x16xf32>
    %249 = tpu.concatenate %246, %247, %248 in 2 : vector<2x3x1x16xf32>, vector<2x3x1x16xf32>, vector<2x3x1x16xf32> -> vector<2x3x3x16xf32>
    %250 = vector.shape_cast %249 : vector<2x3x3x16xf32> to vector<18x16xf32>
    %c17 = arith.constant 17 : index
    %c0_63 = arith.constant 0 : index
    %c0_64 = arith.constant 0 : index
    %251 = vector.load %arg5[%c17, %c0_63, %c0_64] : memref<25x16x64xf32, #tpu.memory_space<vmem>>, vector<1x16x64xf32>
    %252 = vector.shape_cast %251 : vector<1x16x64xf32> to vector<16x64xf32>
    %cst_65 = arith.constant dense<0.000000e+00> : vector<18x64xf32>
    %253 = tpu.matmul %250, %252, %cst_65 {dimension_numbers = #tpu.dot_dimension_numbers<[1], [0], [0], [1], [0, 0, 1, 1], [], []>} : vector<18x16xf32>, vector<16x64xf32>, vector<18x64xf32> -> vector<18x64xf32>
    %254 = arith.addf %245, %253 : vector<18x64xf32>
    %255 = vector.extract_strided_slice %227 {offsets = [0, 0, 3, 0], sizes = [2, 3, 1, 16], strides = [1, 1, 1, 1]} : vector<2x3x10x16xf32> to vector<2x3x1x16xf32>
    %256 = vector.extract_strided_slice %227 {offsets = [0, 0, 5, 0], sizes = [2, 3, 1, 16], strides = [1, 1, 1, 1]} : vector<2x3x10x16xf32> to vector<2x3x1x16xf32>
    %257 = vector.extract_strided_slice %227 {offsets = [0, 0, 7, 0], sizes = [2, 3, 1, 16], strides = [1, 1, 1, 1]} : vector<2x3x10x16xf32> to vector<2x3x1x16xf32>
    %258 = tpu.concatenate %255, %256, %257 in 2 : vector<2x3x1x16xf32>, vector<2x3x1x16xf32>, vector<2x3x1x16xf32> -> vector<2x3x3x16xf32>
    %259 = vector.shape_cast %258 : vector<2x3x3x16xf32> to vector<18x16xf32>
    %c18 = arith.constant 18 : index
    %c0_66 = arith.constant 0 : index
    %c0_67 = arith.constant 0 : index
    %260 = vector.load %arg5[%c18, %c0_66, %c0_67] : memref<25x16x64xf32, #tpu.memory_space<vmem>>, vector<1x16x64xf32>
    %261 = vector.shape_cast %260 : vector<1x16x64xf32> to vector<16x64xf32>
    %cst_68 = arith.constant dense<0.000000e+00> : vector<18x64xf32>
    %262 = tpu.matmul %259, %261, %cst_68 {dimension_numbers = #tpu.dot_dimension_numbers<[1], [0], [0], [1], [0, 0, 1, 1], [], []>} : vector<18x16xf32>, vector<16x64xf32>, vector<18x64xf32> -> vector<18x64xf32>
    %263 = arith.addf %254, %262 : vector<18x64xf32>
    %264 = vector.extract_strided_slice %227 {offsets = [0, 0, 4, 0], sizes = [2, 3, 1, 16], strides = [1, 1, 1, 1]} : vector<2x3x10x16xf32> to vector<2x3x1x16xf32>
    %265 = vector.extract_strided_slice %227 {offsets = [0, 0, 6, 0], sizes = [2, 3, 1, 16], strides = [1, 1, 1, 1]} : vector<2x3x10x16xf32> to vector<2x3x1x16xf32>
    %266 = vector.extract_strided_slice %227 {offsets = [0, 0, 8, 0], sizes = [2, 3, 1, 16], strides = [1, 1, 1, 1]} : vector<2x3x10x16xf32> to vector<2x3x1x16xf32>
    %267 = tpu.concatenate %264, %265, %266 in 2 : vector<2x3x1x16xf32>, vector<2x3x1x16xf32>, vector<2x3x1x16xf32> -> vector<2x3x3x16xf32>
    %268 = vector.shape_cast %267 : vector<2x3x3x16xf32> to vector<18x16xf32>
    %c19 = arith.constant 19 : index
    %c0_69 = arith.constant 0 : index
    %c0_70 = arith.constant 0 : index
    %269 = vector.load %arg5[%c19, %c0_69, %c0_70] : memref<25x16x64xf32, #tpu.memory_space<vmem>>, vector<1x16x64xf32>
    %270 = vector.shape_cast %269 : vector<1x16x64xf32> to vector<16x64xf32>
    %cst_71 = arith.constant dense<0.000000e+00> : vector<18x64xf32>
    %271 = tpu.matmul %268, %270, %cst_71 {dimension_numbers = #tpu.dot_dimension_numbers<[1], [0], [0], [1], [0, 0, 1, 1], [], []>} : vector<18x16xf32>, vector<16x64xf32>, vector<18x64xf32> -> vector<18x64xf32>
    %272 = arith.addf %263, %271 : vector<18x64xf32>
    %273 = vector.extract_strided_slice %75 {offsets = [0, 4, 0, 0], sizes = [2, 1, 10, 16], strides = [1, 1, 1, 1]} : vector<2x10x10x16xf32> to vector<2x1x10x16xf32>
    %274 = vector.extract_strided_slice %75 {offsets = [0, 6, 0, 0], sizes = [2, 1, 10, 16], strides = [1, 1, 1, 1]} : vector<2x10x10x16xf32> to vector<2x1x10x16xf32>
    %275 = vector.extract_strided_slice %75 {offsets = [0, 8, 0, 0], sizes = [2, 1, 10, 16], strides = [1, 1, 1, 1]} : vector<2x10x10x16xf32> to vector<2x1x10x16xf32>
    %276 = tpu.concatenate %273, %274, %275 in 1 : vector<2x1x10x16xf32>, vector<2x1x10x16xf32>, vector<2x1x10x16xf32> -> vector<2x3x10x16xf32>
    %277 = vector.extract_strided_slice %276 {offsets = [0, 0, 0, 0], sizes = [2, 3, 1, 16], strides = [1, 1, 1, 1]} : vector<2x3x10x16xf32> to vector<2x3x1x16xf32>
    %278 = vector.extract_strided_slice %276 {offsets = [0, 0, 2, 0], sizes = [2, 3, 1, 16], strides = [1, 1, 1, 1]} : vector<2x3x10x16xf32> to vector<2x3x1x16xf32>
    %279 = vector.extract_strided_slice %276 {offsets = [0, 0, 4, 0], sizes = [2, 3, 1, 16], strides = [1, 1, 1, 1]} : vector<2x3x10x16xf32> to vector<2x3x1x16xf32>
    %280 = tpu.concatenate %277, %278, %279 in 2 : vector<2x3x1x16xf32>, vector<2x3x1x16xf32>, vector<2x3x1x16xf32> -> vector<2x3x3x16xf32>
    %281 = vector.shape_cast %280 : vector<2x3x3x16xf32> to vector<18x16xf32>
    %c20 = arith.constant 20 : index
    %c0_72 = arith.constant 0 : index
    %c0_73 = arith.constant 0 : index
    %282 = vector.load %arg5[%c20, %c0_72, %c0_73] : memref<25x16x64xf32, #tpu.memory_space<vmem>>, vector<1x16x64xf32>
    %283 = vector.shape_cast %282 : vector<1x16x64xf32> to vector<16x64xf32>
    %cst_74 = arith.constant dense<0.000000e+00> : vector<18x64xf32>
    %284 = tpu.matmul %281, %283, %cst_74 {dimension_numbers = #tpu.dot_dimension_numbers<[1], [0], [0], [1], [0, 0, 1, 1], [], []>} : vector<18x16xf32>, vector<16x64xf32>, vector<18x64xf32> -> vector<18x64xf32>
    %285 = arith.addf %272, %284 : vector<18x64xf32>
    %286 = vector.extract_strided_slice %276 {offsets = [0, 0, 1, 0], sizes = [2, 3, 1, 16], strides = [1, 1, 1, 1]} : vector<2x3x10x16xf32> to vector<2x3x1x16xf32>
    %287 = vector.extract_strided_slice %276 {offsets = [0, 0, 3, 0], sizes = [2, 3, 1, 16], strides = [1, 1, 1, 1]} : vector<2x3x10x16xf32> to vector<2x3x1x16xf32>
    %288 = vector.extract_strided_slice %276 {offsets = [0, 0, 5, 0], sizes = [2, 3, 1, 16], strides = [1, 1, 1, 1]} : vector<2x3x10x16xf32> to vector<2x3x1x16xf32>
    %289 = tpu.concatenate %286, %287, %288 in 2 : vector<2x3x1x16xf32>, vector<2x3x1x16xf32>, vector<2x3x1x16xf32> -> vector<2x3x3x16xf32>
    %290 = vector.shape_cast %289 : vector<2x3x3x16xf32> to vector<18x16xf32>
    %c21 = arith.constant 21 : index
    %c0_75 = arith.constant 0 : index
    %c0_76 = arith.constant 0 : index
    %291 = vector.load %arg5[%c21, %c0_75, %c0_76] : memref<25x16x64xf32, #tpu.memory_space<vmem>>, vector<1x16x64xf32>
    %292 = vector.shape_cast %291 : vector<1x16x64xf32> to vector<16x64xf32>
    %cst_77 = arith.constant dense<0.000000e+00> : vector<18x64xf32>
    %293 = tpu.matmul %290, %292, %cst_77 {dimension_numbers = #tpu.dot_dimension_numbers<[1], [0], [0], [1], [0, 0, 1, 1], [], []>} : vector<18x16xf32>, vector<16x64xf32>, vector<18x64xf32> -> vector<18x64xf32>
    %294 = arith.addf %285, %293 : vector<18x64xf32>
    %295 = vector.extract_strided_slice %276 {offsets = [0, 0, 2, 0], sizes = [2, 3, 1, 16], strides = [1, 1, 1, 1]} : vector<2x3x10x16xf32> to vector<2x3x1x16xf32>
    %296 = vector.extract_strided_slice %276 {offsets = [0, 0, 4, 0], sizes = [2, 3, 1, 16], strides = [1, 1, 1, 1]} : vector<2x3x10x16xf32> to vector<2x3x1x16xf32>
    %297 = vector.extract_strided_slice %276 {offsets = [0, 0, 6, 0], sizes = [2, 3, 1, 16], strides = [1, 1, 1, 1]} : vector<2x3x10x16xf32> to vector<2x3x1x16xf32>
    %298 = tpu.concatenate %295, %296, %297 in 2 : vector<2x3x1x16xf32>, vector<2x3x1x16xf32>, vector<2x3x1x16xf32> -> vector<2x3x3x16xf32>
    %299 = vector.shape_cast %298 : vector<2x3x3x16xf32> to vector<18x16xf32>
    %c22 = arith.constant 22 : index
    %c0_78 = arith.constant 0 : index
    %c0_79 = arith.constant 0 : index
    %300 = vector.load %arg5[%c22, %c0_78, %c0_79] : memref<25x16x64xf32, #tpu.memory_space<vmem>>, vector<1x16x64xf32>
    %301 = vector.shape_cast %300 : vector<1x16x64xf32> to vector<16x64xf32>
    %cst_80 = arith.constant dense<0.000000e+00> : vector<18x64xf32>
    %302 = tpu.matmul %299, %301, %cst_80 {dimension_numbers = #tpu.dot_dimension_numbers<[1], [0], [0], [1], [0, 0, 1, 1], [], []>} : vector<18x16xf32>, vector<16x64xf32>, vector<18x64xf32> -> vector<18x64xf32>
    %303 = arith.addf %294, %302 : vector<18x64xf32>
    %304 = vector.extract_strided_slice %276 {offsets = [0, 0, 3, 0], sizes = [2, 3, 1, 16], strides = [1, 1, 1, 1]} : vector<2x3x10x16xf32> to vector<2x3x1x16xf32>
    %305 = vector.extract_strided_slice %276 {offsets = [0, 0, 5, 0], sizes = [2, 3, 1, 16], strides = [1, 1, 1, 1]} : vector<2x3x10x16xf32> to vector<2x3x1x16xf32>
    %306 = vector.extract_strided_slice %276 {offsets = [0, 0, 7, 0], sizes = [2, 3, 1, 16], strides = [1, 1, 1, 1]} : vector<2x3x10x16xf32> to vector<2x3x1x16xf32>
    %307 = tpu.concatenate %304, %305, %306 in 2 : vector<2x3x1x16xf32>, vector<2x3x1x16xf32>, vector<2x3x1x16xf32> -> vector<2x3x3x16xf32>
    %308 = vector.shape_cast %307 : vector<2x3x3x16xf32> to vector<18x16xf32>
    %c23 = arith.constant 23 : index
    %c0_81 = arith.constant 0 : index
    %c0_82 = arith.constant 0 : index
    %309 = vector.load %arg5[%c23, %c0_81, %c0_82] : memref<25x16x64xf32, #tpu.memory_space<vmem>>, vector<1x16x64xf32>
    %310 = vector.shape_cast %309 : vector<1x16x64xf32> to vector<16x64xf32>
    %cst_83 = arith.constant dense<0.000000e+00> : vector<18x64xf32>
    %311 = tpu.matmul %308, %310, %cst_83 {dimension_numbers = #tpu.dot_dimension_numbers<[1], [0], [0], [1], [0, 0, 1, 1], [], []>} : vector<18x16xf32>, vector<16x64xf32>, vector<18x64xf32> -> vector<18x64xf32>
    %312 = arith.addf %303, %311 : vector<18x64xf32>
    %313 = vector.extract_strided_slice %276 {offsets = [0, 0, 4, 0], sizes = [2, 3, 1, 16], strides = [1, 1, 1, 1]} : vector<2x3x10x16xf32> to vector<2x3x1x16xf32>
    %314 = vector.extract_strided_slice %276 {offsets = [0, 0, 6, 0], sizes = [2, 3, 1, 16], strides = [1, 1, 1, 1]} : vector<2x3x10x16xf32> to vector<2x3x1x16xf32>
    %315 = vector.extract_strided_slice %276 {offsets = [0, 0, 8, 0], sizes = [2, 3, 1, 16], strides = [1, 1, 1, 1]} : vector<2x3x10x16xf32> to vector<2x3x1x16xf32>
    %316 = tpu.concatenate %313, %314, %315 in 2 : vector<2x3x1x16xf32>, vector<2x3x1x16xf32>, vector<2x3x1x16xf32> -> vector<2x3x3x16xf32>
    %317 = vector.shape_cast %316 : vector<2x3x3x16xf32> to vector<18x16xf32>
    %c24 = arith.constant 24 : index
    %c0_84 = arith.constant 0 : index
    %c0_85 = arith.constant 0 : index
    %318 = vector.load %arg5[%c24, %c0_84, %c0_85] : memref<25x16x64xf32, #tpu.memory_space<vmem>>, vector<1x16x64xf32>
    %319 = vector.shape_cast %318 : vector<1x16x64xf32> to vector<16x64xf32>
    %cst_86 = arith.constant dense<0.000000e+00> : vector<18x64xf32>
    %320 = tpu.matmul %317, %319, %cst_86 {dimension_numbers = #tpu.dot_dimension_numbers<[1], [0], [0], [1], [0, 0, 1, 1], [], []>} : vector<18x16xf32>, vector<16x64xf32>, vector<18x64xf32> -> vector<18x64xf32>
    %321 = arith.addf %312, %320 : vector<18x64xf32>
    %322 = vector.shape_cast %321 : vector<18x64xf32> to vector<2x9x64xf32>
    %cst_87 = arith.constant dense<0xFF800000> : vector<2x64xf32>
    %323 = vector.multi_reduction <maximumf>, %322, %cst_87 [1] : vector<2x9x64xf32> to vector<2x64xf32>
    %c0_88 = arith.constant 0 : index
    %c0_89 = arith.constant 0 : index
    %324 = vector.load %arg6[%c0_88, %c0_89] : memref<1x64xf32, #tpu.memory_space<vmem>>, vector<1x64xf32>
    %325 = vector.broadcast %324 : vector<1x64xf32> to vector<2x64xf32>
    %326 = arith.addf %323, %325 : vector<2x64xf32>
    %cst_90 = arith.constant 0.000000e+00 : f32
    %327 = vector.broadcast %cst_90 : f32 to vector<2x64xf32>
    %328 = arith.maximumf %326, %327 : vector<2x64xf32>
    %c0_91 = arith.constant 0 : index
    %c0_92 = arith.constant 0 : index
    %329 = vector.load %arg2[%c0_91, %c0_92] : memref<2x128xf32, #tpu.memory_space<vmem>>, vector<2x128xf32>
    %330 = tpu.concatenate %328, %329 in 1 : vector<2x64xf32>, vector<2x128xf32> -> vector<2x192xf32>
    %c0_93 = arith.constant 0 : index
    %c0_94 = arith.constant 0 : index
    %331 = vector.load %arg7[%c0_93, %c0_94] : memref<192x256xf32, #tpu.memory_space<vmem>>, vector<192x256xf32>
    %cst_95 = arith.constant dense<0.000000e+00> : vector<2x256xf32>
    %332 = tpu.matmul %330, %331, %cst_95 {dimension_numbers = #tpu.dot_dimension_numbers<[1], [0], [0], [1], [0, 0, 1, 1], [], []>} : vector<2x192xf32>, vector<192x256xf32>, vector<2x256xf32> -> vector<2x256xf32>
    %c0_96 = arith.constant 0 : index
    %c0_97 = arith.constant 0 : index
    %333 = vector.load %arg8[%c0_96, %c0_97] : memref<1x256xf32, #tpu.memory_space<vmem>>, vector<1x256xf32>
    %334 = vector.broadcast %333 : vector<1x256xf32> to vector<2x256xf32>
    %335 = arith.addf %332, %334 : vector<2x256xf32>
    %cst_98 = arith.constant 0.000000e+00 : f32
    %336 = vector.broadcast %cst_98 : f32 to vector<2x256xf32>
    %337 = arith.maximumf %335, %336 : vector<2x256xf32>
    %c0_99 = arith.constant 0 : index
    %c0_100 = arith.constant 0 : index
    %338 = vector.load %arg9[%c0_99, %c0_100] : memref<256x256xf32, #tpu.memory_space<vmem>>, vector<256x256xf32>
    %cst_101 = arith.constant dense<0.000000e+00> : vector<2x256xf32>
    %339 = tpu.matmul %337, %338, %cst_101 {dimension_numbers = #tpu.dot_dimension_numbers<[1], [0], [0], [1], [0, 0, 1, 1], [], []>} : vector<2x256xf32>, vector<256x256xf32>, vector<2x256xf32> -> vector<2x256xf32>
    %c0_102 = arith.constant 0 : index
    %c0_103 = arith.constant 0 : index
    %340 = vector.load %arg10[%c0_102, %c0_103] : memref<1x256xf32, #tpu.memory_space<vmem>>, vector<1x256xf32>
    %341 = vector.broadcast %340 : vector<1x256xf32> to vector<2x256xf32>
    %342 = arith.addf %339, %341 : vector<2x256xf32>
    %cst_104 = arith.constant 0.000000e+00 : f32
    %343 = vector.broadcast %cst_104 : f32 to vector<2x256xf32>
    %344 = arith.maximumf %342, %343 : vector<2x256xf32>
    %c0_105 = arith.constant 0 : index
    %c0_106 = arith.constant 0 : index
    %345 = vector.load %arg11[%c0_105, %c0_106] : memref<256x128xf32, #tpu.memory_space<vmem>>, vector<256x128xf32>
    %cst_107 = arith.constant dense<0.000000e+00> : vector<2x128xf32>
    %346 = tpu.matmul %344, %345, %cst_107 {dimension_numbers = #tpu.dot_dimension_numbers<[1], [0], [0], [1], [0, 0, 1, 1], [], []>} : vector<2x256xf32>, vector<256x128xf32>, vector<2x128xf32> -> vector<2x128xf32>
    %c0_108 = arith.constant 0 : index
    %c0_109 = arith.constant 0 : index
    %347 = vector.load %arg12[%c0_108, %c0_109] : memref<1x128xf32, #tpu.memory_space<vmem>>, vector<1x128xf32>
    %348 = vector.broadcast %347 : vector<1x128xf32> to vector<2x128xf32>
    %349 = arith.addf %346, %348 : vector<2x128xf32>
    %cst_110 = arith.constant 0.000000e+00 : f32
    %350 = vector.broadcast %cst_110 : f32 to vector<2x128xf32>
    %351 = arith.maximumf %349, %350 : vector<2x128xf32>
    %c0_111 = arith.constant 0 : index
    %c0_112 = arith.constant 0 : index
    %352 = vector.load %arg13[%c0_111, %c0_112] : memref<128x128xf32, #tpu.memory_space<vmem>>, vector<128x128xf32>
    %cst_113 = arith.constant dense<0.000000e+00> : vector<2x128xf32>
    %353 = tpu.matmul %351, %352, %cst_113 {dimension_numbers = #tpu.dot_dimension_numbers<[1], [0], [0], [1], [0, 0, 1, 1], [], []>} : vector<2x128xf32>, vector<128x128xf32>, vector<2x128xf32> -> vector<2x128xf32>
    %c0_114 = arith.constant 0 : index
    %c0_115 = arith.constant 0 : index
    %354 = vector.load %arg14[%c0_114, %c0_115] : memref<1x128xf32, #tpu.memory_space<vmem>>, vector<1x128xf32>
    %355 = vector.broadcast %354 : vector<1x128xf32> to vector<2x128xf32>
    %356 = arith.addf %353, %355 : vector<2x128xf32>
    %c0_116 = arith.constant 0 : index
    %c0_117 = arith.constant 0 : index
    %357 = vector.load %arg15[%c0_116, %c0_117] : memref<2x128xf32, #tpu.memory_space<vmem>>, vector<2x128xf32>
    tpu.vector_store %arg15[%c0_116, %c0_117], %356 {strides = array<i32>} : memref<2x128xf32, #tpu.memory_space<vmem>>, vector<2x128xf32>,
    return
  }
  func.func @transform_0(%arg0: i32) -> (i32, i32, i32, i32) {
    %c0_i32 = arith.constant 0 : i32
    %c0_i32_0 = arith.constant 0 : i32
    %c0_i32_1 = arith.constant 0 : i32
    %c0_i32_2 = arith.constant 0 : i32
    return %arg0, %c0_i32, %c0_i32_0, %c0_i32_1 : i32, i32, i32, i32
  }
  func.func @transform_1(%arg0: i32) -> (i32, i32) {
    %c0_i32 = arith.constant 0 : i32
    %c0_i32_0 = arith.constant 0 : i32
    return %arg0, %c0_i32 : i32, i32
  }
  func.func @transform_2(%arg0: i32) -> (i32, i32) {
    %c0_i32 = arith.constant 0 : i32
    %c0_i32_0 = arith.constant 0 : i32
    %c0_i32_1 = arith.constant 0 : i32
    return %c0_i32, %c0_i32_0 : i32, i32
  }
  func.func @transform_3(%arg0: i32) -> (i32, i32) {
    %c0_i32 = arith.constant 0 : i32
    %c0_i32_0 = arith.constant 0 : i32
    %c0_i32_1 = arith.constant 0 : i32
    return %c0_i32, %c0_i32_0 : i32, i32
  }
  func.func @transform_4(%arg0: i32) -> (i32, i32, i32) {
    %c0_i32 = arith.constant 0 : i32
    %c0_i32_0 = arith.constant 0 : i32
    %c0_i32_1 = arith.constant 0 : i32
    %c0_i32_2 = arith.constant 0 : i32
    return %c0_i32, %c0_i32_0, %c0_i32_1 : i32, i32, i32
  }
  func.func @transform_5(%arg0: i32) -> (i32, i32) {
    %c0_i32 = arith.constant 0 : i32
    %c0_i32_0 = arith.constant 0 : i32
    %c0_i32_1 = arith.constant 0 : i32
    return %c0_i32, %c0_i32_0 : i32, i32
  }
  func.func @transform_6(%arg0: i32) -> (i32, i32) {
    %c0_i32 = arith.constant 0 : i32
    %c0_i32_0 = arith.constant 0 : i32
    %c0_i32_1 = arith.constant 0 : i32
    return %c0_i32, %c0_i32_0 : i32, i32
  }
  func.func @transform_7(%arg0: i32) -> (i32, i32) {
    %c0_i32 = arith.constant 0 : i32
    %c0_i32_0 = arith.constant 0 : i32
    %c0_i32_1 = arith.constant 0 : i32
    return %c0_i32, %c0_i32_0 : i32, i32
  }
  func.func @transform_8(%arg0: i32) -> (i32, i32) {
    %c0_i32 = arith.constant 0 : i32
    %c0_i32_0 = arith.constant 0 : i32
    %c0_i32_1 = arith.constant 0 : i32
    return %c0_i32, %c0_i32_0 : i32, i32
  }
  func.func @transform_9(%arg0: i32) -> (i32, i32) {
    %c0_i32 = arith.constant 0 : i32
    %c0_i32_0 = arith.constant 0 : i32
    %c0_i32_1 = arith.constant 0 : i32
    return %c0_i32, %c0_i32_0 : i32, i32
  }
  func.func @transform_10(%arg0: i32) -> (i32, i32) {
    %c0_i32 = arith.constant 0 : i32
    %c0_i32_0 = arith.constant 0 : i32
    %c0_i32_1 = arith.constant 0 : i32
    return %c0_i32, %c0_i32_0 : i32, i32
  }
  func.func @transform_11(%arg0: i32) -> (i32, i32) {
    %c0_i32 = arith.constant 0 : i32
    %c0_i32_0 = arith.constant 0 : i32
    %c0_i32_1 = arith.constant 0 : i32
    return %c0_i32, %c0_i32_0 : i32, i32
  }
  func.func @transform_12(%arg0: i32) -> (i32, i32) {
    %c0_i32 = arith.constant 0 : i32
    %c0_i32_0 = arith.constant 0 : i32
    %c0_i32_1 = arith.constant 0 : i32
    return %c0_i32, %c0_i32_0 : i32, i32
  }
  func.func @transform_13(%arg0: i32) -> (i32, i32) {
    %c0_i32 = arith.constant 0 : i32
    %c0_i32_0 = arith.constant 0 : i32
    %c0_i32_1 = arith.constant 0 : i32
    return %c0_i32, %c0_i32_0 : i32, i32
  }
  func.func @transform_14(%arg0: i32) -> (i32, i32) {
    %c0_i32 = arith.constant 0 : i32
    %c0_i32_0 = arith.constant 0 : i32
    return %arg0, %c0_i32 : i32, i32
  }
}

</mosaic_0001>

<bundles_post_ra>
// kernel: squeeze.1
= control target key start
LH: loop header
LB: loop body
LE: loop exit
PB: predicated region body
PF: predicated region fallthrough
CT: control target
= control target key end

     0   :  { %vm5_vm0 = vcmask 1041409   ;;  %vm64_vm1 = vcmask 72704   ;;  %vm21_vm2 = vcmask 23552   ;;  %vm86_vm3 = vcmask 97280   ;;  %s429_s24 = smov 119   ;;  %s430_s6 = smov 125   ;;  %s682_s0 = inlined_call_operand.vmem [shape: f32[2,25,25], index: 0, kind: input, shape index: {}]   ;;  %s683_s1 = inlined_call_operand.vmem [shape: f32[2,625], index: 1, kind: output, shape index: {}]  }
   0x1   :  { %v353_v0 = vld [vmem:[%s682_s0 + $0xf] sm:$0x1]   ;;  %v345_v6 = vld [vmem:[%s682_s0 + $0x5] sm:$0x1]   ;;  %v357_v12 = vld [vmem:[%s682_s0 + $0x14] sm:$0x1]  }
   0x2   :  { %v354_v1 = vld [vmem:[%s682_s0 + $0x2e] sm:$0x2]   ;;  %v346_v7 = vld [vmem:[%s682_s0 + $0x24] sm:$0x2]   ;;  %v358_v14 = vld [vmem:[%s682_s0 + $0x33] sm:$0x2]  }
   0x3   :  { %v57_v2 = vsel %vm5_vm0, %v354_v1, %v353_v0  ;;  %v355_v3 = vld [vmem:[%s682_s0 + $0xf] sm:$0x1]   ;;  %v347_v8 = vld [vmem:[%s682_s0 + $0x5] sm:$0x1]   ;;  %v14_v10 = vsel %vm5_vm0, %v346_v7, %v345_v6  ;;  %v359_v15 = vld [vmem:[%s682_s0 + $0x14] sm:$0x1]   ;;  %v79_v18 = vsel %vm5_vm0, %v358_v14, %v357_v12 }
   0x4   :  { %v356_v4 = vld [vmem:[%s682_s0 + $0x2e] sm:$0x2]   ;;  %v348_v11 = vld [vmem:[%s682_s0 + $0x24] sm:$0x2]   ;;  %v360_v16 = vld [vmem:[%s682_s0 + $0x33] sm:$0x2]  }
   0x5   :  { %v63_v5 = vsel %vm5_vm0, %v356_v4, %v355_v3  ;;  %v20_v13 = vsel %vm5_vm0, %v348_v11, %v347_v8  ;;  %v85_v19 = vsel %vm5_vm0, %v360_v16, %v359_v15  ;;  %v349_v20 = vld [vmem:[%s682_s0 + $0xa] sm:$0x1]   ;;  %vm42_vm4 = vcmask 48128   ;;  %v363_v27 = vld [vmem:[%s682_s0 + $0x9] sm:$0x1]   ;;  %s431_s15 = smov 116  }
   0x6   :  { %v65_v9 = vsel %vm64_vm1, %v63_v5, %v57_v2  ;;  %v22_v17 = vsel %vm21_vm2, %v20_v13, %v14_v10  ;;  %v350_v21 = vld [vmem:[%s682_s0 + $0x29] sm:$0x2]   ;;  %v87_v22 = vsel %vm86_vm3, %v85_v19, %v79_v18  ;;  %v364_v28 = vld [vmem:[%s682_s0 + $0x28] sm:$0x2]   ;;  %v361_v30 = vld [vmem:[%s682_s0 + $0x4] sm:$0x1]  }
   0x7   :  { %66 = vrot.lane.b32.xlu1 %v65_v9, %s429_s24  ;;  %23 = vrot.lane.b32.xlu0 %v22_v17, %s430_s6  ;;  %v35_v23 = vsel %vm5_vm0, %v350_v21, %v349_v20  ;;  %v351_v24 = vld [vmem:[%s682_s0 + $0xa] sm:$0x1]   ;;  %v362_v31 = vld [vmem:[%s682_s0 + $0x23] sm:$0x2]   ;;  %v111_v32 = vsel %vm5_vm0, %v364_v28, %v363_v27  ;;  %s432_s20 = smov 122   ;;  %s433_s25 = smov 97  }
   0x8   :  { %v352_v25 = vld [vmem:[%s682_s0 + $0x29] sm:$0x2]   ;;  %v367_v33 = vld [vmem:[%s682_s0 + $0x13] sm:$0x1]   ;;  %v101_v35 = vsel %vm5_vm0, %v362_v31, %v361_v30  ;;  %v365_v36 = vld [vmem:[%s682_s0 + $0xe] sm:$0x1]  }
   0x9   :  { %v41_v26 = vsel %vm5_vm0, %v352_v25, %v351_v24  ;;  %v368_v34 = vld [vmem:[%s682_s0 + $0x32] sm:$0x2]   ;;  %v366_v37 = vld [vmem:[%s682_s0 + $0x2d] sm:$0x2]   ;;  %s434_s30 = smov 100   ;;  %s435_s6 = smov 91  }
   0xa   :  { %v43_v29 = vsel %vm42_vm4, %v41_v26, %v35_v23  ;;  %v133_v38 = vsel %vm5_vm0, %v368_v34, %v367_v33  ;;  %v371_v39 = vld [vmem:[%s682_s0 + $0x3] sm:$0x1]   ;;  %v122_v41 = vsel %vm5_vm0, %v366_v37, %v365_v36  ;;  %v369_v42 = vld [vmem:[%s682_s0 + $0x18] sm:$0x1]   ;;  %s436_s11 = smov 94   ;;  %s437_s16 = smov 75  }
   0xb   :  { %88 = vrot.lane.b32.xlu1 %v87_v22, %s431_s15  ;;  %44 = vrot.lane.b32.xlu0 %v43_v29, %s432_s20  ;;  %v372_v40 = vld [vmem:[%s682_s0 + $0x22] sm:$0x2]   ;;  %v370_v43 = vld [vmem:[%s682_s0 + $0x37] sm:$0x2]   ;;  %s438_s21 = smov 88   ;;  %vm7_vm5 = vcmask 203776  }
   0xc   :  { %v155_v44 = vsel %vm5_vm0, %v372_v40, %v371_v39  ;;  %v375_v45 = vld [vmem:[%s682_s0 + $0xd] sm:$0x1]   ;;  %v144_v47 = vsel %vm5_vm0, %v370_v43, %v369_v42  ;;  %v373_v48 = vld [vmem:[%s682_s0 + $0x8] sm:$0x1]   ;;  %v379_v51 = vld [vmem:[%s682_s0 + $0x17] sm:$0x1]  }
   0xd   :  { %v376_v46 = vld [vmem:[%s682_s0 + $0x2c] sm:$0x2]   ;;  %v374_v49 = vld [vmem:[%s682_s0 + $0x27] sm:$0x2]   ;;  %v380_v52 = vld [vmem:[%s682_s0 + $0x36] sm:$0x2]  }
   0xe   :  { %v176_v50 = vsel %vm5_vm0, %v376_v46, %v375_v45  ;;  %v165_v53 = vsel %vm5_vm0, %v374_v49, %v373_v48  ;;  %v377_v54 = vld [vmem:[%s682_s0 + $0x12] sm:$0x1]   ;;  %s439_s28 = smov 69   ;;  %v2_v56 = vld [vmem:[%s682_s0] sm:$0x1]   ;;  %v198_v58 = vsel %vm5_vm0, %v380_v52, %v379_v51  ;;  %s444_s26 = smov 50  }
   0xf   :  { %112 = vrot.lane.b32.xlu1 %v111_v32, %s433_s25  ;;  %102 = vrot.lane.b32.xlu0 %v101_v35, %s434_s30  ;;  %v378_v55 = vld [vmem:[%s682_s0 + $0x31] sm:$0x2]   ;;  %v344_v57 = vld [vmem:[%s682_s0 + $0x1f] sm:$0x2]   ;;  %s445_s2 = smov 41   ;;  %s446_s7 = smov 44  }
  0x10   :  { %v6_v59 = vsel %vm5_vm0, %v344_v57, %v2_v56  ;;  %v383_v60 = vld [vmem:[%s682_s0 + $0x7] sm:$0x1]   ;;  %v187_v62 = vsel %vm5_vm0, %v378_v55, %v377_v54  ;;  %v381_v63 = vld [vmem:[%s682_s0 + $0x2] sm:$0x1]   ;;  %v387_v2 = vld [vmem:[%s682_s0 + $0x11] sm:$0x1]  }
  0x11   :  { %v384_v61 = vld [vmem:[%s682_s0 + $0x26] sm:$0x2]   ;;  %8 = vst.msk [vmem:[#allocation0] sm:$0x3] %vm7_vm5, %v6_v59   ;;  %v382_v0 = vld [vmem:[%s682_s0 + $0x21] sm:$0x2]  }
  0x12   :  { %v219_v1 = vsel %vm5_vm0, %v384_v61, %v383_v60  ;;  %v388_v3 = vld [vmem:[%s682_s0 + $0x30] sm:$0x2]   ;;  %v209_v4 = vsel %vm5_vm0, %v382_v0, %v381_v63  ;;  %v385_v5 = vld [vmem:[%s682_s0 + $0xc] sm:$0x1]   ;;  %v391_v8 = vld [vmem:[%s682_s0 + $0x1] sm:$0x1]  }
  0x13   :  { %134 = vrot.lane.b32.xlu1 %v133_v38, %s435_s6  ;;  %123 = vrot.lane.b32.xlu0 %v122_v41, %s436_s11  ;;  %s440_s6 = smov 72   ;;  %s441_s11 = smov 63   ;;  %v386_v6 = vld [vmem:[%s682_s0 + $0x2b] sm:$0x2]   ;;  %v241_v7 = vsel %vm5_vm0, %v388_v3, %v387_v2  ;;  %v392_v9 = vld [vmem:[%s682_s0 + $0x20] sm:$0x2]  }
  0x14   :  { %v230_v10 = vsel %vm5_vm0, %v386_v6, %v385_v5  ;;  %v389_v11 = vld [vmem:[%s682_s0 + $0x16] sm:$0x1]   ;;  %v263_v13 = vsel %vm5_vm0, %v392_v9, %v391_v8  ;;  %v395_v14 = vld [vmem:[%s682_s0 + $0xb] sm:$0x1]   ;;  %s447_s12 = smov 25   ;;  %s448_s17 = smov 38  }
  0x15   :  { %v390_v12 = vld [vmem:[%s682_s0 + $0x35] sm:$0x2]   ;;  %v396_v15 = vld [vmem:[%s682_s0 + $0x2a] sm:$0x2]   ;;  %v393_v17 = vld [vmem:[%s682_s0 + $0x6] sm:$0x1]  }
  0x16   :  { %v252_v16 = vsel %vm5_vm0, %v390_v12, %v389_v11  ;;  %v394_v18 = vld [vmem:[%s682_s0 + $0x25] sm:$0x2]   ;;  %v284_v19 = vsel %vm5_vm0, %v396_v15, %v395_v14  ;;  %v399_v20 = vld [vmem:[%s682_s0 + $0x15] sm:$0x1]   ;;  %s449_s22 = smov 19   ;;  %s451_s27 = smov 13  }
  0x17   :  { %156 = vrot.lane.b32.xlu1 %v155_v44, %s437_s16  ;;  %145 = vrot.lane.b32.xlu0 %v144_v47, %s438_s21  ;;  %s442_s16 = smov 66   ;;  %s443_s21 = smov 47   ;;  %v400_v21 = vld [vmem:[%s682_s0 + $0x34] sm:$0x2]   ;;  %v273_v22 = vsel %vm5_vm0, %v394_v18, %v393_v17  ;;  %v397_v23 = vld [vmem:[%s682_s0 + $0x10] sm:$0x1]  }
  0x18   :  { %v398_v24 = vld [vmem:[%s682_s0 + $0x2f] sm:$0x2]   ;;  %v306_v25 = vsel %vm5_vm0, %v400_v21, %v399_v20  ;;  %s450_s0 = smov 22   ;;  %vm68_vm6 = vcmask 130048   ;;  %vm25_vm7 = vcmask 179200   ;;  %vm28_vm8 = vcmask 1048552  }
  0x19   :  { %v295_v26 = vsel %vm5_vm0, %v398_v24, %v397_v23  ;;  %vm90_vm9 = vcmask 105472   ;;  %vm93_vm10 = vcmask 1048480   ;;  %vm46_vm11 = vcmask 154624  }
  0x1a   :  { %vm49_vm12 = vcmask 1048528   ;;  %vm71_vm13 = vcmask 1048504   ;;  %vm114_vm14 = vcmask 999176   ;;  %vm104_vm15 = vcmask 1023776  }
  0x1b   :  { %177 = vrot.lane.b32.xlu1 %v176_v50, %s439_s28  ;;  %166 = vrot.lane.b32.xlu0 %v165_v53, %s440_s6  ;;  %s452_s28 = smov 16   ;;  %vm136_vm0 = vcmask 949976   ;;  %vm125_vm1 = vcmask 974576   ;;  %vm158_vm2 = vcmask 818776   ;;  %vm147_vm3 = vcmask 925376  }
  0x1c   :  { %vm179_vm4 = vcmask 769576   ;;  %vm168_vm5 = vcmask 794176  }
  0x1f   :  { %199 = vrot.lane.b32.xlu1 %v198_v58, %s441_s11  ;;  %188 = vrot.lane.b32.xlu0 %v187_v62, %s442_s16 }
  0x23   :  { %220 = vrot.lane.b32.xlu1 %v219_v1, %s443_s21  ;;  %210 = vrot.lane.b32.xlu0 %v209_v4, %s444_s26 }
  0x27   :  { %242 = vrot.lane.b32.xlu1 %v241_v7, %s445_s2  ;;  %231 = vrot.lane.b32.xlu0 %v230_v10, %s446_s7 }
  0x2b   :  { %264 = vrot.lane.b32.xlu1 %v263_v13, %s447_s12  ;;  %253 = vrot.lane.b32.xlu0 %v252_v16, %s448_s17 }
  0x2f   :  { %285 = vrot.lane.b32.xlu1 %v284_v19, %s449_s22  ;;  %274 = vrot.lane.b32.xlu0 %v273_v22, %s450_s0 }
  0x33   :  { %307 = vrot.lane.b32.xlu1 %v306_v25, %s451_s27  ;;  %296 = vrot.lane.b32.xlu0 %v295_v26, %s452_s28 }
  0x79   :  { %v67_v27 = vpop.permute.xlu1 %66   ;;  %v24_v28 = vpop.permute.xlu0 %23  }
  0x7a   :  { %70 = vst.msk [vmem:[#allocation0 + $0x18] sm:$0x3] %vm68_vm6, %v67_v27   ;;  %vm201_vm6 = vcmask 720376  }
  0x7b   :  { %27 = vst.msk [vmem:[#allocation0 + $0x8] sm:$0x3] %vm25_vm7, %v24_v28   ;;  %vm190_vm7 = vcmask 744976  }
  0x7c   :  { %29 = vst.msk [vmem:[#allocation0] sm:$0x3] %vm28_vm8, %v24_v28   ;;  %vm222_vm8 = vcmask 589176  }
  0x7d   :  { %v89_v29 = vpop.permute.xlu1 %88   ;;  %v45_v30 = vpop.permute.xlu0 %44  }
  0x7e   :  { %92 = vst.msk [vmem:[#allocation0 + $0x20] sm:$0x3] %vm90_vm9, %v89_v29   ;;  %vm212_vm9 = vcmask 613776  }
  0x7f   :  { %95 = vst.msk [vmem:[#allocation0 + $0x18] sm:$0x3] %vm93_vm10, %v89_v29   ;;  %vm244_vm10 = vcmask 539976  }
  0x80   :  { %48 = vst.msk [vmem:[#allocation0 + $0x10] sm:$0x3] %vm46_vm11, %v45_v30   ;;  %vm233_vm11 = vcmask 564576  }
  0x81   :  { %51 = vst.msk [vmem:[#allocation0 + $0x8] sm:$0x3] %vm49_vm12, %v45_v30   ;;  %v113_v31 = vpop.permute.xlu1 %112   ;;  %v103_v32 = vpop.permute.xlu0 %102   ;;  %vm266_vm12 = vcmask 408776  }
  0x82   :  { %73 = vst.msk [vmem:[#allocation0 + $0x10] sm:$0x3] %vm71_vm13, %v67_v27   ;;  %vm255_vm13 = vcmask 515376  }
  0x83   :  { %116 = vst.msk [vmem:[#allocation0 + $0x8] sm:$0x3] %vm114_vm14, %v113_v31   ;;  %vm287_vm14 = vcmask 359576  }
  0x84   :  { %105 = vst.msk [vmem:[#allocation0] sm:$0x3] %vm104_vm15, %v103_v32   ;;  %vm276_vm15 = vcmask 384176  }
  0x85   :  { %v135_v33 = vpop.permute.xlu1 %134   ;;  %v124_v34 = vpop.permute.xlu0 %123  }
  0x86   :  { %138 = vst.msk [vmem:[#allocation0 + $0x18] sm:$0x3] %vm136_vm0, %v135_v33   ;;  %vm309_vm0 = vcmask 310376  }
  0x87   :  { %127 = vst.msk [vmem:[#allocation0 + $0x10] sm:$0x3] %vm125_vm1, %v124_v34   ;;  %vm298_vm1 = vcmask 334976  }
  0x89   :  { %v157_v35 = vpop.permute.xlu1 %156   ;;  %v146_v36 = vpop.permute.xlu0 %145  }
  0x8a   :  { %159 = vst.msk [vmem:[#allocation0] sm:$0x3] %vm158_vm2, %v157_v35  }
  0x8b   :  { %149 = vst.msk [vmem:[#allocation0 + $0x20] sm:$0x3] %vm147_vm3, %v146_v36  }
  0x8d   :  { %v178_v37 = vpop.permute.xlu1 %177   ;;  %v167_v38 = vpop.permute.xlu0 %166  }
  0x8e   :  { %181 = vst.msk [vmem:[#allocation0 + $0x10] sm:$0x3] %vm179_vm4, %v178_v37  }
  0x8f   :  { %170 = vst.msk [vmem:[#allocation0 + $0x8] sm:$0x3] %vm168_vm5, %v167_v38  }
  0x91   :  { %v200_v39 = vpop.permute.xlu1 %199   ;;  %v189_v40 = vpop.permute.xlu0 %188  }
  0x92   :  { %203 = vst.msk [vmem:[#allocation0 + $0x20] sm:$0x3] %vm201_vm6, %v200_v39  }
  0x93   :  { %192 = vst.msk [vmem:[#allocation0 + $0x18] sm:$0x3] %vm190_vm7, %v189_v40  }
  0x95   :  { %v221_v41 = vpop.permute.xlu1 %220   ;;  %v211_v42 = vpop.permute.xlu0 %210  }
  0x96   :  { %224 = vst.msk [vmem:[#allocation0 + $0x8] sm:$0x3] %vm222_vm8, %v221_v41  }
  0x97   :  { %213 = vst.msk [vmem:[#allocation0] sm:$0x3] %vm212_vm9, %v211_v42  }
  0x99   :  { %v243_v43 = vpop.permute.xlu1 %242   ;;  %v232_v44 = vpop.permute.xlu0 %231  }
  0x9a   :  { %246 = vst.msk [vmem:[#allocation0 + $0x18] sm:$0x3] %vm244_vm10, %v243_v43  }
  0x9b   :  { %235 = vst.msk [vmem:[#allocation0 + $0x10] sm:$0x3] %vm233_vm11, %v232_v44  }
  0x9d   :  { %v265_v45 = vpop.permute.xlu1 %264   ;;  %v254_v46 = vpop.permute.xlu0 %253  }
  0x9e   :  { %267 = vst.msk [vmem:[#allocation0] sm:$0x3] %vm266_vm12, %v265_v45  }
  0x9f   :  { %257 = vst.msk [vmem:[#allocation0 + $0x20] sm:$0x3] %vm255_vm13, %v254_v46  }
  0xa1   :  { %v286_v47 = vpop.permute.xlu1 %285   ;;  %v275_v48 = vpop.permute.xlu0 %274  }
  0xa2   :  { %289 = vst.msk [vmem:[#allocation0 + $0x10] sm:$0x3] %vm287_vm14, %v286_v47  }
  0xa3   :  { %278 = vst.msk [vmem:[#allocation0 + $0x8] sm:$0x3] %vm276_vm15, %v275_v48  }
  0xa5   :  { %v315_v49 = vld [vmem:[#allocation0] sm:$0x3]  ;;  %v308_v50 = vpop.permute.xlu1 %307   ;;  %v297_v51 = vpop.permute.xlu0 %296  }
  0xa6   :  { %317 = vst [vmem:[%s683_s1] sm:$0x3] %v315_v49  ;;  %311 = vst.msk [vmem:[#allocation0 + $0x20] sm:$0x3] %vm309_vm0, %v308_v50  }
  0xa7   :  { %300 = vst.msk [vmem:[#allocation0 + $0x18] sm:$0x3] %vm298_vm1, %v297_v51  }
  0xa9   :  { %v324_v52 = vld [vmem:[#allocation0 + $0x10] sm:$0x3] }
  0xaa   :  { %402 = vst [vmem:[%s683_s1 + $0x4] sm:$0x3] %v324_v52  ;;  %v319_v53 = vld [vmem:[#allocation0 + $0x8] sm:$0x3] }
  0xab   :  { %401 = vst [vmem:[%s683_s1 + $0x2] sm:$0x3] %v319_v53 }
  0xad   :  { %v336_v54 = vld [vmem:[#allocation0 + $0x20] sm:$0x3] }
  0xae   :  { %404 = vst [vmem:[%s683_s1 + $0x8] sm:$0x3] %v336_v54  ;;  %v330_v55 = vld [vmem:[#allocation0 + $0x18] sm:$0x3] }
  0xaf   :  { %403 = vst [vmem:[%s683_s1 + $0x6] sm:$0x3] %v330_v55 }

// kernel: forward.1
= control target key start
LH: loop header
LB: loop body
LE: loop exit
PB: predicated region body
PF: predicated region fallthrough
CT: control target
= control target key end

     0   :  { %s13542_s0 = inlined_call_operand.vmem [shape: f32[2,13,16,128], index: 0, kind: input, shape index: {}]   ;;  %s13543_s1 = inlined_call_operand.vmem [shape: f32[2,128], index: 1, kind: input, shape index: {}]   ;;  %s13544_s2 = inlined_call_operand.vmem [shape: f32[128,16], index: 2, kind: input, shape index: {}]   ;;  %s13545_s3 = inlined_call_operand.vmem [shape: f32[1,16], index: 3, kind: input, shape index: {}]   ;;  %s13546_s4 = inlined_call_operand.vmem [shape: f32[25,16,64], index: 4, kind: input, shape index: {}]   ;;  %s13547_s5 = inlined_call_operand.vmem [shape: f32[1,64], index: 5, kind: input, shape index: {}]   ;;  %s13548_s6 = inlined_call_operand.vmem [shape: f32[192,256], index: 6, kind: input, shape index: {}]   ;;  %s13549_s7 = inlined_call_operand.vmem [shape: f32[1,256], index: 7, kind: input, shape index: {}]   ;;  %s13550_s8 = inlined_call_operand.vmem [shape: f32[256,256], index: 8, kind: input, shape index: {}]   ;;  %s13551_s9 = inlined_call_operand.vmem [shape: f32[1,256], index: 9, kind: input, shape index: {}]   ;;  %s13552_s10 = inlined_call_operand.vmem [shape: f32[256,128], index: 10, kind: input, shape index: {}]   ;;  %s13553_s11 = inlined_call_operand.vmem [shape: f32[1,128], index: 11, kind: input, shape index: {}]   ;;  %s13554_s12 = inlined_call_operand.vmem [shape: f32[128,128], index: 12, kind: input, shape index: {}]   ;;  %s13555_s13 = inlined_call_operand.vmem [shape: f32[1,128], index: 13, kind: input, shape index: {}]   ;;  %s13556_s14 = inlined_call_operand.hbm [shape: f32[2,128], index: 14, kind: output, shape index: {}]  }
   0x1   :  { %v100_v0 = vld [vmem:[%s13544_s2] sm:$0xff]  ;;  %v101_v1 = vld [vmem:[%s13544_s2 + $0x8] sm:$0xff]  ;;  %v102_v2 = vld [vmem:[%s13544_s2 + $0x10] sm:$0xff] }
   0x2   :  { %v9354_v3 = vpack.c.bf16 %v101_v1, %v100_v0  ;;  %v103_v4 = vld [vmem:[%s13544_s2 + $0x18] sm:$0xff]  ;;  %v104_v6 = vld [vmem:[%s13544_s2 + $0x20] sm:$0xff]  ;;  %v105_v7 = vld [vmem:[%s13544_s2 + $0x28] sm:$0xff] }
   0x3   :  { %v9358_v5 = vpack.c.bf16 %v103_v4, %v102_v2  ;;  %v9362_v8 = vpack.c.bf16 %v105_v7, %v104_v6  ;;  %v48_v9 = vld [vmem:[%s13542_s0] sm:$0xff]  ;;  %v106_v10 = vld [vmem:[%s13544_s2 + $0x30] sm:$0xff]  ;;  %v107_v11 = vld [vmem:[%s13544_s2 + $0x38] sm:$0xff] }
   0x4   :  { %9355 = vmatprep.subr.bf16.mxu0 %v9354_v3  ;;  %8916 = vmatprep.mubr.f32.mxu0 %v48_v9  ;;  %v9366_v12 = vpack.c.bf16 %v107_v11, %v106_v10  ;;  %v108_v13 = vld [vmem:[%s13544_s2 + $0x40] sm:$0xff]  ;;  %v109_v14 = vld [vmem:[%s13544_s2 + $0x48] sm:$0xff]  ;;  %v110_v16 = vld [vmem:[%s13544_s2 + $0x50] sm:$0xff] }
   0x5   :  { %9357 = vmatpush3.bf16.msra.mxu0 %v9354_v3  ;;  %v9370_v15 = vpack.c.bf16 %v109_v14, %v108_v13  ;;  %v111_v17 = vld [vmem:[%s13544_s2 + $0x58] sm:$0xff]  ;;  %v112_v19 = vld [vmem:[%s13544_s2 + $0x60] sm:$0xff]  ;;  %v113_v20 = vld [vmem:[%s13544_s2 + $0x68] sm:$0xff] }
   0x6   :  { %9359 = vmatprep.subr.bf16.mxu0 %v9358_v5  ;;  %v9374_v18 = vpack.c.bf16 %v111_v17, %v110_v16  ;;  %v9378_v21 = vpack.c.bf16 %v113_v20, %v112_v19  ;;  %v114_v22 = vld [vmem:[%s13544_s2 + $0x70] sm:$0xff]  ;;  %v115_v23 = vld [vmem:[%s13544_s2 + $0x78] sm:$0xff] }
   0x9   :  { %9361 = vmatpush3.bf16.msra.mxu0 %v9358_v5 }
   0xa   :  { %9363 = vmatprep.subr.bf16.mxu0 %v9362_v8 }
   0xd   :  { %9365 = vmatpush3.bf16.msra.mxu0 %v9362_v8 }
   0xe   :  { %9367 = vmatprep.subr.bf16.mxu0 %v9366_v12 }
  0x11   :  { %9369 = vmatpush3.bf16.msra.mxu0 %v9366_v12 }
  0x12   :  { %9371 = vmatprep.subr.bf16.mxu0 %v9370_v15 }
  0x15   :  { %9373 = vmatpush3.bf16.msra.mxu0 %v9370_v15 }
  0x16   :  { %9375 = vmatprep.subr.bf16.mxu0 %v9374_v18 }
  0x17   :  { %19 = vsyncpa [#allocation3], 0  ;;  %v9382_v24 = vpack.c.bf16 %v115_v23, %v114_v22  ;;  %v49_v25 = vld [vmem:[%s13542_s0 + $0x8] sm:$0xff]  ;;  %v50_v26 = vld [vmem:[%s13542_s0 + $0x10] sm:$0xff]  ;;  %v13559_v15 = vmov 0.0|0.0   ;;  %vm9805_vm0 = vmmov 0  }
  0x18   :  { %v51_v27 = vld [vmem:[%s13542_s0 + $0x18] sm:$0xff]  ;;  %v52_v28 = vld [vmem:[%s13542_s0 + $0x20] sm:$0xff]  ;;  %v53_v29 = vld [vmem:[%s13542_s0 + $0x28] sm:$0xff]  ;;  %9386 = vmatprep.subr.bf16.mxu1 %v13559_v15  ;;  %v13562_v16 = vmov 0.0   ;;  %vm884_vm1 = vcmask 1040384   ;;  %vm897_vm2 = vcmask 1041408  }
  0x19   :  { %9377 = vmatpush3.bf16.msra.mxu0 %v9374_v18  ;;  %v54_v30 = vld [vmem:[%s13542_s0 + $0x30] sm:$0xff]  ;;  %v55_v31 = vld [vmem:[%s13542_s0 + $0x38] sm:$0xff]  ;;  %v56_v32 = vld [vmem:[%s13542_s0 + $0x40] sm:$0xff]  ;;  %8998 = vmatprep.mubr.msk.f32.mxu1 %vm9805_vm0, %v13562_v16  ;;  %v10100_v17 = vrot.slane %v13562_v16, 2  ;;  %v10103_v18 = vrot.slane %v13562_v16, 3  ;;  %vm910_vm3 = vcmask 1042432  }
  0x1a   :  { %9379 = vmatprep.subr.bf16.mxu0 %v9378_v21  ;;  %v57_v33 = vld [vmem:[%s13542_s0 + $0x48] sm:$0xff]  ;;  %v58_v34 = vld [vmem:[%s13542_s0 + $0x50] sm:$0xff]  ;;  %v59_v35 = vld [vmem:[%s13542_s0 + $0x58] sm:$0xff]  ;;  %vm923_vm4 = vcmask 1043456   ;;  %vm936_vm5 = vcmask 1044480   ;;  %vm1410_vm6 = vcmask 130048  }
  0x1b   :  { %v60_v36 = vld [vmem:[%s13542_s0 + $0x60] sm:$0xff]  ;;  %v61_v37 = vld [vmem:[%s13542_s0 + $0x68] sm:$0xff]  ;;  %v62_v38 = vld [vmem:[%s13542_s0 + $0x70] sm:$0xff]  ;;  %v10108_v19 = vsel %vm884_vm1, %v10100_v17, %v10103_v18  ;;  %vm7964_vm7 = vcmask 523264   ;;  %vm7966_vm8 = vcmask 516096   ;;  %vm7999_vm9 = vcmask 1041409  }
  0x1c   :  { %v63_v39 = vld [vmem:[%s13542_s0 + $0x78] sm:$0xff]  ;;  %v64_v40 = vld [vmem:[%s13542_s0 + $0x80] sm:$0xff]  ;;  %v65_v41 = vld [vmem:[%s13542_s0 + $0x88] sm:$0xff] }
  0x1d   :  { %9381 = vmatpush3.bf16.msra.mxu0 %v9378_v21  ;;  %v66_v42 = vld [vmem:[%s13542_s0 + $0x90] sm:$0xff]  ;;  %v67_v43 = vld [vmem:[%s13542_s0 + $0x98] sm:$0xff]  ;;  %v68_v44 = vld [vmem:[%s13542_s0 + $0xa0] sm:$0xff] }
  0x1e   :  { %9383 = vmatprep.subr.bf16.mxu0 %v9382_v24  ;;  %v69_v45 = vld [vmem:[%s13542_s0 + $0xa8] sm:$0xff]  ;;  %v70_v46 = vld [vmem:[%s13542_s0 + $0xb0] sm:$0xff]  ;;  %v71_v47 = vld [vmem:[%s13542_s0 + $0xb8] sm:$0xff] }
  0x1f   :  { %v72_v48 = vld [vmem:[%s13542_s0 + $0xc0] sm:$0xff]  ;;  %v73_v49 = vld [vmem:[%s13542_s0 + $0xc8] sm:$0xff]  ;;  %v74_v50 = vld [vmem:[%s13542_s0 + $0xd0] sm:$0xff] }
  0x20   :  { %v75_v51 = vld [vmem:[%s13542_s0 + $0xd8] sm:$0xff]  ;;  %v76_v52 = vld [vmem:[%s13542_s0 + $0xe0] sm:$0xff]  ;;  %v77_v53 = vld [vmem:[%s13542_s0 + $0xe8] sm:$0xff] }
  0x21   :  { %9385 = vmatpush3.bf16.msra.mxu0 %v9382_v24  ;;  %v78_v54 = vld [vmem:[%s13542_s0 + $0xf0] sm:$0xff]  ;;  %v79_v55 = vld [vmem:[%s13542_s0 + $0xf8] sm:$0xff]  ;;  %v80_v56 = vld [vmem:[%s13542_s0 + $0x100] sm:$0xff] }
  0x22   :  { %v81_v57 = vld [vmem:[%s13542_s0 + $0x108] sm:$0xff]  ;;  %v82_v58 = vld [vmem:[%s13542_s0 + $0x110] sm:$0xff]  ;;  %v83_v59 = vld [vmem:[%s13542_s0 + $0x118] sm:$0xff] }
  0x23   :  { %v84_v60 = vld [vmem:[%s13542_s0 + $0x120] sm:$0xff]  ;;  %v85_v61 = vld [vmem:[%s13542_s0 + $0x128] sm:$0xff]  ;;  %v86_v62 = vld [vmem:[%s13542_s0 + $0x130] sm:$0xff] }
  0x24   :  { %8917 = vmatmul.mubr.f32.vlgmr.msra.gmra.mrb[0].mxu0 %v49_v25  ;;  %v87_v63 = vld [vmem:[%s13542_s0 + $0x138] sm:$0xff]  ;;  %v88_v0 = vld [vmem:[%s13542_s0 + $0x140] sm:$0xff]  ;;  %v89_v1 = vld [vmem:[%s13542_s0 + $0x148] sm:$0xff] }
  0x25   :  { %8919 = vmatprep.mubr.f32.mxu0 %v50_v26  ;;  %v90_v2 = vld [vmem:[%s13542_s0 + $0x150] sm:$0xff]  ;;  %v91_v3 = vld [vmem:[%s13542_s0 + $0x158] sm:$0xff]  ;;  %v92_v4 = vld [vmem:[%s13542_s0 + $0x160] sm:$0xff] }
  0x26   :  { %v93_v5 = vld [vmem:[%s13542_s0 + $0x168] sm:$0xff]  ;;  %v94_v6 = vld [vmem:[%s13542_s0 + $0x170] sm:$0xff]  ;;  %v95_v7 = vld [vmem:[%s13542_s0 + $0x178] sm:$0xff] }
  0x27   :  { %v96_v8 = vld [vmem:[%s13542_s0 + $0x180] sm:$0xff]  ;;  %v97_v9 = vld [vmem:[%s13542_s0 + $0x188] sm:$0xff]  ;;  %v98_v10 = vld [vmem:[%s13542_s0 + $0x190] sm:$0xff] }
  0x28   :  { %8920 = vmatmul.mubr.f32.gmra.mrb[2].mxu0 %v51_v27  ;;  %v99_v11 = vld [vmem:[%s13542_s0 + $0x198] sm:$0xff]  ;;  %v8510_v12 = vld [vmem:[%s13546_s4 + $0x10] sm:$0xff]  ;;  %v10113_v21 = vld [vmem:[%s13545_s3] ss:$0 sm:$0xff] }
  0x29   :  { %8922 = vmatprep.mubr.f32.mxu0 %v52_v28  ;;  %v8511_v13 = vld [vmem:[%s13546_s4 + $0x18] sm:$0xff] }
  0x2a   :  { %v9387_v14 = vpack.c.bf16 %v8511_v13, %v8510_v12 }
  0x2c   :  { %8923 = vmatmul.mubr.f32.gmra.mrb[4].mxu0 %v53_v29  ;;  %9388 = vmatpush3.bf16.msra.mxu1 %v9387_v14 }
  0x2d   :  { %8925 = vmatprep.mubr.f32.mxu0 %v54_v30  ;;  %9389 = vmatprep.subr.bf16.mxu1 %v13559_v15 }
  0x30   :  { %8926 = vmatmul.mubr.f32.gmra.mrb[6].mxu0 %v55_v31 }
  0x31   :  { %8928 = vmatprep.mubr.f32.mxu0 %v56_v32 }
  0x34   :  { %8929 = vmatmul.mubr.f32.gmra.mrb[8].mxu0 %v57_v33 }
  0x35   :  { %8931 = vmatprep.mubr.f32.mxu0 %v58_v34  ;;  %v9807_v34 = vmov 1966171168  }
  0x38   :  { %8932 = vmatmul.mubr.f32.gmra.mrb[10].mxu0 %v59_v35  ;;  %v1038_v35 = vunpack.c.l.s4 %v9807_v34 }
  0x39   :  { %8934 = vmatprep.mubr.f32.mxu0 %v60_v36  ;;  %v1040_v36 = vlaneseq }
  0x3c   :  { %8935 = vmatmul.mubr.f32.gmra.mrb[12].mxu0 %v61_v37 }
  0x3d   :  { %8937 = vmatprep.mubr.f32.mxu0 %v62_v38 }
  0x40   :  { %8938 = vmatmul.mubr.f32.gmra.mrb[14].mxu0 %v63_v39 }
  0x41   :  { %8940 = vmatprep.mubr.f32.mxu0 %v64_v40  ;;  %v10121_v40 = vrot.slane %v13562_v16, 1 }
  0x44   :  { %8941 = vmatmul.mubr.f32.gmra.mrb[16].mxu0 %v65_v41 }
  0x45   :  { %8943 = vmatprep.mubr.f32.mxu0 %v66_v42 }
  0x48   :  { %8944 = vmatmul.mubr.f32.gmra.mrb[18].mxu0 %v67_v43 }
  0x49   :  { %8946 = vmatprep.mubr.f32.mxu0 %v68_v44 }
  0x4c   :  { %8947 = vmatmul.mubr.f32.gmra.mrb[20].mxu0 %v69_v45 }
  0x4d   :  { %8949 = vmatprep.mubr.f32.mxu0 %v70_v46  ;;  %v1039_v46 = vunpack.c.0.s8 %v1038_v35 }
  0x50   :  { %8950 = vmatmul.mubr.f32.gmra.mrb[22].mxu0 %v71_v47  ;;  %v10124_v47 = vshrl.u32 %v1040_v36, 7 }
  0x51   :  { %8952 = vmatprep.mubr.f32.mxu0 %v72_v48 }
  0x52   :  { %13747 = vst [vmem:[#allocation5_spill] sm:$0xff] %v10124_v47 }
  0x54   :  { %8953 = vmatmul.mubr.f32.gmra.mrb[24].mxu0 %v73_v49 }
  0x55   :  { %8955 = vmatprep.mubr.f32.mxu0 %v74_v50 }
  0x58   :  { %8956 = vmatmul.mubr.f32.gmra.mrb[26].mxu0 %v75_v51  ;;  %v1164_v51 = vsel %vm884_vm1, %v10121_v40, %v10100_v17 }
  0x59   :  { %8958 = vmatprep.mubr.f32.mxu0 %v76_v52 }
  0x5c   :  { %8959 = vmatmul.mubr.f32.gmra.mrb[28].mxu0 %v77_v53 }
  0x5d   :  { %8961 = vmatprep.mubr.f32.mxu0 %v78_v54 }
  0x60   :  { %8962 = vmatmul.mubr.f32.gmra.mrb[30].mxu0 %v79_v55 }
  0x61   :  { %8964 = vmatprep.mubr.f32.mxu0 %v80_v56 }
  0x64   :  { %8965 = vmatmul.mubr.f32.gmra.mrb[32].mxu0 %v81_v57 }
  0x65   :  { %8967 = vmatprep.mubr.f32.mxu0 %v82_v58 }
  0x68   :  { %8968 = vmatmul.mubr.f32.gmra.mrb[34].mxu0 %v83_v59  ;;  %v10132_v59 = vsub.s32 %v1039_v46, %v10124_v47 }
  0x69   :  { %8970 = vmatprep.mubr.f32.mxu0 %v84_v60  ;;  %v1169_v60 = vsel %vm897_vm2, %v1164_v51, %v10103_v18 }
  0x6c   :  { %8971 = vmatmul.mubr.f32.gmra.mrb[36].mxu0 %v85_v61 }
  0x6d   :  { %8973 = vmatprep.mubr.f32.mxu0 %v86_v62 }
  0x70   :  { %8974 = vmatmul.mubr.f32.gmra.mrb[38].mxu0 %v87_v63 }
  0x71   :  { %8976 = vmatprep.mubr.f32.mxu0 %v88_v0 }
  0x74   :  { %8977 = vmatmul.mubr.f32.gmra.mrb[40].mxu0 %v89_v1 }
  0x75   :  { %8979 = vmatprep.mubr.f32.mxu0 %v90_v2 }
  0x78   :  { %8980 = vmatmul.mubr.f32.gmra.mrb[42].mxu0 %v91_v3 }
  0x79   :  { %8982 = vmatprep.mubr.f32.mxu0 %v92_v4 }
  0x7c   :  { %8983 = vmatmul.mubr.f32.gmra.mrb[44].mxu0 %v93_v5 }
  0x7d   :  { %8985 = vmatprep.mubr.f32.mxu0 %v94_v6 }
  0x80   :  { %8986 = vmatmul.mubr.f32.gmra.mrb[46].mxu0 %v95_v7 }
  0x81   :  { %8988 = vmatprep.mubr.f32.mxu0 %v96_v8 }
  0x84   :  { %8989 = vmatmul.mubr.f32.gmra.mrb[48].mxu0 %v97_v9 }
  0x85   :  { %8991 = vmatprep.mubr.f32.mxu0 %v98_v10 }
  0x88   :  { %8992 = vmatmul.mubr.f32.gmra.mrb[50].mxu0 %v99_v11 }
  0xf7   :  { %v8918_v20 = vpop.f32.mrb[0].mxu0 }
  0xf8   :  { %v189_v22 = vpop.f32.mrb[1].mxu0  ;;  %v195_v23 = vadd.f32 %v8918_v20, %v10113_v21 }
  0xf9   :  { %v190_v24 = vadd.f32 %v10113_v21, %v189_v22  ;;  %v10140_v22 = vrot.slane %v1169_v60, %v10132_v59 }
  0xfa   :  { %v449_v29 = vmax.f32 %v195_v23, 0.0 }
  0xfb   :  { %v8921_v25 = vpop.f32.mrb[2].mxu0  ;;  %v448_v31 = vmax.f32 %v190_v24, 0.0 }
  0xfc   :  { %v205_v26 = vadd.f32 %v8921_v25, %v10113_v21  ;;  %v199_v27 = vpop.f32.mrb[3].mxu0 }
  0xfd   :  { %v200_v28 = vadd.f32 %v10113_v21, %v199_v27 }
  0xfe   :  { %v451_v30 = vmax.f32 %v205_v26, 0.0 }
  0xff   :  { %v450_v32 = vmax.f32 %v200_v28, 0.0  ;;  %v8924_v33 = vpop.f32.mrb[4].mxu0 }
 0x100   :  { %v501_v37 = vmax.f32 %v449_v29, %v451_v30  ;;  %v215_v38 = vadd.f32 %v8924_v33, %v10113_v21  ;;  %v209_v39 = vpop.f32.mrb[5].mxu0 }
 0x101   :  { %v500_v41 = vmax.f32 %v448_v31, %v450_v32  ;;  %v210_v42 = vadd.f32 %v10113_v21, %v209_v39 }
 0x102   :  { %v453_v43 = vmax.f32 %v215_v38, 0.0 }
 0x103   :  { %v452_v44 = vmax.f32 %v210_v42, 0.0  ;;  %v8927_v45 = vpop.f32.mrb[6].mxu0 }
 0x104   :  { %v505_v48 = vmax.f32 %v501_v37, %v453_v43  ;;  %v225_v49 = vadd.f32 %v8927_v45, %v10113_v21  ;;  %v219_v50 = vpop.f32.mrb[7].mxu0 }
 0x105   :  { %v504_v52 = vmax.f32 %v500_v41, %v452_v44  ;;  %v220_v53 = vadd.f32 %v10113_v21, %v219_v50 }
 0x106   :  { %v680_v54 = vrot.slane %v505_v48, 1  ;;  %v455_v55 = vmax.f32 %v225_v49, 0.0  ;;  %v644_v61 = vrot.slane %v505_v48, 2 }
 0x107   :  { %v560_v56 = vrot.slane %v504_v52, 1  ;;  %v454_v57 = vmax.f32 %v220_v53, 0.0  ;;  %v8930_v58 = vpop.f32.mrb[8].mxu0  ;;  %v596_v3 = vrot.slane %v504_v52, 2 }
 0x108   :  { %v704_v62 = vmax.f32 %v505_v48, %v680_v54  ;;  %v509_v63 = vmax.f32 %v453_v43, %v455_v55  ;;  %v235_v0 = vadd.f32 %v8930_v58, %v10113_v21  ;;  %v229_v1 = vpop.f32.mrb[9].mxu0 }
 0x109   :  { %v584_v2 = vmax.f32 %v504_v52, %v560_v56  ;;  %v508_v4 = vmax.f32 %v452_v44, %v454_v57  ;;  %v230_v5 = vadd.f32 %v10113_v21, %v229_v1 }
 0x10a   :  { %v716_v6 = vmax.f32 %v704_v62, %v644_v61  ;;  %v457_v7 = vmax.f32 %v235_v0, 0.0 }
 0x10b   :  { %v620_v8 = vmax.f32 %v584_v2, %v596_v3  ;;  %v668_v9 = vmax.f32 %v584_v2, %v644_v61  ;;  %v456_v10 = vmax.f32 %v230_v5, 0.0  ;;  %v8933_v11 = vpop.f32.mrb[10].mxu0  ;;  %v1186_v61 = vcombine.high %v10140_v22, %v10140_v22 }
 0x10c   :  { %v836_v12 = vrot.slane %v716_v6, 4  ;;  %v513_v13 = vmax.f32 %v509_v63, %v457_v7  ;;  %v245_v14 = vadd.f32 %v8933_v11, %v10113_v21  ;;  %v239_v20 = vpop.f32.mrb[11].mxu0  ;;  %v860_v23 = vrot.slane %v716_v6, 5 }
 0x10d   :  { %v740_v24 = vrot.slane %v620_v8, 1  ;;  %v764_v25 = vrot.slane %v620_v8, 2  ;;  %v512_v26 = vmax.f32 %v508_v4, %v456_v10  ;;  %v800_v27 = vrot.slane %v668_v9, 3 }
 0x10e   :  { %v681_v28 = vrot.slane %v513_v13, 1  ;;  %v459_v29 = vmax.f32 %v245_v14, 0.0  ;;  %v240_v30 = vadd.f32 %v10113_v21, %v239_v20  ;;  %v645_v32 = vrot.slane %v513_v13, 2 }
 0x10f   :  { %v885_v31 = vsel %vm884_vm1, %v620_v8, %v740_v24  ;;  %v561_v33 = vrot.slane %v512_v26, 1  ;;  %v597_v34 = vrot.slane %v512_v26, 2  ;;  %v8936_v35 = vpop.f32.mrb[12].mxu0 }
 0x110   :  { %v898_v36 = vsel %vm897_vm2, %v885_v31, %v764_v25  ;;  %v705_v37 = vmax.f32 %v513_v13, %v681_v28  ;;  %v517_v38 = vmax.f32 %v457_v7, %v459_v29  ;;  %v458_v39 = vmax.f32 %v240_v30, 0.0  ;;  %v249_v41 = vpop.f32.mrb[13].mxu0 }
 0x111   :  { %v911_v42 = vsel %vm910_vm3, %v898_v36, %v800_v27  ;;  %v585_v43 = vmax.f32 %v512_v26, %v561_v33  ;;  %v255_v44 = vadd.f32 %v8936_v35, %v10113_v21  ;;  %v250_v45 = vadd.f32 %v10113_v21, %v249_v41 }
 0x112   :  { %v924_v46 = vsel %vm923_vm4, %v911_v42, %v836_v12  ;;  %v717_v48 = vmax.f32 %v705_v37, %v645_v32  ;;  %v516_v49 = vmax.f32 %v456_v10, %v458_v39 }
 0x113   :  { %v10150_v50 = vsel %vm936_vm5, %v924_v46, %v860_v23  ;;  %v621_v51 = vmax.f32 %v585_v43, %v597_v34  ;;  %v669_v52 = vmax.f32 %v585_v43, %v645_v32  ;;  %v461_v53 = vmax.f32 %v255_v44, 0.0  ;;  %v8939_v54 = vpop.f32.mrb[14].mxu0 }
 0x114   :  { %v460_v55 = vmax.f32 %v250_v45, 0.0  ;;  %v259_v56 = vpop.f32.mrb[15].mxu0  ;;  %v837_v62 = vrot.slane %v717_v48, 4  ;;  %v265_v0 = vadd.f32 %v8939_v54, %v10113_v21  ;;  %v861_v2 = vrot.slane %v717_v48, 5 }
 0x115   :  { %v741_v57 = vrot.slane %v621_v51, 1  ;;  %v765_v58 = vrot.slane %v621_v51, 2  ;;  %v521_v60 = vmax.f32 %v517_v38, %v461_v53  ;;  %v260_v1 = vadd.f32 %v10113_v21, %v259_v56 }
 0x116   :  { %v520_v63 = vmax.f32 %v516_v49, %v460_v55  ;;  %v801_v3 = vrot.slane %v669_v52, 3  ;;  %v463_v13 = vmax.f32 %v265_v0, 0.0  ;;  %v1022_v43 = vsel %vm884_vm1, 0.0, %v10121_v40 }
 0x117   :  { %v886_v4 = vsel %vm884_vm1, %v621_v51, %v741_v57  ;;  %v646_v5 = vrot.slane %v521_v60, 2  ;;  %v8942_v6 = vpop.f32.mrb[16].mxu0  ;;  %v682_v8 = vrot.slane %v521_v60, 1  ;;  %v462_v14 = vmax.f32 %v260_v1, 0.0 }
 0x118   :  { %v899_v7 = vsel %vm897_vm2, %v886_v4, %v765_v58  ;;  %v562_v9 = vrot.slane %v520_v63, 1  ;;  %v598_v10 = vrot.slane %v520_v63, 2  ;;  %v269_v11 = vpop.f32.mrb[17].mxu0  ;;  %v275_v20 = vadd.f32 %v8942_v6, %v10113_v21 }
 0x119   :  { %v912_v12 = vsel %vm910_vm3, %v899_v7, %v801_v3  ;;  %v706_v24 = vmax.f32 %v521_v60, %v682_v8  ;;  %v270_v26 = vadd.f32 %v10113_v21, %v269_v11  ;;  %v525_v28 = vmax.f32 %v461_v53, %v463_v13 }
 0x11a   :  { %v925_v23 = vsel %vm923_vm4, %v912_v12, %v837_v62  ;;  %v586_v25 = vmax.f32 %v520_v63, %v562_v9  ;;  %v524_v29 = vmax.f32 %v460_v55, %v462_v14  ;;  %v465_v30 = vmax.f32 %v275_v20, 0.0 }
 0x11b   :  { %v10163_v27 = vsel %vm936_vm5, %v925_v23, %v861_v2  ;;  %v8945_v31 = vpop.f32.mrb[18].mxu0  ;;  %v718_v32 = vmax.f32 %v706_v24, %v646_v5  ;;  %v464_v37 = vmax.f32 %v270_v26, 0.0  ;;  %v10171_v44 = vrot.slane %v10140_v22, %v10132_v59 }
 0x11c   :  { %v622_v33 = vmax.f32 %v586_v25, %v598_v10  ;;  %v670_v34 = vmax.f32 %v586_v25, %v646_v5  ;;  %v279_v35 = vpop.f32.mrb[19].mxu0  ;;  %v529_v36 = vmax.f32 %v525_v28, %v465_v30  ;;  %v285_v39 = vadd.f32 %v8945_v31, %v10113_v21 }
 0x11d   :  { %v280_v41 = vadd.f32 %v10113_v21, %v279_v35  ;;  %13748 = vst [vmem:[#allocation6_spill] sm:$0xff] %v10171_v44  ;;  %v10174_v45 = vrot.slane %v1186_v61, %v10132_v59  ;;  %v838_v46 = vrot.slane %v718_v32, 4  ;;  %v862_v48 = vrot.slane %v718_v32, 5 }
 0x11e   :  { %v742_v38 = vrot.slane %v622_v33, 1  ;;  %v766_v49 = vrot.slane %v622_v33, 2  ;;  %v802_v53 = vrot.slane %v670_v34, 3  ;;  %v647_v54 = vrot.slane %v529_v36, 2 }
 0x11f   :  { %v8948_v42 = vpop.f32.mrb[20].mxu0  ;;  %v683_v55 = vrot.slane %v529_v36, 1  ;;  %v528_v56 = vmax.f32 %v524_v29, %v464_v37  ;;  %v467_v40 = vmax.f32 %v285_v39, 0.0  ;;  %v466_v58 = vmax.f32 %v280_v41, 0.0 }
 0x120   :  { %v887_v51 = vsel %vm884_vm1, %v622_v33, %v742_v38  ;;  %v289_v52 = vpop.f32.mrb[21].mxu0  ;;  %v295_v22 = vadd.f32 %v8948_v42, %v10113_v21  ;;  %v10188_v12 = vcombine.high %v10171_v44, %v10171_v44  ;;  %v1027_v13 = vsel %vm897_vm2, %v1022_v43, %v10100_v17 }
 0x121   :  { %v900_v57 = vsel %vm897_vm2, %v887_v51, %v766_v49  ;;  %v707_v61 = vmax.f32 %v529_v36, %v683_v55  ;;  %v563_v62 = vrot.slane %v528_v56, 1  ;;  %v599_v63 = vrot.slane %v528_v56, 2 }
 0x122   :  { %v913_v60 = vsel %vm910_vm3, %v900_v57, %v802_v53  ;;  %v533_v2 = vmax.f32 %v465_v30, %v467_v40  ;;  %v532_v3 = vmax.f32 %v464_v37, %v466_v58  ;;  %v469_v4 = vmax.f32 %v295_v22, 0.0  ;;  %13749 = vst [vmem:[#allocation7_spill] sm:$0xff] %v10188_v12 }
 0x123   :  { %v8951_v0 = vpop.f32.mrb[22].mxu0  ;;  %v926_v1 = vsel %vm923_vm4, %v913_v60, %v838_v46  ;;  %v719_v7 = vmax.f32 %v707_v61, %v647_v54  ;;  %v587_v8 = vmax.f32 %v528_v56, %v563_v62  ;;  %v290_v9 = vadd.f32 %v10113_v21, %v289_v52 }
 0x124   :  { %v299_v5 = vpop.f32.mrb[23].mxu0  ;;  %v10182_v6 = vsel %vm936_vm5, %v926_v1, %v862_v48  ;;  %v537_v10 = vmax.f32 %v533_v2, %v469_v4  ;;  %v305_v11 = vadd.f32 %v8951_v0, %v10113_v21  ;;  %v10194_v25 = vrot.slane %v13562_v16, 4 }
 0x125   :  { %v623_v14 = vmax.f32 %v587_v8, %v599_v63  ;;  %v671_v20 = vmax.f32 %v587_v8, %v647_v54  ;;  %v300_v23 = vadd.f32 %v10113_v21, %v299_v5  ;;  %v468_v28 = vmax.f32 %v290_v9, 0.0 }
 0x126   :  { %13750 = vst [vmem:[#allocation8_spill] sm:$0xff] %v10194_v25  ;;  %v684_v26 = vrot.slane %v537_v10, 1  ;;  %v1297_v30 = vcombine.low %v10171_v44, %v10174_v45  ;;  %v1347_v31 = vcombine.low %v10174_v45, %v10188_v12  ;;  %v839_v32 = vrot.slane %v719_v7, 4 }
 0x127   :  { %v8954_v24 = vpop.f32.mrb[24].mxu0  ;;  %v743_v33 = vrot.slane %v623_v14, 1  ;;  %v767_v17 = vrot.slane %v623_v14, 2  ;;  %v1043_v34 = vrot.slane %v1027_v13, %v10132_v59  ;;  %v803_v35 = vrot.slane %v671_v20, 3 }
 0x128   :  { %v309_v29 = vpop.f32.mrb[25].mxu0  ;;  %v708_v36 = vmax.f32 %v537_v10, %v684_v26  ;;  %v536_v37 = vmax.f32 %v532_v3, %v468_v28  ;;  %v471_v38 = vmax.f32 %v305_v11, 0.0  ;;  %v470_v41 = vmax.f32 %v300_v23, 0.0 }
 0x129   :  { %v888_v39 = vsel %vm884_vm1, %v623_v14, %v743_v33  ;;  %v315_v42 = vadd.f32 %v8954_v24, %v10113_v21  ;;  %v310_v43 = vadd.f32 %v10113_v21, %v309_v29  ;;  %v863_v48 = vrot.slane %v719_v7, 5 }
 0x12a   :  { %v901_v45 = vsel %vm897_vm2, %v888_v39, %v767_v17  ;;  %v648_v49 = vrot.slane %v537_v10, 2  ;;  %v564_v51 = vrot.slane %v536_v37, 1  ;;  %v541_v54 = vmax.f32 %v469_v4, %v471_v38 }
 0x12b   :  { %v8957_v46 = vpop.f32.mrb[26].mxu0  ;;  %v914_v53 = vsel %vm910_vm3, %v901_v45, %v803_v35  ;;  %v540_v55 = vmax.f32 %v468_v28, %v470_v41  ;;  %v473_v56 = vmax.f32 %v315_v42, 0.0  ;;  %v600_v58 = vrot.slane %v536_v37, 2 }
 0x12c   :  { %v319_v52 = vpop.f32.mrb[27].mxu0  ;;  %v927_v57 = vsel %vm923_vm4, %v914_v53, %v839_v32  ;;  %v588_v40 = vmax.f32 %v536_v37, %v564_v51  ;;  %v1044_v22 = vcombine.high %v1043_v34, %v1043_v34  ;;  %v720_v61 = vmax.f32 %v708_v36, %v648_v49 }
 0x12d   :  { %v10208_v60 = vsel %vm936_vm5, %v927_v57, %v863_v48  ;;  %v545_v62 = vmax.f32 %v541_v54, %v473_v56  ;;  %v472_v63 = vmax.f32 %v310_v43, 0.0  ;;  %v10211_v5 = vrot.slane %v1297_v30, %v10132_v59 }
 0x12e   :  { %v624_v1 = vmax.f32 %v588_v40, %v600_v58  ;;  %v672_v2 = vmax.f32 %v588_v40, %v648_v49  ;;  %v10216_v4 = vsel %vm884_vm1, %v10103_v18, %v10194_v25  ;;  %v10219_v9 = vrot.slane %v1347_v31, %v10132_v59 }
 0x12f   :  { %v8960_v0 = vpop.f32.mrb[28].mxu0  ;;  %13751 = vst [vmem:[#allocation9_spill] sm:$0xff] %v10211_v5  ;;  %13752 = vst [vmem:[#allocation10_spill] sm:$0xff] %v10216_v4  ;;  %v685_v7 = vrot.slane %v545_v62, 1  ;;  %v544_v8 = vmax.f32 %v540_v55, %v472_v63  ;;  %v10224_v10 = vsel %vm897_vm2, %v10108_v19, %v10194_v25  ;;  %v10227_v14 = vrot.slane %v1043_v34, %v10132_v59 }
 0x130   :  { %v329_v3 = vpop.f32.mrb[29].mxu0  ;;  %13753 = vst [vmem:[#allocation11_spill] sm:$0xff] %v10219_v9  ;;  %13754 = vst [vmem:[#allocation12_spill] sm:$0xff] %v10224_v10  ;;  %v744_v11 = vrot.slane %v624_v1, 1  ;;  %v768_v13 = vrot.slane %v624_v1, 2  ;;  %v10230_v20 = vrot.slane %v1044_v22, %v10132_v59  ;;  %v961_v18 = vrot.slane %v10150_v50, 6 }
 0x131   :  { %13755 = vst [vmem:[#allocation13_spill] sm:$0xff] %v10227_v14  ;;  %v962_v23 = vrot.slane %v10163_v27, 6  ;;  %v840_v24 = vrot.slane %v720_v61, 4  ;;  %v325_v26 = vadd.f32 %v8957_v46, %v10113_v21  ;;  %v804_v29 = vrot.slane %v672_v2, 3 }
 0x132   :  { %v889_v19 = vsel %vm884_vm1, %v624_v1, %v744_v11  ;;  %v709_v30 = vmax.f32 %v545_v62, %v685_v7  ;;  %v565_v31 = vrot.slane %v544_v8, 1  ;;  %v864_v33 = vrot.slane %v720_v61, 5 }
 0x133   :  { %v8963_v28 = vpop.f32.mrb[30].mxu0  ;;  %v902_v17 = vsel %vm897_vm2, %v889_v19, %v768_v13  ;;  %v649_v34 = vrot.slane %v545_v62, 2  ;;  %v320_v35 = vadd.f32 %v10113_v21, %v319_v52  ;;  %v601_v27 = vrot.slane %v544_v8, 2 }
 0x134   :  { %v339_v32 = vpop.f32.mrb[31].mxu0  ;;  %v915_v50 = vsel %vm910_vm3, %v902_v17, %v804_v29  ;;  %v589_v36 = vmax.f32 %v544_v8, %v565_v31  ;;  %v335_v37 = vadd.f32 %v8960_v0, %v10113_v21  ;;  %v330_v39 = vadd.f32 %v10113_v21, %v329_v3  ;;  %v10277_v17 = vld [vmem:[%s13546_s4 + $0x8] sm:$0xff] }
 0x135   :  { %v928_v38 = vsel %vm923_vm4, %v915_v50, %v840_v24  ;;  %v345_v41 = vadd.f32 %v8963_v28, %v10113_v21  ;;  %v340_v42 = vadd.f32 %v10113_v21, %v339_v32  ;;  %v721_v48 = vmax.f32 %v709_v30, %v649_v34 }
 0x136   :  { %v10245_v46 = vsel %vm936_vm5, %v928_v38, %v864_v33  ;;  %v625_v45 = vmax.f32 %v589_v36, %v601_v27  ;;  %v475_v49 = vmax.f32 %v325_v26, 0.0  ;;  %v673_v52 = vmax.f32 %v589_v36, %v649_v34  ;;  %v10272_v33 = vld [vmem:[%s13546_s4] sm:$0xff] }
 0x137   :  { %v8966_v43 = vpop.f32.mrb[32].mxu0  ;;  %v474_v53 = vmax.f32 %v320_v35, 0.0  ;;  %v477_v54 = vmax.f32 %v335_v37, 0.0  ;;  %v476_v55 = vmax.f32 %v330_v39, 0.0  ;;  %v479_v40 = vmax.f32 %v345_v41, 0.0 }
 0x138   :  { %v349_v51 = vpop.f32.mrb[33].mxu0  ;;  %v745_v56 = vrot.slane %v625_v45, 1  ;;  %v769_v57 = vrot.slane %v625_v45, 2  ;;  %v478_v58 = vmax.f32 %v340_v42, 0.0  ;;  %v10249_v63 = vcombine.high %v10227_v14, %v10227_v14 }
 0x139   :  { %v503_v22 = vmax.f32 %v475_v49, %v477_v54  ;;  %v502_v61 = vmax.f32 %v474_v53, %v476_v55  ;;  %v1497_v0 = vcombine.low %v10227_v14, %v10230_v20  ;;  %v10254_v1 = vsel %vm897_vm2, 0.0, %v961_v18 }
 0x13a   :  { %13756 = vst [vmem:[#allocation14_spill] sm:$0xff] %v10249_v63  ;;  %v10257_v2 = vsel %vm897_vm2, 0.0, %v962_v23  ;;  %v963_v3 = vrot.slane %v10182_v6, 6  ;;  %v841_v7 = vrot.slane %v721_v48, 4  ;;  %v805_v11 = vrot.slane %v673_v52, 3 }
 0x13b   :  { %v8969_v62 = vpop.f32.mrb[34].mxu0  ;;  %v890_v13 = vsel %vm884_vm1, %v625_v45, %v745_v56  ;;  %v507_v24 = vmax.f32 %v503_v22, %v479_v40  ;;  %v506_v26 = vmax.f32 %v502_v61, %v478_v58  ;;  %v865_v28 = vrot.slane %v721_v48, 5 }
 0x13c   :  { %v10260_v8 = vpop.f32.mrb[35].mxu0  ;;  %v903_v29 = vsel %vm897_vm2, %v890_v13, %v769_v57  ;;  %v355_v19 = vadd.f32 %v8966_v43, %v10113_v21  ;;  %v350_v18 = vadd.f32 %v10113_v21, %v349_v51  ;;  %v10286_v41 = vadd.f32 %v8969_v62, %v10113_v21 }
 0x13d   :  { %v916_v23 = vsel %vm910_vm3, %v903_v29, %v805_v11  ;;  %v650_v30 = vrot.slane %v507_v24, 2  ;;  %v686_v31 = vrot.slane %v507_v24, 1  ;;  %v566_v6 = vrot.slane %v506_v26, 1 }
 0x13e   :  { %v929_v34 = vsel %vm923_vm4, %v916_v23, %v841_v7  ;;  %v602_v35 = vrot.slane %v506_v26, 2  ;;  %v481_v50 = vmax.f32 %v355_v19, 0.0  ;;  %v480_v36 = vmax.f32 %v350_v18, 0.0 }
 0x13f   :  { %v10267_v32 = vpop.f32.mrb[36].mxu0  ;;  %v10283_v37 = vsel %vm936_vm5, %v929_v34, %v865_v28  ;;  %v710_v38 = vmax.f32 %v507_v24, %v686_v31  ;;  %v590_v39 = vmax.f32 %v506_v26, %v566_v6  ;;  %v10293_v45 = vrot.slane %v1497_v0, %v10132_v59 }
 0x140   :  { %v10280_v27 = vpop.f32.mrb[37].mxu0  ;;  %v511_v42 = vmax.f32 %v479_v40, %v481_v50  ;;  %v10288_v43 = vmax.f32 %v478_v58, %v480_v36  ;;  %v10296_v49 = vsel %vm897_vm2, 0.0, %v963_v3  ;;  %v13564_v53 = vmax.f32 %v10286_v41, 0.0 }
 0x141   :  { %13757 = vst [vmem:[#allocation15_spill] sm:$0xff] %v10293_v45  ;;  %v626_v51 = vmax.f32 %v590_v39, %v602_v35  ;;  %v674_v52 = vmax.f32 %v590_v39, %v650_v30  ;;  %v10302_v55 = vrot.slane %v10254_v1, 4  ;;  %v13561_v57 = vrot.slane %v10257_v2, 1 }
 0x142   :  { %v965_v40 = vrot.slane %v10245_v46, 6  ;;  %v10310_v22 = vrot.slane %v10257_v2, 2  ;;  %v10313_v61 = vrot.slane %v10257_v2, 3  ;;  %v722_v62 = vmax.f32 %v710_v38, %v650_v30 }
 0x143   :  { %v10299_v54 = vpop.f32.mrb[38].mxu0  ;;  %v13558_v0 = vrot.slane %v10254_v1, 1  ;;  %v746_v3 = vrot.slane %v626_v51, 1  ;;  %v13557_v7 = vrot.slane %v10296_v49, 1  ;;  %v10318_v11 = vrot.slane %v10254_v1, 2 }
 0x144   :  { %v10307_v58 = vpop.f32.mrb[39].mxu0  ;;  %v10321_v13 = vrot.slane %v10296_v49, 2  ;;  %v10324_v46 = vrot.slane %v10296_v49, 4  ;;  %v964_v24 = vrot.slane %v10208_v60, 6  ;;  %v770_v26 = vrot.slane %v626_v51, 2 }
 0x145   :  { %v10329_v28 = vmax.f32 %v511_v42, %v13564_v53  ;;  %v10334_v19 = vsel %vm897_vm2, 0.0, %v965_v40  ;;  %v806_v18 = vrot.slane %v674_v52, 3  ;;  %v891_v23 = vsel %vm884_vm1, %v626_v51, %v746_v3 }
 0x146   :  { %v1155_v30 = vrot.slane %v10254_v1, 3  ;;  %v842_v6 = vrot.slane %v722_v62, 4  ;;  %v866_v34 = vrot.slane %v722_v62, 5  ;;  %v904_v60 = vsel %vm897_vm2, %v891_v23, %v770_v26 }
 0x147   :  { %v10331_v29 = vpop.f32.mrb[40].mxu0  ;;  %v1156_v35 = vrot.slane %v10296_v49, 3  ;;  %v917_v50 = vsel %vm910_vm3, %v904_v60, %v806_v18  ;;  %v1165_v36 = vsel %vm884_vm1, %v13558_v0, %v10318_v11  ;;  %v1166_v38 = vsel %vm884_vm1, %v13557_v7, %v10321_v13 }
 0x148   :  { %v10338_v31 = vpop.f32.mrb[41].mxu0  ;;  %v10353_v39 = vsel %vm884_vm1, %v10318_v11, %v1155_v30  ;;  %v13568_v42 = vrot.slane %v10334_v19, 1  ;;  %v930_v51 = vsel %vm923_vm4, %v917_v50, %v842_v6  ;;  %v1170_v52 = vsel %vm897_vm2, %v1165_v36, %v1155_v30 }
 0x149   :  { %v1171_v40 = vsel %vm897_vm2, %v1166_v38, %v1156_v35  ;;  %v10362_v3 = vsel %vm936_vm5, %v930_v51, %v866_v34  ;;  %v1208_v26 = vrot.slane %v1170_v52, %v10132_v59  ;;  %v10368_v23 = vsel %vm884_vm1, %v10321_v13, %v1156_v35 }
 0x14a   :  { %v1231_v18 = vrot.slane %v1171_v40, %v10132_v59  ;;  %v10373_v6 = vrot.slane %v10334_v19, 2  ;;  %v10376_v50 = vrot.slane %v10334_v19, 3  ;;  %v10380_v34 = vsel %vm884_vm1, %v1155_v30, %v10302_v55 }
 0x14b   :  { %v10359_v62 = vpop.f32.mrb[42].mxu0  ;;  %13760 = vst [vmem:[#allocation18_spill] sm:$0xff] %v10380_v34  ;;  %v10384_v36 = vsel %vm884_vm1, %v1156_v35, %v10324_v46  ;;  %v1209_v38 = vcombine.high %v1208_v26, %v1208_v26  ;;  %v10387_v51 = vrot.slane %v1208_v26, %v10132_v59  ;;  %v10396_v56 = vsel %vm884_vm1, %v10257_v2, %v13561_v57 }
 0x14c   :  { %v10370_v60 = vpop.f32.mrb[43].mxu0  ;;  %13758 = vst [vmem:[#allocation16_spill] sm:$0xff] %v10373_v6  ;;  %13759 = vst [vmem:[#allocation17_spill] sm:$0xff] %v10376_v50  ;;  %v1232_v52 = vcombine.high %v1231_v18, %v1231_v18  ;;  %v10390_v40 = vrot.slane %v1231_v18, %v10132_v59  ;;  %v10399_v30 = vrot.slane %v10257_v2, 4  ;;  %v10422_v35 = vsel %vm897_vm2, 0.0, %v964_v24 }
 0x14d   :  { %13761 = vst [vmem:[#allocation19_spill] sm:$0xff] %v10384_v36  ;;  %13762 = vst [vmem:[#allocation20_spill] sm:$0xff] %v10387_v51  ;;  %v10406_v26 = vrot.slane %v1209_v38, %v10132_v59  ;;  %v10410_v18 = vcombine.high %v10387_v51, %v10387_v51  ;;  %v687_v7 = vrot.slane %v10329_v28, 1  ;;  %v1298_v38 = vcombine.low %v10188_v12, %v10387_v51 }
 0x14e   :  { %13763 = vst [vmem:[#allocation21_spill] sm:$0xff] %v10390_v40  ;;  %13764 = vst [vmem:[#allocation22_spill] sm:$0xff] %v10396_v56  ;;  %v10413_v15 = vrot.slane %v1232_v52, %v10132_v59  ;;  %v10417_v57 = vcombine.high %v10390_v40, %v10390_v40  ;;  %v4503_v52 = vsel %vm884_vm1, %v13568_v42, %v10373_v6  ;;  %v10462_v42 = vrot.slane %v10422_v35, 3 }
 0x14f   :  { %13765 = vst [vmem:[#allocation23_spill] sm:$0xff] %v10399_v30  ;;  %v10403_v0 = vpop.f32.mrb[44].mxu0  ;;  %13766 = vst [vmem:[#allocation24_spill] sm:$0xff] %v10406_v26  ;;  %v1299_v48 = vcombine.low %v10406_v26, %v10410_v18  ;;  %v4505_v24 = vsel %vm897_vm2, %v4503_v52, %v10376_v50  ;;  %v360_v47 = vadd.f32 %v10113_v21, %v10260_v8  ;;  %v651_v8 = vrot.slane %v10329_v28, 2 }
 0x150   :  { %13767 = vst [vmem:[#allocation25_spill] sm:$0xff] %v10410_v18  ;;  %13768 = vst [vmem:[#allocation26_spill] sm:$0xff] %v10413_v15  ;;  %v10419_v16 = vpop.f32.mrb[45].mxu0  ;;  %v1300_v53 = vcombine.low %v10390_v40, %v10413_v15  ;;  %v1314_v30 = vrot.slane %v1298_v38, %v10132_v59  ;;  %v10441_v56 = vrot.slane %v4505_v24, %v10132_v59  ;;  %v10459_v24 = vrot.slane %v10422_v35, 2 }
 0x151   :  { %v1321_v52 = vrot.slane %v1299_v48, %v10132_v59  ;;  %13772 = vst [vmem:[#allocation30_spill] sm:$0xff] %v10462_v42  ;;  %v10470_v48 = vrot.slane %v10422_v35, 4  ;;  %v482_v40 = vmax.f32 %v360_v47, 0.0  ;;  %v13776_v51 = vmax.f32 %v10286_v41, 0.0 }
 0x152   :  { %13769 = vst [vmem:[#allocation27_spill] sm:$0xff] %v10441_v56  ;;  %v10452_v50 = vrot.slane %v1300_v53, %v10132_v59  ;;  %13771 = vst [vmem:[#allocation29_spill] sm:$0xff] %v10459_v24  ;;  %v1329_v6 = vcombine.low %v10211_v5, %v1314_v30  ;;  %v10467_v36 = vrot.slane %v10441_v56, %v10132_v59 }
 0x153   :  { %v10447_v25 = vpop.f32.mrb[46].mxu0  ;;  %13774 = vst [vmem:[#allocation32_spill] sm:$0xff] %v10470_v48  ;;  %v711_v24 = vmax.f32 %v10329_v28, %v687_v7  ;;  %v375_v30 = vadd.f32 %v10267_v32, %v10113_v21  ;;  %v370_v53 = vadd.f32 %v10113_v21, %v10280_v27  ;;  %v514_v47 = vmax.f32 %v10288_v43, %v482_v40 }
 0x154   :  { %13770 = vst [vmem:[#allocation28_spill] sm:$0xff] %v10452_v50  ;;  %v10456_v38 = vpop.f32.mrb[47].mxu0  ;;  %13773 = vst [vmem:[#allocation31_spill] sm:$0xff] %v10467_v36  ;;  %v1330_v15 = vcombine.low %v1321_v52, %v10452_v50  ;;  %v7022_v42 = vcombine.low %v10417_v57, %v10467_v36  ;;  %v1337_v18 = vrot.slane %v1329_v6, %v10132_v59 }
 0x155   :  { %v385_v52 = vadd.f32 %v10299_v54, %v10113_v21  ;;  %v485_v32 = vmax.f32 %v375_v30, 0.0  ;;  %v380_v36 = vadd.f32 %v10113_v21, %v10307_v58  ;;  %v484_v34 = vmax.f32 %v370_v53, 0.0 }
 0x156   :  { %v1344_v48 = vrot.slane %v1330_v15, %v10132_v59  ;;  %v10491_v28 = vrot.slane %v7022_v42, %v10132_v59  ;;  %v723_v27 = vmax.f32 %v711_v24, %v651_v8  ;;  %v567_v26 = vrot.slane %v514_v47, 1 }
 0x157   :  { %v10480_v5 = vpop.f32.mrb[48].mxu0  ;;  %v487_v12 = vmax.f32 %v385_v52, 0.0  ;;  %v519_v42 = vmax.f32 %v13776_v51, %v485_v32  ;;  %v518_v43 = vmax.f32 %v482_v40, %v484_v34  ;;  %v486_v30 = vmax.f32 %v380_v36, 0.0 }
 0x158   :  { %v10488_v7 = vpop.f32.mrb[49].mxu0  ;;  %13775 = vst [vmem:[#allocation33_spill] sm:$0xff] %v10491_v28  ;;  %v1345_v15 = vcombine.low %v1337_v18, %v1344_v48  ;;  %v395_v58 = vadd.f32 %v10331_v29, %v10113_v21  ;;  %v390_v18 = vadd.f32 %v10113_v21, %v10338_v31  ;;  %v591_v48 = vmax.f32 %v514_v47, %v567_v26 }
 0x159   :  { %v603_v53 = vrot.slane %v514_v47, 2  ;;  %v523_v52 = vmax.f32 %v519_v42, %v487_v12  ;;  %v405_v41 = vadd.f32 %v10359_v62, %v10113_v21  ;;  %v13777_v51 = vpack.c.bf16 %v10277_v17, %v10272_v33 }
 0x15a   :  { %8999 = vmatmul.mubr.msk.f32.vlgmr.msra.gmra.mrb[0].mxu1 %vm1410_vm6, %v1345_v15  ;;  %v522_v34 = vmax.f32 %v518_v43, %v486_v30  ;;  %v489_v36 = vmax.f32 %v395_v58, 0.0  ;;  %v488_v40 = vmax.f32 %v390_v18, 0.0  ;;  %v400_v29 = vadd.f32 %v10113_v21, %v10370_v60 }
 0x15b   :  { %v10501_v4 = vpop.f32.mrb[50].mxu0  ;;  %9391 = vmatpush3.bf16.msra.mxu1 %v13777_v51  ;;  %v13778_v32 = vmov 0.0   ;;  %v13779_v31 = vmov 0.0|0.0   ;;  %v843_v26 = vrot.slane %v723_v27, 4  ;;  %v627_v47 = vmax.f32 %v591_v48, %v603_v53 }
 0x15c   :  { %v10508_v24 = vpop.f32.mrb[51].mxu0  ;;  %9001 = vmatprep.mubr.msk.f32.mxu1 %vm9805_vm0, %v13778_v32  ;;  %9392 = vmatprep.subr.bf16.mxu1 %v13779_v31  ;;  %v675_v15 = vmax.f32 %v591_v48, %v651_v8  ;;  %v688_v42 = vrot.slane %v523_v52, 1  ;;  %v867_v62 = vrot.slane %v723_v27, 5  ;;  %v568_v54 = vrot.slane %v522_v34, 1 }
 0x15d   :  { %v527_v6 = vmax.f32 %v487_v12, %v489_v36  ;;  %v526_v33 = vmax.f32 %v486_v30, %v488_v40  ;;  %v747_v17 = vrot.slane %v627_v47, 1  ;;  %v771_v43 = vrot.slane %v627_v47, 2 }
 0x15e   :  { %v652_v58 = vrot.slane %v523_v52, 2  ;;  %v712_v18 = vmax.f32 %v523_v52, %v688_v42  ;;  %v592_v51 = vmax.f32 %v522_v34, %v568_v54  ;;  %v604_v28 = vrot.slane %v522_v34, 2 }
 0x15f   :  { %v491_v60 = vmax.f32 %v405_v41, 0.0  ;;  %v490_v50 = vmax.f32 %v400_v29, 0.0  ;;  %v807_v56 = vrot.slane %v675_v15, 3  ;;  %v892_v10 = vsel %vm884_vm1, %v627_v47, %v747_v17 }
 0x160   :  { %v724_v31 = vmax.f32 %v712_v18, %v652_v58  ;;  %v415_v8 = vadd.f32 %v10403_v0, %v10113_v21  ;;  %v905_v27 = vsel %vm897_vm2, %v892_v10, %v771_v43  ;;  %v628_v48 = vmax.f32 %v592_v51, %v604_v28 }
 0x161   :  { %v676_v12 = vmax.f32 %v592_v51, %v652_v58  ;;  %v531_v30 = vmax.f32 %v527_v6, %v491_v60  ;;  %v918_v53 = vsel %vm910_vm3, %v905_v27, %v807_v56  ;;  %v530_v36 = vmax.f32 %v526_v33, %v490_v50 }
 0x162   :  { %v410_v54 = vadd.f32 %v10113_v21, %v10419_v16  ;;  %v425_v52 = vadd.f32 %v10447_v25, %v10113_v21  ;;  %v931_v41 = vsel %vm923_vm4, %v918_v53, %v843_v26  ;;  %v844_v34 = vrot.slane %v724_v31, 4 }
 0x163   :  { %v748_v40 = vrot.slane %v628_v48, 1  ;;  %v772_v29 = vrot.slane %v628_v48, 2  ;;  %v10531_v0 = vsel %vm936_vm5, %v931_v41, %v867_v62  ;;  %v808_v10 = vrot.slane %v676_v12, 3 }
 0x164   :  { %v689_v28 = vrot.slane %v531_v30, 1  ;;  %v569_v6 = vrot.slane %v530_v36, 1  ;;  %v653_v47 = vrot.slane %v531_v30, 2  ;;  %v605_v15 = vrot.slane %v530_v36, 2 }
 0x165   :  { %v893_v56 = vsel %vm884_vm1, %v628_v48, %v748_v40  ;;  %v493_v42 = vmax.f32 %v415_v8, 0.0  ;;  %v492_v17 = vmax.f32 %v410_v54, 0.0  ;;  %v868_v26 = vrot.slane %v724_v31, 5 }
 0x166   :  { %v906_v16 = vsel %vm897_vm2, %v893_v56, %v772_v29  ;;  %v713_v33 = vmax.f32 %v531_v30, %v689_v28  ;;  %v593_v25 = vmax.f32 %v530_v36, %v569_v6  ;;  %v495_v18 = vmax.f32 %v425_v52, 0.0 }
 0x167   :  { %v919_v43 = vsel %vm910_vm3, %v906_v16, %v808_v10  ;;  %v535_v58 = vmax.f32 %v491_v60, %v493_v42  ;;  %v534_v53 = vmax.f32 %v490_v50, %v492_v17  ;;  %v420_v8 = vadd.f32 %v10113_v21, %v10456_v38 }
 0x168   :  { %v932_v62 = vsel %vm923_vm4, %v919_v43, %v844_v34  ;;  %v725_v51 = vmax.f32 %v713_v33, %v653_v47  ;;  %v629_v27 = vmax.f32 %v593_v25, %v605_v15  ;;  %v677_v12 = vmax.f32 %v593_v25, %v653_v47 }
 0x169   :  { %v945_v48 = vsel %vm936_vm5, %v932_v62, %v868_v26  ;;  %v539_v41 = vmax.f32 %v535_v58, %v495_v18  ;;  %v13780_v30 = vrot.slane %v10422_v35, 1  ;;  %v10547_v60 = vrot.slane %v10334_v19, 4 }
 0x16a   :  { %v969_v36 = vrot.slane %v945_v48, 6  ;;  %v749_v54 = vrot.slane %v629_v27, 1  ;;  %v13781_v52 = vrot.slane %v10334_v19, 1  ;;  %v966_v34 = vrot.slane %v10283_v37, 6 }
 0x16b   :  { %v10544_v31 = vsel %vm884_vm1, %v10422_v35, %v13780_v30  ;;  %v773_v38 = vrot.slane %v629_v27, 2  ;;  %v690_v40 = vrot.slane %v539_v41, 1  ;;  %v654_v10 = vrot.slane %v539_v41, 2 }
 0x16c   :  { %v10553_v50 = vsel %vm884_vm1, %v10334_v19, %v13781_v52  ;;  %v894_v29 = vsel %vm884_vm1, %v629_v27, %v749_v54  ;;  %v494_v28 = vmax.f32 %v420_v8, 0.0  ;;  %v435_v6 = vadd.f32 %v10480_v5, %v10113_v21  ;;  %v9779_v52 = vld [vmem:[%s13545_s3] ss:$0 sm:$0xff] }
 0x16d   :  { %v13782_v56 = vrot.slane %v10362_v3, 6  ;;  %v845_v15 = vrot.slane %v725_v51, 4  ;;  %v869_v42 = vrot.slane %v725_v51, 5  ;;  %v809_v16 = vrot.slane %v677_v12, 3 }
 0x16e   :  { %v10565_v33 = vsel %vm897_vm2, 0.0, %v969_v36  ;;  %v907_v25 = vsel %vm897_vm2, %v894_v29, %v773_v38  ;;  %v714_v17 = vmax.f32 %v539_v41, %v690_v40  ;;  %v538_v26 = vmax.f32 %v534_v53, %v494_v28 }
 0x16f   :  { %v10562_v47 = vsel %vm897_vm2, 0.0, %v13782_v56  ;;  %v920_v43 = vsel %vm910_vm3, %v907_v25, %v809_v16  ;;  %v497_v58 = vmax.f32 %v435_v6, 0.0  ;;  %v430_v5 = vadd.f32 %v10113_v21, %v10488_v7 }
 0x170   :  { %v445_v3 = vadd.f32 %v10501_v4, %v10113_v21  ;;  %v933_v62 = vsel %vm923_vm4, %v920_v43, %v845_v15  ;;  %v726_v51 = vmax.f32 %v714_v17, %v654_v10  ;;  %v570_v27 = vrot.slane %v538_v26, 1 }
 0x171   :  { %v606_v12 = vrot.slane %v538_v26, 2  ;;  %v10575_v48 = vsel %vm936_vm5, %v933_v62, %v869_v42  ;;  %v543_v8 = vmax.f32 %v495_v18, %v497_v58  ;;  %v496_v41 = vmax.f32 %v430_v5, 0.0 }
 0x172   :  { %v499_v53 = vmax.f32 %v445_v3, 0.0  ;;  %v1006_v30 = vrot.slane %v10565_v33, 1  ;;  %v10579_v36 = vrot.slane %v10565_v33, 2  ;;  %v10582_v7 = vrot.slane %v10565_v33, 3 }
 0x173   :  { %v594_v21 = vmax.f32 %v538_v26, %v570_v27  ;;  %v542_v4 = vmax.f32 %v494_v28, %v496_v41  ;;  %v440_v38 = vadd.f32 %v9779_v52, %v10508_v24  ;;  %v1005_v18 = vrot.slane %v10562_v47, 1 }
 0x174   :  { %v547_v54 = vmax.f32 %v543_v8, %v499_v53  ;;  %v846_v40 = vrot.slane %v726_v51, 4  ;;  %v10590_v56 = vrot.slane %v10562_v47, 2  ;;  %v10593_v28 = vrot.slane %v10562_v47, 3 }
 0x175   :  { %v630_v29 = vmax.f32 %v594_v21, %v606_v12  ;;  %v678_v6 = vmax.f32 %v594_v21, %v654_v10  ;;  %v498_v16 = vmax.f32 %v440_v38, 0.0  ;;  %v1168_v10 = vsel %vm884_vm1, %v1006_v30, %v10579_v36 }
 0x176   :  { %v655_v15 = vrot.slane %v547_v54, 2  ;;  %v691_v42 = vrot.slane %v547_v54, 1  ;;  %v1167_v24 = vsel %vm884_vm1, %v1005_v18, %v10590_v56  ;;  %v870_v3 = vrot.slane %v726_v51, 5 }
 0x177   :  { %v750_v25 = vrot.slane %v630_v29, 1  ;;  %v774_v17 = vrot.slane %v630_v29, 2  ;;  %v810_v26 = vrot.slane %v678_v6, 3  ;;  %v546_v58 = vmax.f32 %v542_v4, %v498_v16 }
 0x178   :  { %v715_v43 = vmax.f32 %v547_v54, %v691_v42  ;;  %v1172_v5 = vsel %vm897_vm2, %v1167_v24, %v10593_v28  ;;  %v1173_v27 = vsel %vm897_vm2, %v1168_v10, %v10582_v7  ;;  %v1346_v21 = vcombine.low %v10417_v57, %v10171_v44 }
 0x179   :  { %v895_v62 = vsel %vm884_vm1, %v630_v29, %v750_v25  ;;  %v1254_v12 = vrot.slane %v1172_v5, %v10132_v59  ;;  %v571_v41 = vrot.slane %v546_v58, 1  ;;  %v607_v53 = vrot.slane %v546_v58, 2 }
 0x17a   :  { %v908_v8 = vsel %vm897_vm2, %v895_v62, %v774_v17  ;;  %v1277_v51 = vrot.slane %v1173_v27, %v10132_v59  ;;  %v13784_v38 = vrot.slane %v10254_v1, 1  ;;  %v727_v42 = vmax.f32 %v715_v43, %v655_v15 }
 0x17b   :  { %v921_v4 = vsel %vm910_vm3, %v908_v8, %v810_v26  ;;  %v1255_v54 = vcombine.high %v1254_v12, %v1254_v12  ;;  %v10614_v52 = vrot.slane %v1254_v12, %v10132_v59  ;;  %v595_v16 = vmax.f32 %v546_v58, %v571_v41 }
 0x17c   :  { %v1023_v29 = vsel %vm884_vm1, %v10254_v1, %v13784_v38  ;;  %v934_v6 = vsel %vm923_vm4, %v921_v4, %v846_v40  ;;  %v10633_v24 = vrot.slane %v1277_v51, %v10132_v59  ;;  %v13788_v10 = vrot.slane %v10296_v49, 1 }
 0x17d   :  { %13783 = vst [vmem:[#allocation34_spill] sm:$0xff] %v10614_v52  ;;  %v10623_v25 = vsel %vm936_vm5, %v934_v6, %v870_v3  ;;  %v10626_v17 = vrot.slane %v1255_v54, %v10132_v59  ;;  %v10630_v26 = vcombine.high %v10614_v52, %v10614_v52  ;;  %v631_v43 = vmax.f32 %v595_v16, %v607_v53 }
 0x17e   :  { %13787 = vst [vmem:[#allocation37_spill] sm:$0xff] %v10633_v24  ;;  %v1024_v40 = vsel %vm884_vm1, %v10296_v49, %v13788_v10  ;;  %v679_v58 = vmax.f32 %v595_v16, %v655_v15  ;;  %v1356_v5 = vrot.slane %v1346_v21, %v10132_v59  ;;  %v1278_v27 = vcombine.high %v1277_v51, %v1277_v51 }
 0x17f   :  { %13785 = vst [vmem:[#allocation35_spill] sm:$0xff] %v10626_v17  ;;  %13786 = vst [vmem:[#allocation36_spill] sm:$0xff] %v10630_v26  ;;  %v1348_v3 = vcombine.low %v10614_v52, %v10626_v17  ;;  %v1349_v62 = vcombine.low %v10630_v26, %v10633_v24  ;;  %v10646_v12 = vcombine.high %v10633_v24, %v10633_v24  ;;  %v847_v8 = vrot.slane %v727_v42, 4  ;;  %v13808_v52 = vld [vmem:[#allocation12_spill] sm:$0xff] }
 0x180   :  { %v751_v41 = vrot.slane %v631_v43, 1  ;;  %v775_v4 = vrot.slane %v631_v43, 2  ;;  %v811_v54 = vrot.slane %v679_v58, 3  ;;  %v1378_v21 = vcombine.low %v1356_v5, %v10219_v9 }
 0x181   :  { %13789 = vst [vmem:[#allocation38_spill] sm:$0xff] %v10646_v12  ;;  %v1370_v53 = vrot.slane %v1348_v3, %v10132_v59  ;;  %v1377_v15 = vrot.slane %v1349_v62, %v10132_v59  ;;  %v10652_v38 = vrot.slane %v1278_v27, %v10132_v59  ;;  %v871_v6 = vrot.slane %v727_v42, 5 }
 0x182   :  { %v896_v51 = vsel %vm884_vm1, %v631_v43, %v751_v41  ;;  %v1028_v16 = vsel %vm897_vm2, %v1023_v29, %v10318_v11  ;;  %v1029_v10 = vsel %vm897_vm2, %v1024_v40, %v10321_v13  ;;  %v10662_v58 = vsel %vm897_vm2, 0.0, %v966_v34 }
 0x183   :  { %13790 = vst [vmem:[#allocation39_spill] sm:$0xff] %v10652_v38  ;;  %13791 = vst [vmem:[#allocation40_spill] sm:$0xff] %v10662_v58  ;;  %v909_v3 = vsel %vm897_vm2, %v896_v51, %v775_v4  ;;  %v1379_v5 = vcombine.low %v1370_v53, %v1377_v15  ;;  %v1395_v62 = vcombine.low %v10652_v38, %v10646_v12 }
 0x184   :  { %v922_v42 = vsel %vm910_vm3, %v909_v3, %v811_v54  ;;  %v1386_v43 = vrot.slane %v1378_v21, %v10132_v59  ;;  %v1066_v11 = vrot.slane %v1028_v16, %v10132_v59  ;;  %v1089_v29 = vrot.slane %v1029_v10, %v10132_v59 }
 0x185   :  { %v935_v13 = vsel %vm923_vm4, %v922_v42, %v847_v8  ;;  %v1393_v37 = vrot.slane %v1379_v5, %v10132_v59  ;;  %v1025_v34 = vsel %vm884_vm1, %v10562_v47, %v1005_v18  ;;  %v1026_v40 = vsel %vm884_vm1, %v10565_v33, %v1006_v30 }
 0x186   :  { %v10682_v27 = vsel %vm936_vm5, %v935_v13, %v871_v6  ;;  %v1067_v41 = vcombine.high %v1066_v11, %v1066_v11  ;;  %v10685_v4 = vrot.slane %v1066_v11, %v10132_v59  ;;  %v1090_v8 = vcombine.high %v1089_v29, %v1089_v29 }
 0x187   :  { %13792 = vst [vmem:[#allocation41_spill] sm:$0xff] %v10682_v27  ;;  %v13592_v54 = vrot.slane %v10662_v58, 1  ;;  %v1394_v53 = vcombine.low %v1386_v43, %v1393_v37  ;;  %v10689_v15 = vrot.slane %v1395_v62, %v10132_v59  ;;  %v10692_v18 = vrot.slane %v1089_v29, %v10132_v59 }
 0x188   :  { %13793 = vst [vmem:[#allocation42_spill] sm:$0xff] %v10685_v4  ;;  %v10695_v21 = vrot.slane %v1067_v41, %v10132_v59  ;;  %v10699_v30 = vcombine.high %v10685_v4, %v10685_v4  ;;  %v10702_v6 = vrot.slane %v1090_v8, %v10132_v59  ;;  %v1498_v51 = vcombine.low %v10249_v63, %v10685_v4 }
 0x189   :  { %13794 = vst [vmem:[#allocation43_spill] sm:$0xff] %v10689_v15  ;;  %v13797_v16 = vrot.slane %v10257_v2, 1  ;;  %9002 = vmatmul.mubr.msk.f32.gmra.mrb[2].mxu1 %vm1410_vm6, %v1394_v53  ;;  %v1030_v3 = vsel %vm897_vm2, %v1025_v34, %v10590_v56  ;;  %v1031_v5 = vsel %vm897_vm2, %v1026_v40, %v10579_v36  ;;  %v10717_v62 = vcombine.high %v10692_v18, %v10692_v18 }
 0x18a   :  { %13795 = vst [vmem:[#allocation44_spill] sm:$0xff] %v10695_v21  ;;  %13796 = vst [vmem:[#allocation45_spill] sm:$0xff] %v10702_v6  ;;  %9004 = vmatprep.mubr.msk.f32.mxu1 %vm9805_vm0, %v13778_v32  ;;  %v1499_v42 = vcombine.low %v10695_v21, %v10699_v30  ;;  %v1500_v43 = vcombine.low %v10692_v18, %v10702_v6  ;;  %v1514_v11 = vrot.slane %v1498_v51, %v10132_v59 }
 0x18b   :  { %v3044_v10 = vsel %vm884_vm1, %v13797_v16, %v10310_v22  ;;  %13798 = vst [vmem:[#allocation46_spill] sm:$0xff] %v10717_v62  ;;  %v1112_v29 = vrot.slane %v1030_v3, %v10132_v59  ;;  %v1409_v13 = vrot.slane %v10689_v15, %v10132_v59  ;;  %v1135_v37 = vrot.slane %v1031_v5, %v10132_v59 }
 0x18c   :  { %v1546_v34 = vcombine.low %v10717_v62, %v10227_v14  ;;  %v1547_v40 = vcombine.low %v10230_v20, %v10249_v63  ;;  %v1521_v41 = vrot.slane %v1499_v42, %v10132_v59  ;;  %v10736_v8 = vrot.slane %v1500_v43, %v10132_v59 }
 0x18d   :  { %v1529_v53 = vcombine.low %v10293_v45, %v1514_v11  ;;  %v1113_v51 = vcombine.high %v1112_v29, %v1112_v29  ;;  %9005 = vmatmul.mubr.msk.f32.gmra.mrb[4].mxu1 %vm1410_vm6, %v1409_v13  ;;  %v10741_v16 = vrot.slane %v1112_v29, %v10132_v59  ;;  %v10744_v3 = vrot.slane %v1135_v37, %v10132_v59  ;;  %v8518_v29 = vld [vmem:[%s13546_s4 + $0x20] sm:$0xff]  ;;  %v8519_v13 = vld [vmem:[%s13546_s4 + $0x28] sm:$0xff] }
 0x18e   :  { %13799 = vst [vmem:[#allocation47_spill] sm:$0xff] %v10736_v8  ;;  %v1556_v5 = vrot.slane %v1546_v34, %v10132_v59  ;;  %v10748_v20 = vrot.slane %v1547_v40, %v10132_v59  ;;  %v10754_v42 = vsel %vm884_vm1, %v10662_v58, %v13592_v54  ;;  %v3048_v43 = vsel %vm897_vm2, %v3044_v10, %v10313_v61 }
 0x18f   :  { %13800 = vst [vmem:[#allocation48_spill] sm:$0xff] %v10741_v16  ;;  %13801 = vst [vmem:[#allocation49_spill] sm:$0xff] %v10744_v3  ;;  %9011 = vmatprep.mubr.msk.f32.mxu1 %vm9805_vm0, %v13778_v32  ;;  %v1530_v11 = vcombine.low %v1521_v41, %v10736_v8  ;;  %v10768_v34 = vrot.slane %v1113_v51, %v10132_v59  ;;  %v1537_v40 = vrot.slane %v1529_v53, %v10132_v59 }
 0x190   :  { %13802 = vst [vmem:[#allocation50_spill] sm:$0xff] %v10748_v20  ;;  %13803 = vst [vmem:[#allocation51_spill] sm:$0xff] %v10754_v42  ;;  %v10773_v10 = vcombine.high %v10741_v16, %v10741_v16  ;;  %v1136_v54 = vcombine.high %v1135_v37, %v1135_v37  ;;  %v1578_v42 = vcombine.low %v1556_v5, %v10748_v20  ;;  %v11091_v21 = vrot.slane %v13778_v32, 6 }
 0x191   :  { %13804 = vst [vmem:[#allocation52_spill] sm:$0xff] %v10768_v34  ;;  %v1544_v15 = vrot.slane %v1530_v11, %v10132_v59  ;;  %v1548_v8 = vcombine.low %v10741_v16, %v10768_v34  ;;  %v10783_v51 = vcombine.high %v10744_v3, %v10744_v3  ;;  %v9393_v53 = vpack.c.bf16 %v8519_v13, %v8518_v29 }
 0x192   :  { %13805 = vst [vmem:[#allocation53_spill] sm:$0xff] %v10773_v10  ;;  %v1549_v27 = vcombine.low %v10773_v10, %v10744_v3  ;;  %v10788_v12 = vrot.slane %v1136_v54, %v10132_v59  ;;  %v1712_v37 = vsel %vm897_vm2, %v10353_v39, %v10302_v55  ;;  %v10794_v11 = vrot.slane %v3048_v43, %v10132_v59 }
 0x193   :  { %13806 = vst [vmem:[#allocation54_spill] sm:$0xff] %v10783_v51  ;;  %v1545_v41 = vcombine.low %v1537_v40, %v1544_v15  ;;  %v1570_v5 = vrot.slane %v1548_v8, %v10132_v59  ;;  %v1713_v29 = vsel %vm897_vm2, %v10368_v23, %v10324_v46  ;;  %v1727_v24 = vrot.slane %v13808_v52, %v10132_v59 }
 0x194   :  { %13807 = vst [vmem:[#allocation55_spill] sm:$0xff] %v10788_v12  ;;  %v1577_v13 = vrot.slane %v1549_v27, %v10132_v59  ;;  %v1595_v54 = vcombine.low %v10788_v12, %v10783_v51  ;;  %v1750_v39 = vrot.slane %v1712_v37, %v10132_v59  ;;  %v10807_v43 = vrot.slane %v10565_v33, 4 }
 0x195   :  { %9012 = vmatmul.mubr.msk.f32.vlgmr.msra.gmra.mrb[0].mxu1 %vm1410_vm6, %v1545_v41  ;;  %v1586_v15 = vrot.slane %v1578_v42, %v10132_v59  ;;  %v1773_v8 = vrot.slane %v1713_v29, %v10132_v59  ;;  %v1709_v23 = vsel %vm884_vm1, %v10590_v56, %v10593_v28  ;;  %v1728_v40 = vcombine.high %v1727_v24, %v1727_v24 }
 0x196   :  { %9394 = vmatpush3.bf16.msra.mxu1 %v9393_v53  ;;  %9014 = vmatprep.mubr.msk.f32.mxu1 %vm9805_vm0, %v13778_v32  ;;  %v1579_v52 = vcombine.low %v1570_v5, %v1577_v13  ;;  %v10818_v27 = vrot.slane %v1595_v54, %v10132_v59  ;;  %v10821_v37 = vrot.slane %v10562_v47, 4  ;;  %v13810_v41 = vmov 0.0|0.0  }
 0x197   :  { %9395 = vmatprep.subr.bf16.mxu1 %v13810_v41  ;;  %v10825_v42 = vrot.slane %v1727_v24, %v10132_v59  ;;  %v1751_v29 = vcombine.high %v1750_v39, %v1750_v39  ;;  %v10828_v56 = vrot.slane %v1750_v39, %v10132_v59  ;;  %v1774_v53 = vcombine.high %v1773_v8, %v1773_v8 }
 0x198   :  { %13809 = vst [vmem:[#allocation12_spill] sm:$0xff] %v10818_v27  ;;  %v1593_v38 = vrot.slane %v1579_v52, %v10132_v59  ;;  %v1609_v5 = vrot.slane %v10818_v27, %v10132_v59  ;;  %v1742_v13 = vrot.slane %v1728_v40, %v10132_v59  ;;  %v10835_v54 = vrot.slane %v1773_v8, %v10132_v59 }
 0x199   :  { %13811 = vst [vmem:[#allocation56_spill] sm:$0xff] %v10825_v42  ;;  %13812 = vst [vmem:[#allocation57_spill] sm:$0xff] %v10828_v56  ;;  %v10839_v17 = vcombine.high %v10825_v42, %v10825_v42  ;;  %v10842_v24 = vrot.slane %v1751_v29, %v10132_v59  ;;  %v10846_v39 = vcombine.high %v10828_v56, %v10828_v56 }
 0x19a   :  { %13813 = vst [vmem:[#allocation58_spill] sm:$0xff] %v10835_v54  ;;  %v10849_v52 = vrot.slane %v1774_v53, %v10132_v59  ;;  %v1594_v27 = vcombine.low %v1586_v15, %v1593_v38  ;;  %v1839_v40 = vcombine.low %v10825_v42, %v1742_v13  ;;  %v1710_v8 = vsel %vm884_vm1, %v10579_v36, %v10582_v7 }
 0x19b   :  { %13814 = vst [vmem:[#allocation59_spill] sm:$0xff] %v10839_v17  ;;  %13815 = vst [vmem:[#allocation60_spill] sm:$0xff] %v10842_v24  ;;  %v1714_v26 = vsel %vm897_vm2, %v1709_v23, %v10821_v37  ;;  %v1840_v29 = vcombine.low %v10839_v17, %v10828_v56  ;;  %v1841_v51 = vcombine.low %v10842_v24, %v10846_v39 }
 0x19c   :  { %13816 = vst [vmem:[#allocation61_spill] sm:$0xff] %v10846_v39  ;;  %13817 = vst [vmem:[#allocation62_spill] sm:$0xff] %v10849_v52  ;;  %v1842_v53 = vcombine.low %v10835_v54, %v10849_v52  ;;  %v1715_v38 = vsel %vm897_vm2, %v1710_v8, %v10807_v43  ;;  %9015 = vmatmul.mubr.msk.f32.gmra.mrb[2].mxu1 %vm1410_vm6, %v1594_v27  ;;  %v10867_v15 = vrot.slane %v1839_v40, %v10132_v59 }
 0x19d   :  { %v10871_v36 = vcombine.high %v10835_v54, %v10835_v54  ;;  %v1796_v23 = vrot.slane %v1714_v26, %v10132_v59  ;;  %v1819_v56 = vrot.slane %v1715_v38, %v10132_v59  ;;  %9017 = vmatprep.mubr.msk.f32.mxu1 %vm9805_vm0, %v13778_v32  ;;  %v1856_v24 = vrot.slane %v1840_v29, %v10132_v59 }
 0x19e   :  { %13818 = vst [vmem:[#allocation63_spill] sm:$0xff] %v10867_v15  ;;  %v1863_v8 = vrot.slane %v1841_v51, %v10132_v59  ;;  %v10880_v27 = vrot.slane %v1842_v53, %v10132_v59  ;;  %v1889_v40 = vcombine.low %v1742_v13, %v10839_v17  ;;  %v8523_v51 = vld [vmem:[%s13546_s4 + $0x30] sm:$0xff]  ;;  %v8524_v13 = vld [vmem:[%s13546_s4 + $0x38] sm:$0xff]  ;;  %v10907_v12 = vrot.slane %v10794_v11, %v10132_v59 }
 0x19f   :  { %13819 = vst [vmem:[#allocation64_spill] sm:$0xff] %v10871_v36  ;;  %v1797_v39 = vcombine.high %v1796_v23, %v1796_v23  ;;  %v10884_v54 = vrot.slane %v1796_v23, %v10132_v59  ;;  %v10887_v26 = vrot.slane %v1819_v56, %v10132_v59  ;;  %v1888_v38 = vcombine.low %v10871_v36, %v10825_v42 }
 0x1a0   :  { %13820 = vst [vmem:[#allocation65_spill] sm:$0xff] %v10880_v27  ;;  %v1871_v3 = vcombine.low %v10867_v15, %v1856_v24  ;;  %v1872_v29 = vcombine.low %v1863_v8, %v10880_v27  ;;  %v10900_v53 = vrot.slane %v1889_v40, %v10132_v59  ;;  %v10903_v23 = vrot.slane %v13778_v32, 5  ;;  %13824 = vst [vmem:[#allocation69_spill] sm:$0xff] %v10907_v12 }
 0x1a1   :  { %13821 = vst [vmem:[#allocation66_spill] sm:$0xff] %v10884_v54  ;;  %13822 = vst [vmem:[#allocation67_spill] sm:$0xff] %v10887_v26  ;;  %9018 = vmatmul.mubr.msk.f32.gmra.mrb[4].mxu1 %vm1410_vm6, %v1609_v5  ;;  %v10911_v24 = vrot.slane %v1797_v39, %v10132_v59  ;;  %v10915_v8 = vcombine.high %v10884_v54, %v10884_v54  ;;  %v1898_v27 = vrot.slane %v1888_v38, %v10132_v59 }
 0x1a2   :  { %13823 = vst [vmem:[#allocation68_spill] sm:$0xff] %v10900_v53  ;;  %9024 = vmatprep.mubr.msk.f32.mxu1 %vm9805_vm0, %v13778_v32  ;;  %v1879_v10 = vrot.slane %v1871_v3, %v10132_v59  ;;  %v1886_v16 = vrot.slane %v1872_v29, %v10132_v59  ;;  %v9396_v39 = vpack.c.bf16 %v8524_v13, %v8523_v51  ;;  %v13829_v3 = vld [vmem:[#allocation10_spill] sm:$0xff]  ;;  %v13830_v51 = vld [vmem:[#allocation20_spill] sm:$0xff] }
 0x1a3   :  { %13825 = vst [vmem:[#allocation70_spill] sm:$0xff] %v10911_v24  ;;  %13826 = vst [vmem:[#allocation71_spill] sm:$0xff] %v10915_v8  ;;  %v1890_v58 = vcombine.low %v10884_v54, %v10911_v24  ;;  %v1891_v38 = vcombine.low %v10915_v8, %v10887_v26  ;;  %v1820_v62 = vcombine.high %v1819_v56, %v1819_v56  ;;  %v13831_v13 = vld [vmem:[#allocation24_spill] sm:$0xff]  ;;  %v13835_v56 = vld [vmem:[#allocation7_spill] sm:$0xff] }
 0x1a4   :  { %v1887_v6 = vcombine.low %v1879_v10, %v1886_v16  ;;  %v1920_v34 = vcombine.low %v1898_v27, %v10900_v53  ;;  %v10933_v40 = vcombine.high %v10887_v26, %v10887_v26  ;;  %v2056_v29 = vsel %vm897_vm2, %v13829_v3, %v10903_v23  ;;  %v13837_v26 = vld [vmem:[#allocation18_spill] sm:$0xff] }
 0x1a5   :  { %v13832_v5 = vcombine.low %v13830_v51, %v13831_v13  ;;  %v1912_v24 = vrot.slane %v1890_v58, %v10132_v59  ;;  %v1919_v16 = vrot.slane %v1891_v38, %v10132_v59  ;;  %v10947_v10 = vrot.slane %v1820_v62, %v10132_v59  ;;  %v13839_v51 = vld [vmem:[#allocation19_spill] sm:$0xff] }
 0x1a6   :  { %13828 = vst [vmem:[#allocation72_spill] sm:$0xff] %v10933_v40  ;;  %v3151_v27 = vcombine.low %v13835_v56, %v10907_v12  ;;  %9025 = vmatmul.mubr.msk.f32.vlgmr.msra.gmra.mrb[0].mxu1 %vm1410_vm6, %v1887_v6  ;;  %v13836_v3 = vrot.slane %v10254_v1, 5  ;;  %v2072_v38 = vrot.slane %v2056_v29, %v10132_v59 }
 0x1a7   :  { %v10942_v54 = vrot.slane %v13832_v5, %v10132_v59  ;;  %13834 = vst [vmem:[#allocation20_spill] sm:$0xff] %v10947_v10  ;;  %v13838_v5 = vrot.slane %v10296_v49, 5  ;;  %9397 = vmatpush3.bf16.msra.mxu1 %v9396_v39  ;;  %9027 = vmatprep.mubr.msk.f32.mxu1 %vm9805_vm0, %v13778_v32  ;;  %v1921_v13 = vcombine.low %v1912_v24, %v1919_v16 }
 0x1a8   :  { %v2057_v8 = vsel %vm897_vm2, %v13837_v26, %v13836_v3  ;;  %v1937_v6 = vcombine.low %v10947_v10, %v10933_v40  ;;  %v1928_v26 = vrot.slane %v1920_v34, %v10132_v59  ;;  %9398 = vmatprep.subr.bf16.mxu1 %v13810_v41  ;;  %v2073_v3 = vcombine.high %v2072_v38, %v2072_v38 }
 0x1a9   :  { %13833 = vst [vmem:[#allocation10_spill] sm:$0xff] %v10942_v54  ;;  %v2058_v58 = vsel %vm897_vm2, %v13839_v51, %v13838_v5  ;;  %v2095_v56 = vrot.slane %v2057_v8, %v10132_v59  ;;  %v10970_v5 = vrot.slane %v2072_v38, %v10132_v59  ;;  %v1935_v39 = vrot.slane %v1921_v13, %v10132_v59 }
 0x1aa   :  { %v2118_v29 = vrot.slane %v2058_v58, %v10132_v59  ;;  %v2087_v8 = vrot.slane %v2073_v3, %v10132_v59  ;;  %v10987_v58 = vrot.slane %v1937_v6, %v10132_v59  ;;  %v2054_v6 = vsel %vm884_vm1, %v10593_v28, %v10821_v37 }
 0x1ab   :  { %13840 = vst [vmem:[#allocation24_spill] sm:$0xff] %v10970_v5  ;;  %v2096_v51 = vcombine.high %v2095_v56, %v2095_v56  ;;  %v10975_v24 = vrot.slane %v2095_v56, %v10132_v59  ;;  %v10981_v34 = vcombine.high %v10970_v5, %v10970_v5  ;;  %v1936_v40 = vcombine.low %v1928_v26, %v1935_v39 }
 0x1ac   :  { %v2119_v62 = vcombine.high %v2118_v29, %v2118_v29  ;;  %v10984_v38 = vrot.slane %v2118_v29, %v10132_v59  ;;  %13844 = vst [vmem:[#allocation74_spill] sm:$0xff] %v10987_v58  ;;  %v2184_v16 = vcombine.low %v10970_v5, %v2087_v8  ;;  %v2055_v39 = vsel %vm884_vm1, %v10582_v7, %v10807_v43 }
 0x1ad   :  { %13841 = vst [vmem:[#allocation18_spill] sm:$0xff] %v10975_v24  ;;  %13842 = vst [vmem:[#allocation19_spill] sm:$0xff] %v10981_v34  ;;  %v10990_v13 = vrot.slane %v2096_v51, %v10132_v59  ;;  %v10994_v56 = vcombine.high %v10975_v24, %v10975_v24  ;;  %v2185_v29 = vcombine.low %v10981_v34, %v10975_v24  ;;  %9028 = vmatmul.mubr.msk.f32.gmra.mrb[2].mxu1 %vm1410_vm6, %v1936_v40 }
 0x1ae   :  { %13843 = vst [vmem:[#allocation73_spill] sm:$0xff] %v10984_v38  ;;  %v10997_v3 = vrot.slane %v2119_v62, %v10132_v59  ;;  %v13847_v62 = vrot.slane %v10562_v47, 5  ;;  %v11016_v24 = vcombine.high %v10984_v38, %v10984_v38  ;;  %9030 = vmatprep.mubr.msk.f32.mxu1 %vm9805_vm0, %v13778_v32  ;;  %v11023_v40 = vrot.slane %v2184_v16, %v10132_v59 }
 0x1af   :  { %13845 = vst [vmem:[#allocation75_spill] sm:$0xff] %v10990_v13  ;;  %13846 = vst [vmem:[#allocation76_spill] sm:$0xff] %v10994_v56  ;;  %v2186_v26 = vcombine.low %v10990_v13, %v10994_v56  ;;  %v2201_v56 = vrot.slane %v2185_v29, %v10132_v59  ;;  %v13850_v7 = vrot.slane %v10565_v33, 5  ;;  %v2234_v52 = vcombine.low %v2087_v8, %v10981_v34 }
 0x1b0   :  { %v2059_v51 = vsel %vm897_vm2, %v2054_v6, %v13847_v62  ;;  %13848 = vst [vmem:[#allocation77_spill] sm:$0xff] %v11016_v24  ;;  %v2187_v28 = vcombine.low %v10984_v38, %v10997_v3  ;;  %13849 = vst [vmem:[#allocation78_spill] sm:$0xff] %v11023_v40  ;;  %v1951_v6 = vrot.slane %v10987_v58, %v10132_v59 }
 0x1b1   :  { %v2060_v13 = vsel %vm897_vm2, %v2055_v39, %v13850_v7  ;;  %v2141_v62 = vrot.slane %v2059_v51, %v10132_v59  ;;  %v2233_v36 = vcombine.low %v11016_v24, %v10970_v5  ;;  %v2208_v38 = vrot.slane %v2186_v26, %v10132_v59  ;;  %v13852_v39 = vld [vmem:[#allocation25_spill] sm:$0xff] }
 0x1b2   :  { %v2164_v10 = vrot.slane %v2060_v13, %v10132_v59  ;;  %v11037_v16 = vrot.slane %v2187_v28, %v10132_v59  ;;  %v2216_v29 = vcombine.low %v11023_v40, %v2201_v56  ;;  %v13853_v7 = vld [vmem:[#allocation21_spill] sm:$0xff]  ;;  %9031 = vmatmul.mubr.msk.f32.gmra.mrb[4].mxu1 %vm1410_vm6, %v1951_v6  ;;  %v11055_v28 = vrot.slane %v3151_v27, %v10132_v59 }
 0x1b3   :  { %v13854_v58 = vcombine.low %v13852_v39, %v13853_v7  ;;  %v2142_v13 = vcombine.high %v2141_v62, %v2141_v62  ;;  %v11049_v51 = vrot.slane %v2141_v62, %v10132_v59  ;;  %9037 = vmatprep.mubr.msk.f32.mxu1 %vm9805_vm0, %v13778_v32  ;;  %v8529_v56 = vld [vmem:[%s13546_s4 + $0x48] sm:$0xff]  ;;  %v2243_v6 = vrot.slane %v2233_v36, %v10132_v59 }
 0x1b4   :  { %13851 = vst [vmem:[#allocation79_spill] sm:$0xff] %v11037_v16  ;;  %v11052_v26 = vrot.slane %v2164_v10, %v10132_v59  ;;  %v2217_v8 = vcombine.low %v2208_v38, %v11037_v16  ;;  %v11068_v62 = vrot.slane %v2234_v52, %v10132_v59  ;;  %v968_v27 = vrot.slane %v10531_v0, 6 }
 0x1b5   :  { %v11045_v54 = vrot.slane %v13854_v58, %v10132_v59  ;;  %13856 = vst [vmem:[#allocation21_spill] sm:$0xff] %v11049_v51  ;;  %v8528_v58 = vld [vmem:[%s13546_s4 + $0x40] sm:$0xff]  ;;  %v11072_v39 = vrot.slane %v2142_v13, %v10132_v59  ;;  %v11076_v38 = vcombine.high %v11049_v51, %v11049_v51  ;;  %v2224_v16 = vrot.slane %v2216_v29, %v10132_v59 }
 0x1b6   :  { %13857 = vst [vmem:[#allocation80_spill] sm:$0xff] %v11052_v26  ;;  %13858 = vst [vmem:[#allocation81_spill] sm:$0xff] %v11068_v62  ;;  %v2165_v36 = vcombine.high %v2164_v10, %v2164_v10  ;;  %v11084_v52 = vcombine.high %v11052_v26, %v11052_v26  ;;  %v9399_v0 = vpack.c.bf16 %v8529_v56, %v8528_v58  ;;  %v13862_v10 = vld [vmem:[#allocation8_spill] sm:$0xff]  ;;  %v11101_v58 = vsel %vm897_vm2, 0.0, %v968_v27 }
 0x1b7   :  { %13855 = vst [vmem:[#allocation25_spill] sm:$0xff] %v11045_v54  ;;  %13859 = vst [vmem:[#allocation82_spill] sm:$0xff] %v11072_v39  ;;  %v2231_v54 = vrot.slane %v2217_v8, %v10132_v59  ;;  %v2235_v13 = vcombine.low %v11049_v51, %v11072_v39  ;;  %v2236_v4 = vcombine.low %v11076_v38, %v11052_v26  ;;  %v13863_v51 = vrot.slane %v10254_v1, 5 }
 0x1b8   :  { %13860 = vst [vmem:[#allocation83_spill] sm:$0xff] %v11084_v52  ;;  %v2265_v29 = vcombine.low %v2243_v6, %v11068_v62  ;;  %v11095_v8 = vrot.slane %v2165_v36, %v10132_v59  ;;  %v2388_v24 = vsel %vm884_vm1, %v13862_v10, %v10903_v23  ;;  %v13864_v6 = vrot.slane %v10296_v49, 5 }
 0x1b9   :  { %v2232_v7 = vcombine.low %v2224_v16, %v2231_v54  ;;  %v2257_v56 = vrot.slane %v2235_v13, %v10132_v59  ;;  %v2264_v26 = vrot.slane %v2236_v4, %v10132_v59  ;;  %v2389_v54 = vsel %vm884_vm1, %v10302_v55, %v13863_v51 }
 0x1ba   :  { %13861 = vst [vmem:[#allocation84_spill] sm:$0xff] %v11095_v8  ;;  %v2282_v16 = vcombine.low %v11095_v8, %v11084_v52  ;;  %v2390_v23 = vsel %vm884_vm1, %v10324_v46, %v13864_v6  ;;  %v2393_v27 = vsel %vm897_vm2, %v2388_v24, %v11091_v21  ;;  %v2394_v4 = vsel %vm897_vm2, %v2389_v54, %v11091_v21 }
 0x1bb   :  { %9038 = vmatmul.mubr.msk.f32.vlgmr.msra.gmra.mrb[0].mxu1 %vm1410_vm6, %v2232_v7  ;;  %v970_v1 = vrot.slane %v10575_v48, 6  ;;  %v2266_v55 = vcombine.low %v2257_v56, %v2264_v26  ;;  %v2395_v51 = vsel %vm897_vm2, %v2390_v23, %v11091_v21  ;;  %v2409_v49 = vrot.slane %v2393_v27, %v10132_v59 }
 0x1bc   :  { %9400 = vmatpush3.bf16.msra.mxu1 %v9399_v0  ;;  %9040 = vmatprep.mubr.msk.f32.mxu1 %vm9805_vm0, %v13778_v32  ;;  %v2273_v46 = vrot.slane %v2265_v29, %v10132_v59  ;;  %v11128_v7 = vrot.slane %v2282_v16, %v10132_v59  ;;  %v2432_v24 = vrot.slane %v2394_v4, %v10132_v59  ;;  %v13867_v13 = vrot.slane %v10562_v47, 5 }
 0x1bd   :  { %9401 = vmatprep.subr.bf16.mxu1 %v13810_v41  ;;  %v2455_v48 = vrot.slane %v2395_v51, %v10132_v59  ;;  %v2280_v36 = vrot.slane %v2266_v55, %v10132_v59  ;;  %v2410_v0 = vcombine.high %v2409_v49, %v2409_v49  ;;  %v11135_v26 = vrot.slane %v2409_v49, %v10132_v59 }
 0x1be   :  { %13865 = vst [vmem:[#allocation8_spill] sm:$0xff] %v11128_v7  ;;  %v2391_v29 = vsel %vm884_vm1, %v10821_v37, %v13867_v13  ;;  %v2296_v10 = vrot.slane %v11128_v7, %v10132_v59  ;;  %v2433_v56 = vcombine.high %v2432_v24, %v2432_v24  ;;  %v11144_v54 = vrot.slane %v2432_v24, %v10132_v59  ;;  %v8533_v7 = vld [vmem:[%s13546_s4 + $0x50] sm:$0xff] }
 0x1bf   :  { %13866 = vst [vmem:[#allocation85_spill] sm:$0xff] %v11135_v26  ;;  %v2456_v16 = vcombine.high %v2455_v48, %v2455_v48  ;;  %v2281_v6 = vcombine.low %v2273_v46, %v2280_v36  ;;  %v2424_v23 = vrot.slane %v2410_v0, %v10132_v59  ;;  %v11149_v27 = vcombine.high %v11135_v26, %v11135_v26 }
 0x1c0   :  { %13868 = vst [vmem:[#allocation86_spill] sm:$0xff] %v11144_v54  ;;  %v11152_v47 = vrot.slane %v2455_v48, %v10132_v59  ;;  %v11155_v37 = vrot.slane %v2433_v56, %v10132_v59  ;;  %v11159_v4 = vcombine.high %v11144_v54, %v11144_v54  ;;  %v13874_v51 = vrot.slane %v10565_v33, 5 }
 0x1c1   :  { %13869 = vst [vmem:[#allocation87_spill] sm:$0xff] %v11149_v27  ;;  %v11162_v55 = vrot.slane %v2456_v16, %v10132_v59  ;;  %9041 = vmatmul.mubr.msk.f32.gmra.mrb[2].mxu1 %vm1410_vm6, %v2281_v6  ;;  %v2521_v46 = vcombine.low %v11135_v26, %v2424_v23  ;;  %v2522_v24 = vcombine.low %v11149_v27, %v11144_v54  ;;  %v11217_v54 = vsel %vm897_vm2, 0.0, %v970_v1 }
 0x1c2   :  { %13870 = vst [vmem:[#allocation88_spill] sm:$0xff] %v11152_v47  ;;  %13871 = vst [vmem:[#allocation89_spill] sm:$0xff] %v11155_v37  ;;  %v2392_v49 = vsel %vm884_vm1, %v10807_v43, %v13874_v51  ;;  %v2396_v48 = vsel %vm897_vm2, %v2391_v29, %v11091_v21  ;;  %9043 = vmatprep.mubr.msk.f32.mxu1 %vm9805_vm0, %v13778_v32  ;;  %v2523_v33 = vcombine.low %v11155_v37, %v11159_v4  ;;  %v13883_v37 = vld [vmem:[#allocation16_spill] sm:$0xff] }
 0x1c3   :  { %13872 = vst [vmem:[#allocation90_spill] sm:$0xff] %v11159_v4  ;;  %13873 = vst [vmem:[#allocation91_spill] sm:$0xff] %v11162_v55  ;;  %v2397_v36 = vsel %vm897_vm2, %v2392_v49, %v11091_v21  ;;  %v2524_v43 = vcombine.low %v11152_v47, %v11162_v55  ;;  %v11184_v0 = vcombine.high %v11152_v47, %v11152_v47 }
 0x1c4   :  { %v2478_v13 = vrot.slane %v2396_v48, %v10132_v59  ;;  %v11188_v29 = vrot.slane %v2521_v46, %v10132_v59  ;;  %v2538_v56 = vrot.slane %v2522_v24, %v10132_v59  ;;  %v2501_v16 = vrot.slane %v2397_v36, %v10132_v59  ;;  %v8534_v46 = vld [vmem:[%s13546_s4 + $0x58] sm:$0xff] }
 0x1c5   :  { %13875 = vst [vmem:[#allocation92_spill] sm:$0xff] %v11184_v0  ;;  %v2571_v6 = vcombine.low %v2424_v23, %v11149_v27  ;;  %v2545_v51 = vrot.slane %v2523_v33, %v10132_v59  ;;  %v11195_v49 = vrot.slane %v2524_v43, %v10132_v59  ;;  %9044 = vmatmul.mubr.msk.f32.gmra.mrb[4].mxu1 %vm1410_vm6, %v2296_v10 }
 0x1c6   :  { %13876 = vst [vmem:[#allocation93_spill] sm:$0xff] %v11188_v29  ;;  %v2479_v48 = vcombine.high %v2478_v13, %v2478_v13  ;;  %v11204_v24 = vrot.slane %v2478_v13, %v10132_v59  ;;  %v2553_v23 = vcombine.low %v11188_v29, %v2538_v56  ;;  %v11209_v36 = vrot.slane %v2501_v16, %v10132_v59 }
 0x1c7   :  { %13877 = vst [vmem:[#allocation94_spill] sm:$0xff] %v11195_v49  ;;  %v2570_v33 = vcombine.low %v11184_v0, %v11135_v26  ;;  %v11214_v43 = vrot.slane %v2571_v6, %v10132_v59  ;;  %9050 = vmatprep.mubr.msk.f32.mxu1 %vm9805_vm0, %v13778_v32  ;;  %v2554_v13 = vcombine.low %v2545_v51, %v11195_v49 }
 0x1c8   :  { %13878 = vst [vmem:[#allocation95_spill] sm:$0xff] %v11204_v24  ;;  %13879 = vst [vmem:[#allocation96_spill] sm:$0xff] %v11209_v36  ;;  %v11223_v10 = vrot.slane %v2479_v48, %v10132_v59  ;;  %v11227_v56 = vcombine.high %v11204_v24, %v11204_v24  ;;  %v4244_v6 = vsel %vm897_vm2, %v10553_v50, %v13883_v37 }
 0x1c9   :  { %13880 = vst [vmem:[#allocation97_spill] sm:$0xff] %v11214_v43  ;;  %v9402_v4 = vpack.c.bf16 %v8534_v46, %v8533_v7  ;;  %v2580_v1 = vrot.slane %v2570_v33, %v10132_v59  ;;  %v2561_v52 = vrot.slane %v2553_v23, %v10132_v59  ;;  %v2568_v51 = vrot.slane %v2554_v13, %v10132_v59  ;;  %v13885_v7 = vld [vmem:[#allocation22_spill] sm:$0xff] }
 0x1ca   :  { %13881 = vst [vmem:[#allocation98_spill] sm:$0xff] %v11223_v10  ;;  %13882 = vst [vmem:[#allocation99_spill] sm:$0xff] %v11227_v56  ;;  %v2572_v48 = vcombine.low %v11204_v24, %v11223_v10  ;;  %v2573_v49 = vcombine.low %v11227_v56, %v11209_v36  ;;  %v2502_v39 = vcombine.high %v2501_v16, %v2501_v16  ;;  %v13886_v24 = vld [vmem:[#allocation17_spill] sm:$0xff]  ;;  %v13897_v56 = vrot.slane %v10422_v35, 1 }
 0x1cb   :  { %v2602_v8 = vcombine.low %v2580_v1, %v11214_v43  ;;  %v11244_v50 = vcombine.high %v11209_v36, %v11209_v36  ;;  %v2747_v46 = vsel %vm897_vm2, %v13885_v7, %v10310_v22  ;;  %v11250_v23 = vrot.slane %v4244_v6, %v10132_v59  ;;  %v13888_v36 = vld [vmem:[#allocation29_spill] sm:$0xff] }
 0x1cc   :  { %v2569_v33 = vcombine.low %v2561_v52, %v2568_v51  ;;  %v2594_v13 = vrot.slane %v2572_v48, %v10132_v59  ;;  %v2601_v47 = vrot.slane %v2573_v49, %v10132_v59  ;;  %v11257_v16 = vsel %vm884_vm1, %v13883_v37, %v13886_v24 }
 0x1cd   :  { %13884 = vst [vmem:[#allocation16_spill] sm:$0xff] %v11244_v50  ;;  %v11260_v1 = vrot.slane %v2502_v39, %v10132_v59  ;;  %v2748_v7 = vsel %vm897_vm2, %v10544_v31, %v13888_v36  ;;  %v2761_v6 = vrot.slane %v2747_v46, %v10132_v59  ;;  %v2610_v51 = vrot.slane %v2602_v8, %v10132_v59 }
 0x1ce   :  { %9051 = vmatmul.mubr.msk.f32.vlgmr.msra.gmra.mrb[0].mxu1 %vm1410_vm6, %v2569_v33  ;;  %v2603_v52 = vcombine.low %v2594_v13, %v2601_v47  ;;  %v2784_v49 = vrot.slane %v2748_v7, %v10132_v59  ;;  %v11302_v48 = vrot.slane %v11217_v54, 2  ;;  %v3045_v0 = vsel %vm884_vm1, %v13897_v56, %v13888_v36 }
 0x1cf   :  { %13887 = vst [vmem:[#allocation22_spill] sm:$0xff] %v11260_v1  ;;  %9403 = vmatpush3.bf16.msra.mxu1 %v9402_v4  ;;  %9053 = vmatprep.mubr.msk.f32.mxu1 %vm9805_vm0, %v13778_v32  ;;  %v2619_v39 = vcombine.low %v11260_v1, %v11244_v50  ;;  %v2762_v37 = vcombine.high %v2761_v6, %v2761_v6  ;;  %v11284_v4 = vrot.slane %v11101_v58, 2 }
 0x1d0   :  { %v11275_v31 = vrot.slane %v2761_v6, %v10132_v59  ;;  %v2617_v47 = vrot.slane %v2603_v52, %v10132_v59  ;;  %9404 = vmatprep.subr.bf16.mxu1 %v13810_v41  ;;  %v2785_v8 = vcombine.high %v2784_v49, %v2784_v49  ;;  %v11281_v33 = vrot.slane %v2784_v49, %v10132_v59 }
 0x1d1   :  { %v11287_v13 = vrot.slane %v2619_v39, %v10132_v59  ;;  %v11290_v7 = vrot.slane %v2762_v37, %v10132_v59  ;;  %v13894_v39 = vrot.slane %v11101_v58, 1 }
 0x1d2   :  { %13889 = vst [vmem:[#allocation17_spill] sm:$0xff] %v11275_v31  ;;  %13890 = vst [vmem:[#allocation29_spill] sm:$0xff] %v11281_v33  ;;  %v11294_v6 = vcombine.high %v11275_v31, %v11275_v31  ;;  %v2850_v52 = vcombine.low %v10249_v63, %v11275_v31  ;;  %v2618_v46 = vcombine.low %v2610_v51, %v2617_v47  ;;  %v13895_v51 = vrot.slane %v11217_v54, 1 }
 0x1d3   :  { %13891 = vst [vmem:[#allocation100_spill] sm:$0xff] %v11287_v13  ;;  %13892 = vst [vmem:[#allocation101_spill] sm:$0xff] %v11290_v7  ;;  %v11299_v49 = vrot.slane %v2785_v8, %v10132_v59  ;;  %v2745_v37 = vsel %vm884_vm1, %v11101_v58, %v13894_v39  ;;  %v2633_v50 = vrot.slane %v11287_v13, %v10132_v59  ;;  %v8538_v39 = vld [vmem:[%s13546_s4 + $0x60] sm:$0xff]  ;;  %v8539_v13 = vld [vmem:[%s13546_s4 + $0x68] sm:$0xff] }
 0x1d4   :  { %13893 = vst [vmem:[#allocation102_spill] sm:$0xff] %v11294_v6  ;;  %v2851_v1 = vcombine.low %v11290_v7, %v11294_v6  ;;  %v2859_v63 = vrot.slane %v2850_v52, %v10132_v59  ;;  %v2746_v47 = vsel %vm884_vm1, %v11217_v54, %v13895_v51  ;;  %9054 = vmatmul.mubr.msk.f32.gmra.mrb[2].mxu1 %vm1410_vm6, %v2618_v46 }
 0x1d5   :  { %v2852_v8 = vcombine.low %v11281_v33, %v11299_v49  ;;  %v2749_v52 = vsel %vm897_vm2, %v2745_v37, %v11284_v4  ;;  %v2750_v6 = vsel %vm897_vm2, %v2746_v47, %v11302_v48  ;;  %v11332_v46 = vcombine.high %v11281_v33, %v11281_v33  ;;  %9056 = vmatprep.mubr.msk.f32.mxu1 %vm9805_vm0, %v13778_v32 }
 0x1d6   :  { %v2866_v51 = vrot.slane %v2851_v1, %v10132_v59  ;;  %v2874_v31 = vcombine.low %v10293_v45, %v2859_v63  ;;  %v2807_v7 = vrot.slane %v2749_v52, %v10132_v59  ;;  %v2830_v10 = vrot.slane %v2750_v6, %v10132_v59 }
 0x1d7   :  { %13896 = vst [vmem:[#allocation103_spill] sm:$0xff] %v11332_v46  ;;  %v2873_v37 = vrot.slane %v2852_v8, %v10132_v59  ;;  %v2891_v47 = vcombine.low %v11332_v46, %v10227_v14  ;;  %v9405_v1 = vpack.c.bf16 %v8539_v13, %v8538_v39  ;;  %v11386_v45 = vcombine.high %v10907_v12, %v10907_v12 }
 0x1d8   :  { %v2808_v55 = vcombine.high %v2807_v7, %v2807_v7  ;;  %v11350_v63 = vrot.slane %v2807_v7, %v10132_v59  ;;  %v11353_v6 = vrot.slane %v2830_v10, %v10132_v59  ;;  %9057 = vmatmul.mubr.msk.f32.gmra.mrb[4].mxu1 %vm1410_vm6, %v2633_v50  ;;  %v2882_v52 = vrot.slane %v2874_v31, %v10132_v59  ;;  %v13903_v50 = vld [vmem:[#allocation30_spill] sm:$0xff] }
 0x1d9   :  { %v2875_v8 = vcombine.low %v2866_v51, %v2873_v37  ;;  %v2900_v33 = vrot.slane %v2891_v47, %v10132_v59  ;;  %v2831_v14 = vcombine.high %v2830_v10, %v2830_v10  ;;  %9063 = vmatprep.mubr.msk.f32.mxu1 %vm9805_vm0, %v13778_v32  ;;  %v3049_v31 = vsel %vm897_vm2, %v3045_v0, %v13903_v50 }
 0x1da   :  { %13898 = vst [vmem:[#allocation104_spill] sm:$0xff] %v11350_v63  ;;  %13899 = vst [vmem:[#allocation105_spill] sm:$0xff] %v11353_v6  ;;  %v11361_v56 = vrot.slane %v2808_v55, %v10132_v59  ;;  %v11365_v13 = vcombine.high %v11350_v63, %v11350_v63  ;;  %v11369_v7 = vcombine.high %v11353_v6, %v11353_v6 }
 0x1db   :  { %v2889_v39 = vrot.slane %v2875_v8, %v10132_v59  ;;  %v2915_v10 = vcombine.low %v2900_v33, %v10748_v20  ;;  %v11376_v51 = vrot.slane %v2831_v14, %v10132_v59  ;;  %v3063_v55 = vcombine.high %v10794_v11, %v10794_v11  ;;  %13905 = vst [vmem:[#allocation109_spill] sm:$0xff] %v11386_v45  ;;  %v13906_v33 = vld [vmem:[#allocation9_spill] sm:$0xff] }
 0x1dc   :  { %13900 = vst [vmem:[#allocation106_spill] sm:$0xff] %v11361_v56  ;;  %13901 = vst [vmem:[#allocation107_spill] sm:$0xff] %v11365_v13  ;;  %v2892_v37 = vcombine.low %v11350_v63, %v11361_v56  ;;  %v2893_v47 = vcombine.low %v11365_v13, %v11353_v6  ;;  %v3085_v0 = vrot.slane %v3049_v31, %v10132_v59 }
 0x1dd   :  { %13902 = vst [vmem:[#allocation108_spill] sm:$0xff] %v11369_v7  ;;  %13904 = vst [vmem:[#allocation30_spill] sm:$0xff] %v11376_v51  ;;  %v3175_v8 = vcombine.low %v13906_v33, %v11055_v28  ;;  %v2890_v14 = vcombine.low %v2882_v52, %v2889_v39  ;;  %v2932_v20 = vcombine.low %v11376_v51, %v11369_v7 }
 0x1de   :  { %v11394_v11 = vrot.slane %v3063_v55, %v10132_v59  ;;  %v11398_v63 = vrot.slane %v11250_v23, %v10132_v59  ;;  %v2907_v6 = vrot.slane %v2892_v37, %v10132_v59  ;;  %v2914_v12 = vrot.slane %v2893_v47, %v10132_v59 }
 0x1df   :  { %v3086_v56 = vcombine.high %v3085_v0, %v3085_v0  ;;  %v11405_v28 = vsel %vm897_vm2, %v11257_v16, %v10547_v60  ;;  %9064 = vmatmul.mubr.msk.f32.vlgmr.msra.gmra.mrb[0].mxu1 %vm1410_vm6, %v2890_v14  ;;  %v2923_v52 = vrot.slane %v2915_v10, %v10132_v59  ;;  %v11410_v31 = vrot.slane %v3085_v0, %v10132_v59 }
 0x1e0   :  { %13907 = vst [vmem:[#allocation110_spill] sm:$0xff] %v11394_v11  ;;  %13908 = vst [vmem:[#allocation111_spill] sm:$0xff] %v11398_v63  ;;  %v3152_v39 = vcombine.low %v11394_v11, %v11386_v45  ;;  %9406 = vmatpush3.bf16.msra.mxu1 %v9405_v1  ;;  %9066 = vmatprep.mubr.msk.f32.mxu1 %vm9805_vm0, %v13778_v32  ;;  %v2916_v55 = vcombine.low %v2907_v6, %v2914_v12  ;;  %v11420_v16 = vrot.slane %v11101_v58, 3 }
 0x1e1   :  { %13909 = vst [vmem:[#allocation112_spill] sm:$0xff] %v11410_v31  ;;  %v11417_v37 = vrot.slane %v3086_v56, %v10132_v59  ;;  %v11423_v47 = vrot.slane %v11217_v54, 3  ;;  %v2939_v10 = vrot.slane %v2932_v20, %v10132_v59  ;;  %9407 = vmatprep.subr.bf16.mxu1 %v13810_v41  ;;  %v13911_v1 = vrot.slane %v11101_v58, 1 }
 0x1e2   :  { %v3167_v0 = vrot.slane %v3152_v39, %v10132_v59  ;;  %v13912_v6 = vrot.slane %v11217_v54, 1  ;;  %v2930_v14 = vrot.slane %v2916_v55, %v10132_v59  ;;  %v11445_v11 = vcombine.high %v11410_v31, %v11410_v31 }
 0x1e3   :  { %13910 = vst [vmem:[#allocation113_spill] sm:$0xff] %v11417_v37  ;;  %v3046_v12 = vsel %vm884_vm1, %v13911_v1, %v11284_v4  ;;  %v3153_v33 = vcombine.low %v11410_v31, %v11417_v37  ;;  %v3345_v55 = vsel %vm884_vm1, %v10310_v22, %v10313_v61  ;;  %v3183_v37 = vrot.slane %v3175_v8, %v10132_v59 }
 0x1e4   :  { %v3047_v56 = vsel %vm884_vm1, %v13912_v6, %v11302_v48  ;;  %v3050_v20 = vsel %vm897_vm2, %v3046_v12, %v11420_v16  ;;  %13913 = vst [vmem:[#allocation114_spill] sm:$0xff] %v11445_v11  ;;  %v2931_v6 = vcombine.low %v2923_v52, %v2930_v14  ;;  %v3346_v12 = vsel %vm884_vm1, %v13888_v36, %v13903_v50  ;;  %v13917_v14 = vld [vmem:[#allocation32_spill] sm:$0xff] }
 0x1e5   :  { %v3051_v39 = vsel %vm897_vm2, %v3047_v56, %v11423_v47  ;;  %v3108_v1 = vrot.slane %v3050_v20, %v10132_v59  ;;  %v3174_v7 = vrot.slane %v3153_v33, %v10132_v59  ;;  %v13914_v56 = vld [vmem:[#allocation23_spill] sm:$0xff]  ;;  %v3192_v22 = vcombine.low %v11445_v11, %v10171_v44 }
 0x1e6   :  { %v3131_v45 = vrot.slane %v3051_v39, %v10132_v59  ;;  %v3349_v51 = vsel %vm897_vm2, %v3345_v55, %v13914_v56  ;;  %9067 = vmatmul.mubr.msk.f32.gmra.mrb[2].mxu1 %vm1410_vm6, %v2931_v6  ;;  %v3350_v39 = vsel %vm897_vm2, %v3346_v12, %v13917_v14  ;;  %v8543_v12 = vld [vmem:[%s13546_s4 + $0x70] sm:$0xff] }
 0x1e7   :  { %v3109_v31 = vcombine.high %v3108_v1, %v3108_v1  ;;  %v11459_v13 = vrot.slane %v3108_v1, %v10132_v59  ;;  %v3176_v33 = vcombine.low %v3167_v0, %v3174_v7  ;;  %9069 = vmatprep.mubr.msk.f32.mxu1 %vm9805_vm0, %v13778_v32  ;;  %v3201_v6 = vrot.slane %v3192_v22, %v10132_v59 }
 0x1e8   :  { %v11462_v20 = vrot.slane %v3131_v45, %v10132_v59  ;;  %v3132_v36 = vcombine.high %v3131_v45, %v3131_v45  ;;  %v2946_v45 = vrot.slane %v2939_v10, %v10132_v59  ;;  %v3363_v22 = vrot.slane %v3349_v51, %v10132_v59 }
 0x1e9   :  { %13915 = vst [vmem:[#allocation23_spill] sm:$0xff] %v11459_v13  ;;  %v11474_v1 = vrot.slane %v3109_v31, %v10132_v59  ;;  %v11478_v55 = vcombine.high %v11459_v13, %v11459_v13  ;;  %v3190_v0 = vrot.slane %v3176_v33, %v10132_v59  ;;  %v8544_v31 = vld [vmem:[%s13546_s4 + $0x78] sm:$0xff]  ;;  %v3216_v33 = vcombine.low %v3201_v6, %v10219_v9 }
 0x1ea   :  { %13916 = vst [vmem:[#allocation115_spill] sm:$0xff] %v11462_v20  ;;  %v11483_v7 = vcombine.high %v11462_v20, %v11462_v20  ;;  %v11494_v52 = vrot.slane %v3132_v36, %v10132_v59  ;;  %v3386_v11 = vrot.slane %v3350_v39, %v10132_v59  ;;  %9070 = vmatmul.mubr.msk.f32.gmra.mrb[4].mxu1 %vm1410_vm6, %v2946_v45 }
 0x1eb   :  { %v3193_v44 = vcombine.low %v11459_v13, %v11474_v1  ;;  %v3194_v10 = vcombine.low %v11478_v55, %v11462_v20  ;;  %v3364_v46 = vcombine.high %v3363_v22, %v3363_v22  ;;  %v11508_v51 = vrot.slane %v3363_v22, %v10132_v59  ;;  %9076 = vmatprep.mubr.msk.f32.mxu1 %vm9805_vm0, %v13778_v32 }
 0x1ec   :  { %13918 = vst [vmem:[#allocation32_spill] sm:$0xff] %v11483_v7  ;;  %13919 = vst [vmem:[#allocation116_spill] sm:$0xff] %v11494_v52  ;;  %v3233_v36 = vcombine.low %v11494_v52, %v11483_v7  ;;  %v9408_v13 = vpack.c.bf16 %v8544_v31, %v8543_v12  ;;  %v3387_v39 = vcombine.high %v3386_v11, %v3386_v11  ;;  %v11548_v31 = vrot.slane %v11217_v54, 4 }
 0x1ed   :  { %13920 = vst [vmem:[#allocation117_spill] sm:$0xff] %v11508_v51  ;;  %v3208_v20 = vrot.slane %v3193_v44, %v10132_v59  ;;  %v3215_v6 = vrot.slane %v3194_v10, %v10132_v59  ;;  %v3191_v9 = vcombine.low %v3183_v37, %v3190_v0  ;;  %v11515_v45 = vrot.slane %v3364_v46, %v10132_v59  ;;  %v11533_v46 = vld [vmem:[%s13546_s4 + $0x80] sm:$0xff]  ;;  %v11538_v37 = vld [vmem:[%s13546_s4 + $0x88] sm:$0xff] }
 0x1ee   :  { %v11519_v8 = vcombine.high %v11508_v51, %v11508_v51  ;;  %v11522_v22 = vrot.slane %v3386_v11, %v10132_v59  ;;  %v3224_v52 = vrot.slane %v3216_v33, %v10132_v59  ;;  %v11526_v12 = vrot.slane %v3387_v39, %v10132_v59 }
 0x1ef   :  { %13921 = vst [vmem:[#allocation118_spill] sm:$0xff] %v11515_v45  ;;  %v3217_v7 = vcombine.low %v3208_v20, %v3215_v6  ;;  %v3452_v44 = vcombine.low %v10839_v17, %v11508_v51  ;;  %9077 = vmatmul.mubr.msk.f32.vlgmr.msra.gmra.mrb[0].mxu1 %vm1410_vm6, %v3191_v9  ;;  %v3240_v11 = vrot.slane %v3233_v36, %v10132_v59  ;;  %v11545_v0 = vrot.slane %v11101_v58, 4 }
 0x1f0   :  { %13922 = vst [vmem:[#allocation119_spill] sm:$0xff] %v11519_v8  ;;  %13923 = vst [vmem:[#allocation120_spill] sm:$0xff] %v11522_v22  ;;  %v3453_v20 = vcombine.low %v11515_v45, %v11519_v8  ;;  %9409 = vmatpush3.bf16.msra.mxu1 %v9408_v13  ;;  %9079 = vmatprep.mubr.msk.f32.mxu1 %vm9805_vm0, %v13778_v32  ;;  %v3454_v9 = vcombine.low %v11522_v22, %v11526_v12 }
 0x1f1   :  { %v3231_v33 = vrot.slane %v3217_v7, %v10132_v59  ;;  %v3461_v36 = vrot.slane %v3452_v44, %v10132_v59  ;;  %9410 = vmatprep.subr.bf16.mxu1 %v13810_v41  ;;  %v9411_v6 = vpack.c.bf16 %v11538_v37, %v11533_v46  ;;  %v3347_v39 = vsel %vm884_vm1, %v11284_v4, %v11420_v16 }
 0x1f2   :  { %v3348_v13 = vsel %vm884_vm1, %v11302_v48, %v11423_v47  ;;  %v11568_v7 = vcombine.high %v11522_v22, %v11522_v22  ;;  %v3468_v44 = vrot.slane %v3453_v20, %v10132_v59  ;;  %v3475_v17 = vrot.slane %v3454_v9, %v10132_v59 }
 0x1f3   :  { %v3232_v10 = vcombine.low %v3224_v52, %v3231_v33  ;;  %v3351_v46 = vsel %vm897_vm2, %v3347_v39, %v11545_v0  ;;  %v3352_v37 = vsel %vm897_vm2, %v3348_v13, %v11548_v31  ;;  %v3476_v52 = vcombine.low %v10867_v15, %v3461_v36 }
 0x1f4   :  { %v3409_v4 = vrot.slane %v3351_v46, %v10132_v59  ;;  %v3493_v48 = vcombine.low %v11568_v7, %v10825_v42  ;;  %v3477_v20 = vcombine.low %v3468_v44, %v3475_v17  ;;  %v3432_v33 = vrot.slane %v3352_v37, %v10132_v59 }
 0x1f5   :  { %9080 = vmatmul.mubr.msk.f32.gmra.mrb[2].mxu1 %vm1410_vm6, %v3232_v10  ;;  %v3646_v9 = vsel %vm884_vm1, %v10313_v61, %v13914_v56  ;;  %v3247_v39 = vrot.slane %v3240_v11, %v10132_v59  ;;  %v3647_v61 = vsel %vm884_vm1, %v13903_v50, %v13917_v14 }
 0x1f6   :  { %9082 = vmatprep.mubr.msk.f32.mxu1 %vm9805_vm0, %v13778_v32  ;;  %v3410_v13 = vcombine.high %v3409_v4, %v3409_v4  ;;  %v11591_v46 = vrot.slane %v3409_v4, %v10132_v59  ;;  %v3502_v10 = vrot.slane %v3493_v48, %v10132_v59  ;;  %v3491_v36 = vrot.slane %v3477_v20, %v10132_v59 }
 0x1f7   :  { %v11596_v17 = vrot.slane %v3432_v33, %v10132_v59  ;;  %v3433_v44 = vcombine.high %v3432_v33, %v3432_v33  ;;  %v13924_v4 = vrot.slane %v10257_v2, 5  ;;  %v3484_v33 = vrot.slane %v3476_v52, %v10132_v59 }
 0x1f8   :  { %v11602_v37 = vrot.slane %v3410_v13, %v10132_v59  ;;  %v11606_v11 = vcombine.high %v11591_v46, %v11591_v46  ;;  %v13925_v13 = vrot.slane %v10422_v35, 5 }
 0x1f9   :  { %v3650_v48 = vsel %vm897_vm2, %v3646_v9, %v13924_v4  ;;  %9083 = vmatmul.mubr.msk.f32.gmra.mrb[4].mxu1 %vm1410_vm6, %v3247_v39  ;;  %v11615_v51 = vrot.slane %v3433_v44, %v10132_v59  ;;  %v11619_v50 = vcombine.high %v11596_v17, %v11596_v17  ;;  %v3517_v39 = vcombine.low %v3502_v10, %v10900_v53 }
 0x1fa   :  { %v3651_v42 = vsel %vm897_vm2, %v3647_v61, %v13925_v13  ;;  %9089 = vmatprep.mubr.msk.f32.mxu1 %vm9805_vm0, %v13778_v32  ;;  %v3494_v9 = vcombine.low %v11591_v46, %v11602_v37  ;;  %v3495_v52 = vcombine.low %v11606_v11, %v11596_v17  ;;  %v3664_v44 = vrot.slane %v3650_v48, %v10132_v59 }
 0x1fb   :  { %v3492_v4 = vcombine.low %v3484_v33, %v3491_v36  ;;  %v3534_v20 = vcombine.low %v11615_v51, %v11619_v50  ;;  %v3687_v15 = vrot.slane %v3651_v42, %v10132_v59  ;;  %v13700_v61 = vrot.slane %v11217_v54, 5 }
 0x1fc   :  { %v3509_v13 = vrot.slane %v3494_v9, %v10132_v59  ;;  %v3516_v45 = vrot.slane %v3495_v52, %v10132_v59  ;;  %v3665_v8 = vcombine.high %v3664_v44, %v3664_v44  ;;  %v11639_v22 = vrot.slane %v3664_v44, %v10132_v59 }
 0x1fd   :  { %9090 = vmatmul.mubr.msk.f32.vlgmr.msra.gmra.mrb[0].mxu1 %vm1410_vm6, %v3492_v4  ;;  %v3541_v10 = vrot.slane %v3534_v20, %v10132_v59  ;;  %v3688_v36 = vcombine.high %v3687_v15, %v3687_v15  ;;  %v11644_v48 = vrot.slane %v3687_v15, %v10132_v59  ;;  %v3648_v42 = vsel %vm884_vm1, %v11420_v16, %v11545_v0 }
 0x1fe   :  { %13926 = vst [vmem:[#allocation121_spill] sm:$0xff] %v11639_v22  ;;  %9412 = vmatpush3.bf16.msra.mxu1 %v9411_v6  ;;  %9092 = vmatprep.mubr.msk.f32.mxu1 %vm9805_vm0, %v13778_v32  ;;  %v3518_v9 = vcombine.low %v3509_v13, %v3516_v45  ;;  %v11653_v52 = vrot.slane %v3665_v8, %v10132_v59  ;;  %v13930_v4 = vrot.slane %v11101_v58, 5 }
 0x1ff   :  { %13927 = vst [vmem:[#allocation122_spill] sm:$0xff] %v11644_v48  ;;  %v11657_v20 = vcombine.high %v11639_v22, %v11639_v22  ;;  %v3525_v15 = vrot.slane %v3517_v39, %v10132_v59  ;;  %9413 = vmatprep.subr.bf16.mxu1 %v13810_v41  ;;  %v11662_v16 = vrot.slane %v3688_v36, %v10132_v59 }
 0x200   :  { %13928 = vst [vmem:[#allocation123_spill] sm:$0xff] %v11653_v52  ;;  %v3753_v6 = vcombine.low %v10981_v34, %v11639_v22  ;;  %v3649_v45 = vsel %vm884_vm1, %v11423_v47, %v11548_v31  ;;  %v3532_v8 = vrot.slane %v3518_v9, %v10132_v59  ;;  %v3652_v39 = vsel %vm897_vm2, %v3648_v42, %v13930_v4 }
 0x201   :  { %13929 = vst [vmem:[#allocation124_spill] sm:$0xff] %v11657_v20  ;;  %v3754_v44 = vcombine.low %v11653_v52, %v11657_v20  ;;  %v3653_v13 = vsel %vm897_vm2, %v3649_v45, %v13700_v61  ;;  %v3755_v36 = vcombine.low %v11644_v48, %v11662_v16  ;;  %v11683_v47 = vcombine.high %v11644_v48, %v11644_v48 }
 0x202   :  { %v3762_v33 = vrot.slane %v3753_v6, %v10132_v59  ;;  %v3710_v9 = vrot.slane %v3652_v39, %v10132_v59  ;;  %v3533_v53 = vcombine.low %v3525_v15, %v3532_v8  ;;  %v3548_v34 = vrot.slane %v3541_v10, %v10132_v59 }
 0x203   :  { %v3769_v42 = vrot.slane %v3754_v44, %v10132_v59  ;;  %v3733_v4 = vrot.slane %v3653_v13, %v10132_v59  ;;  %v3776_v45 = vrot.slane %v3755_v36, %v10132_v59  ;;  %v3794_v10 = vcombine.low %v11683_v47, %v10970_v5 }
 0x204   :  { %v3777_v61 = vcombine.low %v11023_v40, %v3762_v33  ;;  %v3711_v20 = vcombine.high %v3710_v9, %v3710_v9  ;;  %v11692_v6 = vrot.slane %v3710_v9, %v10132_v59  ;;  %9093 = vmatmul.mubr.msk.f32.gmra.mrb[2].mxu1 %vm1410_vm6, %v3533_v53  ;;  %v13931_v39 = vrot.slane %v10257_v2, 5  ;;  %v8553_v9 = vld [vmem:[%s13546_s4 + $0x90] sm:$0xff] }
 0x205   :  { %v11696_v48 = vrot.slane %v3733_v4, %v10132_v59  ;;  %v3734_v8 = vcombine.high %v3733_v4, %v3733_v4  ;;  %9095 = vmatprep.mubr.msk.f32.mxu1 %vm9805_vm0, %v13778_v32  ;;  %v3778_v33 = vcombine.low %v3769_v42, %v3776_v45  ;;  %v3803_v42 = vrot.slane %v3794_v10, %v10132_v59 }
 0x206   :  { %v11705_v44 = vrot.slane %v3711_v20, %v10132_v59  ;;  %v11709_v53 = vcombine.high %v11692_v6, %v11692_v6  ;;  %v3939_v13 = vsel %vm884_vm1, %v13914_v56, %v13931_v39  ;;  %v3785_v36 = vrot.slane %v3777_v61, %v10132_v59  ;;  %v8554_v20 = vld [vmem:[%s13546_s4 + $0x98] sm:$0xff] }
 0x207   :  { %v11724_v4 = vrot.slane %v3734_v8, %v10132_v59  ;;  %v11728_v2 = vcombine.high %v11696_v48, %v11696_v48  ;;  %v3792_v56 = vrot.slane %v3778_v33, %v10132_v59  ;;  %v13933_v39 = vrot.slane %v10422_v35, 5 }
 0x208   :  { %v3795_v61 = vcombine.low %v11692_v6, %v11705_v44  ;;  %v3796_v45 = vcombine.low %v11709_v53, %v11696_v48  ;;  %9096 = vmatmul.mubr.msk.f32.gmra.mrb[4].mxu1 %vm1410_vm6, %v3548_v34  ;;  %v3818_v8 = vcombine.low %v3803_v42, %v11068_v62  ;;  %v3943_v33 = vsel %vm897_vm2, %v3939_v13, %v11091_v21 }
 0x209   :  { %13932 = vst [vmem:[#allocation125_spill] sm:$0xff] %v11728_v2  ;;  %v3940_v10 = vsel %vm884_vm1, %v13917_v14, %v13933_v39  ;;  %v3835_v15 = vcombine.low %v11724_v4, %v11728_v2  ;;  %9102 = vmatprep.mubr.msk.f32.mxu1 %vm9805_vm0, %v13778_v32  ;;  %v9414_v35 = vpack.c.bf16 %v8554_v20, %v8553_v9  ;;  %v13935_v9 = vrot.slane %v11101_v58, 5 }
 0x20a   :  { %v3944_v5 = vsel %vm897_vm2, %v3940_v10, %v11091_v21  ;;  %v3810_v40 = vrot.slane %v3795_v61, %v10132_v59  ;;  %v3817_v14 = vrot.slane %v3796_v45, %v10132_v59  ;;  %v3957_v34 = vrot.slane %v3943_v33, %v10132_v59 }
 0x20b   :  { %v3793_v42 = vcombine.low %v3785_v36, %v3792_v56  ;;  %v3826_v39 = vrot.slane %v3818_v8, %v10132_v59  ;;  %v3842_v62 = vrot.slane %v3835_v15, %v10132_v59  ;;  %v3980_v13 = vrot.slane %v3944_v5, %v10132_v59 }
 0x20c   :  { %v3819_v22 = vcombine.low %v3810_v40, %v3817_v14  ;;  %v3958_v52 = vcombine.high %v3957_v34, %v3957_v34  ;;  %v11756_v10 = vrot.slane %v3957_v34, %v10132_v59  ;;  %v3941_v20 = vsel %vm884_vm1, %v11545_v0, %v13935_v9  ;;  %v8558_v9 = vld [vmem:[%s13546_s4 + $0xa0] sm:$0xff] }
 0x20d   :  { %9103 = vmatmul.mubr.msk.f32.vlgmr.msra.gmra.mrb[0].mxu1 %vm1410_vm6, %v3793_v42  ;;  %v3849_v36 = vrot.slane %v3842_v62, %v10132_v59  ;;  %v3981_v56 = vcombine.high %v3980_v13, %v3980_v13  ;;  %v11765_v61 = vrot.slane %v3980_v13, %v10132_v59  ;;  %v13937_v5 = vrot.slane %v11217_v54, 5 }
 0x20e   :  { %13934 = vst [vmem:[#allocation126_spill] sm:$0xff] %v11756_v10  ;;  %v13938_v15 = vrot.slane %v10623_v25, 6  ;;  %9415 = vmatpush3.bf16.msra.mxu1 %v9414_v35  ;;  %9105 = vmatprep.mubr.msk.f32.mxu1 %vm9805_vm0, %v13778_v32  ;;  %v3833_v62 = vrot.slane %v3819_v22, %v10132_v59  ;;  %v11780_v0 = vrot.slane %v3958_v52, %v10132_v59 }
 0x20f   :  { %13936 = vst [vmem:[#allocation127_spill] sm:$0xff] %v11765_v61  ;;  %v3942_v40 = vsel %vm884_vm1, %v11548_v31, %v13937_v5  ;;  %v11784_v54 = vcombine.high %v11756_v10, %v11756_v10  ;;  %9416 = vmatprep.subr.bf16.mxu1 %v13810_v41  ;;  %v11788_v25 = vrot.slane %v3981_v56, %v10132_v59 }
 0x210   :  { %v11774_v58 = vsel %vm897_vm2, 0.0, %v13938_v15  ;;  %13939 = vst [vmem:[#allocation128_spill] sm:$0xff] %v11780_v0  ;;  %v4046_v31 = vcombine.low %v11149_v27, %v11756_v10  ;;  %v3945_v45 = vsel %vm897_vm2, %v3941_v20, %v11091_v21  ;;  %v3946_v22 = vsel %vm897_vm2, %v3942_v40, %v11091_v21  ;;  %v8559_v20 = vld [vmem:[%s13546_s4 + $0xa8] sm:$0xff] }
 0x211   :  { %13940 = vst [vmem:[#allocation129_spill] sm:$0xff] %v11784_v54  ;;  %v3834_v52 = vcombine.low %v3826_v39, %v3833_v62  ;;  %v4047_v8 = vcombine.low %v11780_v0, %v11784_v54  ;;  %v11800_v33 = vcombine.high %v11765_v61, %v11765_v61  ;;  %v4003_v35 = vrot.slane %v3945_v45, %v10132_v59 }
 0x212   :  { %v4048_v14 = vcombine.low %v11765_v61, %v11788_v25  ;;  %v4055_v34 = vrot.slane %v4046_v31, %v10132_v59  ;;  %v4026_v42 = vrot.slane %v3946_v22, %v10132_v59  ;;  %v4255_v13 = vcombine.high %v11250_v23, %v11250_v23  ;;  %v13959_v61 = vld [vmem:[#allocation53_spill] sm:$0xff] }
 0x213   :  { %9106 = vmatmul.mubr.msk.f32.gmra.mrb[2].mxu1 %vm1410_vm6, %v3834_v52  ;;  %v4062_v39 = vrot.slane %v4047_v8, %v10132_v59  ;;  %v4004_v56 = vcombine.high %v4003_v35, %v4003_v35  ;;  %v11818_v5 = vrot.slane %v4003_v35, %v10132_v59  ;;  %v4087_v40 = vcombine.low %v11800_v33, %v11135_v26 }
 0x214   :  { %9108 = vmatprep.mubr.msk.f32.mxu1 %vm9805_vm0, %v13778_v32  ;;  %v4069_v23 = vrot.slane %v4048_v14, %v10132_v59  ;;  %v4070_v15 = vcombine.low %v11188_v29, %v4055_v34  ;;  %v11827_v62 = vrot.slane %v4026_v42, %v10132_v59  ;;  %v4027_v8 = vcombine.high %v4026_v42, %v4026_v42  ;;  %v13951_v29 = vld [vmem:[#allocation42_spill] sm:$0xff] }
 0x215   :  { %13941 = vst [vmem:[#allocation130_spill] sm:$0xff] %v11818_v5  ;;  %v11832_v45 = vrot.slane %v4004_v56, %v10132_v59  ;;  %v11836_v22 = vcombine.high %v11818_v5, %v11818_v5  ;;  %v4096_v52 = vrot.slane %v4087_v40, %v10132_v59  ;;  %v9417_v14 = vpack.c.bf16 %v8559_v20, %v8558_v9 }
 0x216   :  { %13942 = vst [vmem:[#allocation131_spill] sm:$0xff] %v11827_v62  ;;  %v4071_v35 = vcombine.low %v4062_v39, %v4069_v23  ;;  %v11841_v34 = vcombine.high %v11827_v62, %v11827_v62  ;;  %v11851_v42 = vrot.slane %v4027_v8, %v10132_v59  ;;  %v4078_v39 = vrot.slane %v4070_v15, %v10132_v59  ;;  %v13948_v15 = vld [vmem:[#allocation26_spill] sm:$0xff] }
 0x217   :  { %13943 = vst [vmem:[#allocation132_spill] sm:$0xff] %v11832_v45  ;;  %13944 = vst [vmem:[#allocation133_spill] sm:$0xff] %v11836_v22  ;;  %9109 = vmatmul.mubr.msk.f32.gmra.mrb[4].mxu1 %vm1410_vm6, %v3849_v36  ;;  %v4088_v56 = vcombine.low %v11818_v5, %v11832_v45  ;;  %v4089_v31 = vcombine.low %v11836_v22, %v11827_v62  ;;  %v4111_v26 = vcombine.low %v4096_v52, %v11214_v43  ;;  %v13950_v43 = vld [vmem:[#allocation44_spill] sm:$0xff]  ;;  %v13962_v62 = vld [vmem:[#allocation49_spill] sm:$0xff] }
 0x218   :  { %13945 = vst [vmem:[#allocation134_spill] sm:$0xff] %v11841_v34  ;;  %13946 = vst [vmem:[#allocation135_spill] sm:$0xff] %v11851_v42  ;;  %9115 = vmatprep.mubr.msk.f32.mxu1 %vm9805_vm0, %v13778_v32  ;;  %v4085_v9 = vrot.slane %v4071_v35, %v10132_v59  ;;  %v11858_v36 = vrot.slane %v4255_v13, %v10132_v59  ;;  %v4298_v20 = vcombine.low %v10699_v30, %v10692_v18  ;;  %v14001_v22 = vld [vmem:[#allocation72_spill] sm:$0xff] }
 0x219   :  { %v4103_v40 = vrot.slane %v4088_v56, %v10132_v59  ;;  %v4110_v23 = vrot.slane %v4089_v31, %v10132_v59  ;;  %v4128_v52 = vcombine.low %v11851_v42, %v11841_v34  ;;  %v11867_v8 = vrot.slane %v11774_v58, 2  ;;  %v13960_v34 = vld [vmem:[#allocation52_spill] sm:$0xff] }
 0x21a   :  { %13947 = vst [vmem:[#allocation136_spill] sm:$0xff] %v11858_v36  ;;  %v13949_v35 = vcombine.low %v13948_v15, %v10417_v57  ;;  %v4086_v13 = vcombine.low %v4078_v39, %v4085_v9  ;;  %v4297_v18 = vcombine.low %v13951_v29, %v13950_v43  ;;  %v4300_v30 = vcombine.low %v11398_v63, %v11858_v36  ;;  %v13952_v57 = vld [vmem:[#allocation45_spill] sm:$0xff]  ;;  %v13953_v39 = vld [vmem:[#allocation46_spill] sm:$0xff] }
 0x21b   :  { %v11881_v31 = vrot.slane %v11405_v28, %v10132_v59  ;;  %v4112_v56 = vcombine.low %v4103_v40, %v4110_v23  ;;  %v4119_v10 = vrot.slane %v4111_v26, %v10132_v59  ;;  %v4314_v0 = vrot.slane %v4298_v20, %v10132_v59  ;;  %v13957_v26 = vld [vmem:[#allocation40_spill] sm:$0xff] }
 0x21c   :  { %v11873_v27 = vrot.slane %v13949_v35, %v10132_v59  ;;  %9116 = vmatmul.mubr.msk.f32.vlgmr.msra.gmra.mrb[0].mxu1 %vm1410_vm6, %v4086_v13  ;;  %v13954_v9 = vcombine.low %v13952_v57, %v13953_v39  ;;  %v4328_v29 = vrot.slane %v4300_v30, %v10132_v59  ;;  %v13955_v43 = vrot.slane %v11774_v58, 1 }
 0x21d   :  { %v11897_v40 = vcombine.high %v11398_v63, %v11398_v63  ;;  %v11900_v20 = vrot.slane %v13957_v26, 2  ;;  %9418 = vmatpush3.bf16.msra.mxu1 %v9417_v14  ;;  %9118 = vmatprep.mubr.msk.f32.mxu1 %vm9805_vm0, %v13778_v32  ;;  %v4126_v23 = vrot.slane %v4112_v56, %v10132_v59  ;;  %v4135_v35 = vrot.slane %v4128_v52, %v10132_v59  ;;  %v13961_v56 = vld [vmem:[#allocation55_spill] sm:$0xff]  ;;  %v14000_v63 = vld [vmem:[#allocation66_spill] sm:$0xff] }
 0x21e   :  { %v4321_v15 = vrot.slane %v13954_v9, %v10132_v59  ;;  %v4243_v28 = vsel %vm884_vm1, %v11774_v58, %v13955_v43  ;;  %9419 = vmatprep.subr.bf16.mxu1 %v13810_v41  ;;  %v4307_v30 = vrot.slane %v4297_v18, %v10132_v59  ;;  %v13958_v43 = vld [vmem:[#allocation48_spill] sm:$0xff]  ;;  %v4347_v5 = vcombine.low %v13960_v34, %v13959_v61  ;;  %v13964_v34 = vld [vmem:[#allocation27_spill] sm:$0xff] }
 0x21f   :  { %13956 = vst [vmem:[#allocation26_spill] sm:$0xff] %v11897_v40  ;;  %v4245_v13 = vsel %vm897_vm2, %v4243_v28, %v11867_v8  ;;  %v4346_v14 = vcombine.low %v11897_v40, %v13958_v43  ;;  %v4127_v54 = vcombine.low %v4119_v10, %v4126_v23  ;;  %v4348_v52 = vcombine.low %v13962_v62, %v13961_v56 }
 0x220   :  { %v4330_v57 = vcombine.low %v4321_v15, %v4328_v29  ;;  %v4277_v9 = vrot.slane %v4245_v13, %v10132_v59  ;;  %v5025_v18 = vsel %vm884_vm1, %v13886_v24, %v10547_v60  ;;  %v4329_v15 = vcombine.low %v4307_v30, %v4314_v0  ;;  %v13967_v0 = vld [vmem:[#allocation54_spill] sm:$0xff] }
 0x221   :  { %9119 = vmatmul.mubr.msk.f32.gmra.mrb[2].mxu1 %vm1410_vm6, %v4127_v54  ;;  %v4142_v10 = vrot.slane %v4135_v35, %v10132_v59  ;;  %v4363_v61 = vrot.slane %v4347_v5, %v10132_v59  ;;  %v13965_v23 = vcombine.high %v13964_v34, %v13964_v34  ;;  %v11935_v56 = vrot.slane %v11774_v58, 3  ;;  %v8563_v30 = vld [vmem:[%s13546_s4 + $0xb0] sm:$0xff] }
 0x222   :  { %v11923_v29 = vrot.slane %v4277_v9, %v10132_v59  ;;  %v4278_v13 = vcombine.high %v4277_v9, %v4277_v9  ;;  %9121 = vmatprep.mubr.msk.f32.mxu1 %vm9805_vm0, %v13778_v32  ;;  %v4344_v24 = vrot.slane %v4330_v57, %v10132_v59  ;;  %v4356_v35 = vrot.slane %v4346_v14, %v10132_v59  ;;  %v8564_v9 = vld [vmem:[%s13546_s4 + $0xb8] sm:$0xff] }
 0x223   :  { %v11932_v43 = vrot.slane %v13965_v23, %v10132_v59  ;;  %v4370_v5 = vrot.slane %v4348_v52, %v10132_v59  ;;  %v13970_v23 = vld [vmem:[#allocation31_spill] sm:$0xff]  ;;  %v13972_v52 = vld [vmem:[#allocation10_spill] sm:$0xff]  ;;  %v13973_v40 = vrot.slane %v11774_v58, 1 }
 0x224   :  { %13963 = vst [vmem:[#allocation44_spill] sm:$0xff] %v11923_v29  ;;  %v4349_v54 = vcombine.low %v13967_v0, %v11923_v29  ;;  %v11951_v34 = vrot.slane %v4278_v13, %v10132_v59  ;;  %v11955_v57 = vcombine.high %v11923_v29, %v11923_v29  ;;  %v13971_v0 = vld [vmem:[#allocation25_spill] sm:$0xff]  ;;  %v4378_v42 = vcombine.low %v4356_v35, %v4363_v61 }
 0x225   :  { %13966 = vst [vmem:[#allocation42_spill] sm:$0xff] %v11932_v43  ;;  %v4561_v14 = vcombine.low %v13970_v23, %v11932_v43  ;;  %v4590_v28 = vcombine.low %v13972_v52, %v13971_v0  ;;  %v4504_v36 = vsel %vm884_vm1, %v13973_v40, %v11867_v8  ;;  %v11968_v13 = vcombine.high %v13970_v23, %v13970_v23 }
 0x226   :  { %13968 = vst [vmem:[#allocation45_spill] sm:$0xff] %v11951_v34  ;;  %13969 = vst [vmem:[#allocation40_spill] sm:$0xff] %v11955_v57  ;;  %v4377_v62 = vrot.slane %v4349_v54, %v10132_v59  ;;  %9122 = vmatmul.mubr.msk.f32.gmra.mrb[4].mxu1 %vm1410_vm6, %v4142_v10  ;;  %v4337_v29 = vrot.slane %v4329_v15, %v10132_v59  ;;  %v4395_v45 = vcombine.low %v11951_v34, %v11955_v57 }
 0x227   :  { %13974 = vst [vmem:[#allocation48_spill] sm:$0xff] %v11968_v13  ;;  %v4589_v0 = vrot.slane %v4561_v14, %v10132_v59  ;;  %v4506_v61 = vsel %vm897_vm2, %v4504_v36, %v11935_v56  ;;  %v13975_v54 = vrot.slane %v10334_v19, 5  ;;  %9128 = vmatprep.mubr.msk.f32.mxu1 %vm9805_vm0, %v13778_v32  ;;  %v9420_v35 = vpack.c.bf16 %v8564_v9, %v8563_v30 }
 0x228   :  { %v4379_v23 = vcombine.low %v4370_v5, %v4377_v62  ;;  %v4538_v10 = vrot.slane %v4506_v61, %v10132_v59  ;;  %v4345_v14 = vcombine.low %v4337_v29, %v4344_v24  ;;  %v13978_v62 = vld [vmem:[#allocation36_spill] sm:$0xff]  ;;  %v13979_v5 = vld [vmem:[#allocation35_spill] sm:$0xff]  ;;  %v4402_v19 = vrot.slane %v4395_v45, %v10132_v59  ;;  %v13981_v24 = vld [vmem:[#allocation37_spill] sm:$0xff] }
 0x229   :  { %v5027_v40 = vsel %vm897_vm2, %v5025_v18, %v13975_v54  ;;  %v13976_v15 = vmov %v13975_v54  ;;  %v4591_v57 = vcombine.low %v11873_v27, %v4589_v0  ;;  %v4386_v18 = vrot.slane %v4378_v42, %v10132_v59  ;;  %v13980_v29 = vld [vmem:[#allocation39_spill] sm:$0xff]  ;;  %v13982_v61 = vld [vmem:[#allocation34_spill] sm:$0xff] }
 0x22a   :  { %v5282_v52 = vsel %vm884_vm1, %v10547_v60, %v13976_v15  ;;  %v4393_v54 = vrot.slane %v4379_v23, %v10132_v59  ;;  %v11993_v30 = vrot.slane %v4538_v10, %v10132_v59  ;;  %v4608_v9 = vcombine.low %v13979_v5, %v13978_v62  ;;  %9129 = vmatmul.mubr.msk.f32.vlgmr.msra.gmra.mrb[0].mxu1 %vm1410_vm6, %v4345_v14  ;;  %v13983_v15 = vld [vmem:[#allocation38_spill] sm:$0xff] }
 0x22b   :  { %v4598_v60 = vrot.slane %v4590_v28, %v10132_v59  ;;  %v4605_v27 = vrot.slane %v4591_v57, %v10132_v59  ;;  %v4609_v0 = vcombine.low %v13981_v24, %v13980_v29  ;;  %v12004_v42 = vrot.slane %v13957_v26, 3  ;;  %9421 = vmatpush3.bf16.msra.mxu1 %v9420_v35  ;;  %9131 = vmatprep.mubr.msk.f32.mxu1 %vm9805_vm0, %v13778_v32  ;;  %v13984_v28 = vld [vmem:[#allocation41_spill] sm:$0xff] }
 0x22c   :  { %13977 = vst [vmem:[#allocation53_spill] sm:$0xff] %v11993_v30  ;;  %v4607_v23 = vcombine.low %v11968_v13, %v13982_v61  ;;  %v4610_v45 = vcombine.low %v13983_v15, %v11993_v30  ;;  %v4539_v14 = vcombine.high %v4538_v10, %v4538_v10  ;;  %v4394_v57 = vcombine.low %v4386_v18, %v4393_v54 }
 0x22d   :  { %9422 = vmatprep.subr.bf16.mxu1 %v13810_v41  ;;  %v4606_v5 = vcombine.low %v4598_v60, %v4605_v27  ;;  %v4777_v29 = vcombine.high %v11881_v31, %v11881_v31  ;;  %v12018_v35 = vrot.slane %v11881_v31, %v10132_v59  ;;  %v4624_v36 = vrot.slane %v4608_v9, %v10132_v59 }
 0x22e   :  { %v4638_v61 = vrot.slane %v4610_v45, %v10132_v59  ;;  %v12023_v15 = vrot.slane %v11774_v58, 4  ;;  %v5037_v10 = vrot.slane %v5027_v40, %v10132_v59  ;;  %v5284_v18 = vsel %vm897_vm2, %v5282_v52, %v11091_v21  ;;  %9132 = vmatmul.mubr.msk.f32.gmra.mrb[2].mxu1 %vm1410_vm6, %v4394_v57  ;;  %v8568_v52 = vld [vmem:[%s13546_s4 + $0xc0] sm:$0xff]  ;;  %v13988_v57 = vld [vmem:[#allocation58_spill] sm:$0xff] }
 0x22f   :  { %13985 = vst [vmem:[#allocation52_spill] sm:$0xff] %v12018_v35  ;;  %v4631_v54 = vrot.slane %v4609_v0, %v10132_v59  ;;  %v12031_v60 = vrot.slane %v4777_v29, %v10132_v59  ;;  %9134 = vmatprep.mubr.msk.f32.mxu1 %vm9805_vm0, %v13778_v32  ;;  %v4409_v31 = vrot.slane %v4402_v19, %v10132_v59  ;;  %v8569_v0 = vld [vmem:[%s13546_s4 + $0xc8] sm:$0xff] }
 0x230   :  { %v4617_v9 = vrot.slane %v4607_v23, %v10132_v59  ;;  %v12038_v27 = vrot.slane %v4539_v14, %v10132_v59  ;;  %v12042_v40 = vcombine.high %v11993_v30, %v11993_v30  ;;  %v13989_v19 = vld [vmem:[#allocation61_spill] sm:$0xff]  ;;  %v4765_v14 = vsel %vm884_vm1, %v11867_v8, %v11935_v56 }
 0x231   :  { %v4640_v45 = vcombine.low %v4631_v54, %v4638_v61  ;;  %v4820_v29 = vcombine.low %v13989_v19, %v13988_v57  ;;  %v4822_v23 = vcombine.low %v12018_v35, %v12031_v60  ;;  %v4767_v30 = vsel %vm897_vm2, %v4765_v14, %v12023_v15  ;;  %v13990_v57 = vld [vmem:[#allocation62_spill] sm:$0xff]  ;;  %v13991_v19 = vld [vmem:[#allocation64_spill] sm:$0xff] }
 0x232   :  { %13986 = vst [vmem:[#allocation55_spill] sm:$0xff] %v12038_v27  ;;  %13987 = vst [vmem:[#allocation27_spill] sm:$0xff] %v12042_v40  ;;  %v4639_v24 = vcombine.low %v4617_v9, %v4624_v36  ;;  %v12063_v61 = vcombine.high %v12018_v35, %v12018_v35  ;;  %9135 = vmatmul.mubr.msk.f32.gmra.mrb[4].mxu1 %vm1410_vm6, %v4409_v31  ;;  %v4656_v54 = vcombine.low %v12038_v27, %v12042_v40  ;;  %v13993_v40 = vld [vmem:[#allocation60_spill] sm:$0xff]  ;;  %v13994_v27 = vld [vmem:[#allocation57_spill] sm:$0xff] }
 0x233   :  { %v13992_v8 = vcombine.low %v13990_v57, %v13991_v19  ;;  %v4850_v62 = vrot.slane %v4822_v23, %v10132_v59  ;;  %v4799_v36 = vrot.slane %v4767_v30, %v10132_v59  ;;  %v12075_v9 = vrot.slane %v5037_v10, %v10132_v59  ;;  %9141 = vmatprep.mubr.msk.f32.mxu1 %vm9805_vm0, %v13778_v32  ;;  %v13999_v19 = vld [vmem:[#allocation67_spill] sm:$0xff] }
 0x234   :  { %v12078_v14 = vrot.slane %v5284_v18, %v10132_v59  ;;  %v9423_v31 = vpack.c.bf16 %v8569_v0, %v8568_v52  ;;  %v4819_v35 = vcombine.low %v13994_v27, %v13993_v40  ;;  %v4654_v57 = vrot.slane %v4640_v45, %v10132_v59  ;;  %v12092_v18 = vld [vmem:[%s13546_s4 + $0xd0] sm:$0xff]  ;;  %v12097_v52 = vld [vmem:[%s13546_s4 + $0xd8] sm:$0xff] }
 0x235   :  { %v4843_v34 = vrot.slane %v13992_v8, %v10132_v59  ;;  %v4836_v8 = vrot.slane %v4820_v29, %v10132_v59  ;;  %v12087_v30 = vrot.slane %v4799_v36, %v10132_v59  ;;  %v13996_v0 = vld [vmem:[#allocation71_spill] sm:$0xff]  ;;  %v13997_v27 = vld [vmem:[#allocation70_spill] sm:$0xff]  ;;  %v13998_v45 = vld [vmem:[#allocation20_spill] sm:$0xff]  ;;  %v4647_v13 = vrot.slane %v4639_v24, %v10132_v59 }
 0x236   :  { %v4869_v40 = vcombine.low %v13997_v27, %v13996_v0  ;;  %v4870_v29 = vcombine.low %v13999_v19, %v13998_v45  ;;  %9142 = vmatmul.mubr.msk.f32.vlgmr.msra.gmra.mrb[0].mxu1 %vm1410_vm6, %v4606_v5  ;;  %v4663_v43 = vrot.slane %v4656_v54, %v10132_v59  ;;  %v4868_v39 = vcombine.low %v12063_v61, %v14000_v63 }
 0x237   :  { %v4852_v23 = vcombine.low %v4843_v34, %v4850_v62  ;;  %13995 = vst [vmem:[#allocation54_spill] sm:$0xff] %v12087_v30  ;;  %v5038_v62 = vcombine.high %v5037_v10, %v5037_v10  ;;  %v4871_v2 = vcombine.low %v14001_v22, %v12087_v30  ;;  %v12114_v0 = vrot.slane %v12078_v14, %v10132_v59 }
 0x238   :  { %9424 = vmatpush3.bf16.msra.mxu1 %v9423_v31  ;;  %9144 = vmatprep.mubr.msk.f32.mxu1 %vm9805_vm0, %v13778_v32  ;;  %v4829_v5 = vrot.slane %v4819_v35, %v10132_v59  ;;  %v13736_v10 = vrot.slane %v11774_v58, 5  ;;  %v4655_v54 = vcombine.low %v4647_v13, %v4654_v57  ;;  %v9426_v63 = vpack.c.bf16 %v12097_v52, %v12092_v18  ;;  %v14002_v18 = vld [vmem:[#allocation77_spill] sm:$0xff] }
 0x239   :  { %v12120_v24 = vrot.slane %v5038_v62, %v10132_v59  ;;  %9425 = vmatprep.subr.bf16.mxu1 %v13810_v41  ;;  %v4899_v22 = vrot.slane %v4871_v2, %v10132_v59  ;;  %v4800_v27 = vcombine.high %v4799_v36, %v4799_v36  ;;  %v4885_v45 = vrot.slane %v4869_v40, %v10132_v59 }
 0x23a   :  { %v4851_v31 = vcombine.low %v4829_v5, %v4836_v8  ;;  %v4892_v34 = vrot.slane %v4870_v29, %v10132_v59  ;;  %9145 = vmatmul.mubr.msk.f32.gmra.mrb[2].mxu1 %vm1410_vm6, %v4655_v54  ;;  %v4670_v13 = vrot.slane %v4663_v43, %v10132_v59  ;;  %v4878_v57 = vrot.slane %v4868_v39, %v10132_v59  ;;  %v14006_v5 = vld [vmem:[#allocation75_spill] sm:$0xff]  ;;  %v14007_v54 = vld [vmem:[#allocation18_spill] sm:$0xff] }
 0x23b   :  { %v5083_v35 = vcombine.low %v12075_v9, %v12120_v24  ;;  %v14003_v52 = vcombine.low %v10997_v3, %v14002_v18  ;;  %v5026_v36 = vsel %vm884_vm1, %v11935_v56, %v12023_v15  ;;  %9147 = vmatprep.mubr.msk.f32.mxu1 %vm9805_vm0, %v13778_v32  ;;  %v12153_v3 = vcombine.high %v12075_v9, %v12075_v9 }
 0x23c   :  { %v4901_v8 = vcombine.low %v4892_v34, %v4899_v22  ;;  %v5028_v39 = vsel %vm897_vm2, %v5026_v36, %v13736_v10  ;;  %v4866_v43 = vrot.slane %v4852_v23, %v10132_v59  ;;  %v12157_v29 = vrot.slane %v4800_v27, %v10132_v59 }
 0x23d   :  { %v12138_v2 = vrot.slane %v14003_v52, %v10132_v59  ;;  %v12146_v40 = vrot.slane %v5083_v35, %v10132_v59  ;;  %v12161_v56 = vcombine.high %v12087_v30, %v12087_v30  ;;  %v5060_v34 = vrot.slane %v5028_v39, %v10132_v59  ;;  %v14008_v35 = vld [vmem:[#allocation73_spill] sm:$0xff]  ;;  %v14009_v52 = vld [vmem:[#allocation76_spill] sm:$0xff] }
 0x23e   :  { %14004 = vst [vmem:[#allocation31_spill] sm:$0xff] %v12157_v29  ;;  %v4900_v62 = vcombine.low %v4878_v57, %v4885_v45  ;;  %v5080_v22 = vcombine.low %v14007_v54, %v14006_v5  ;;  %v5081_v36 = vcombine.low %v14009_v52, %v14008_v35  ;;  %9148 = vmatmul.mubr.msk.f32.gmra.mrb[4].mxu1 %vm1410_vm6, %v4670_v13  ;;  %v14011_v45 = vld [vmem:[#allocation82_spill] sm:$0xff]  ;;  %v14012_v5 = vld [vmem:[#allocation21_spill] sm:$0xff]  ;;  %v14013_v13 = vld [vmem:[#allocation84_spill] sm:$0xff] }
 0x23f   :  { %14005 = vst [vmem:[#allocation25_spill] sm:$0xff] %v12161_v56  ;;  %v5113_v10 = vcombine.low %v12138_v2, %v12146_v40  ;;  %v4859_v23 = vrot.slane %v4851_v31, %v10132_v59  ;;  %v4917_v27 = vcombine.low %v12157_v29, %v12161_v56  ;;  %v12175_v19 = vrot.slane %v5060_v34, %v10132_v59  ;;  %v14014_v40 = vld [vmem:[#allocation80_spill] sm:$0xff]  ;;  %v14015_v52 = vld [vmem:[#allocation83_spill] sm:$0xff] }
 0x240   :  { %v5130_v57 = vcombine.low %v14011_v45, %v11076_v38  ;;  %9154 = vmatprep.mubr.msk.f32.mxu1 %vm9805_vm0, %v13778_v32  ;;  %v4915_v39 = vrot.slane %v4901_v8, %v10132_v59  ;;  %v5129_v2 = vcombine.low %v12153_v3, %v14012_v5  ;;  %v5131_v31 = vcombine.low %v14014_v40, %v14013_v13  ;;  %v14016_v8 = vld [vmem:[#allocation103_spill] sm:$0xff] }
 0x241   :  { %14010 = vst [vmem:[#allocation10_spill] sm:$0xff] %v12175_v19  ;;  %v4867_v35 = vcombine.low %v4859_v23, %v4866_v43  ;;  %v5132_v56 = vcombine.low %v14015_v52, %v12175_v19  ;;  %v5061_v30 = vcombine.high %v5060_v34, %v5060_v34  ;;  %v5295_v38 = vcombine.high %v12078_v14, %v12078_v14 }
 0x242   :  { %v14017_v45 = vcombine.low %v11299_v49, %v14016_v8  ;;  %v4908_v5 = vrot.slane %v4900_v62, %v10132_v59  ;;  %v5090_v13 = vrot.slane %v5080_v22, %v10132_v59  ;;  %v5097_v54 = vrot.slane %v5081_v36, %v10132_v59 }
 0x243   :  { %9155 = vmatmul.mubr.msk.f32.vlgmr.msra.gmra.mrb[0].mxu1 %vm1410_vm6, %v4867_v35  ;;  %v4924_v43 = vrot.slane %v4917_v27, %v10132_v59  ;;  %v5146_v34 = vrot.slane %v5130_v57, %v10132_v59  ;;  %v5160_v14 = vrot.slane %v5132_v56, %v10132_v59  ;;  %v12206_v23 = vrot.slane %v5295_v38, %v10132_v59  ;;  %v8578_v56 = vld [vmem:[%s13546_s4 + $0xe0] sm:$0xff] }
 0x244   :  { %v12196_v29 = vrot.slane %v14017_v45, %v10132_v59  ;;  %v14019_v49 = vrot.slane %v13984_v28, 6  ;;  %9427 = vmatpush3.bf16.msra.mxu1 %v9426_v63  ;;  %9157 = vmatprep.mubr.msk.f32.mxu1 %vm9805_vm0, %v13778_v32  ;;  %v4916_v62 = vcombine.low %v4908_v5, %v4915_v39  ;;  %v5139_v22 = vrot.slane %v5129_v2, %v10132_v59  ;;  %v8579_v28 = vld [vmem:[%s13546_s4 + $0xe8] sm:$0xff]  ;;  %v14022_v57 = vld [vmem:[#allocation88_spill] sm:$0xff] }
 0x245   :  { %14018 = vst [vmem:[#allocation36_spill] sm:$0xff] %v12206_v23  ;;  %v5153_v36 = vrot.slane %v5131_v31, %v10132_v59  ;;  %9428 = vmatprep.subr.bf16.mxu1 %v13810_v41  ;;  %v12225_v63 = vrot.slane %v5061_v30, %v10132_v59  ;;  %v12229_v27 = vcombine.high %v12175_v19, %v12175_v19  ;;  %v14023_v39 = vld [vmem:[#allocation90_spill] sm:$0xff]  ;;  %v14024_v8 = vrot.slane %v11774_v58, 5  ;;  %v14034_v19 = vld [vmem:[#allocation99_spill] sm:$0xff] }
 0x246   :  { %v12211_v52 = vsel %vm897_vm2, 0.0, %v14019_v49  ;;  %v5338_v2 = vcombine.low %v14023_v39, %v14022_v57  ;;  %v5340_v31 = vcombine.low %v12114_v0, %v12206_v23  ;;  %v5112_v35 = vcombine.low %v5090_v13, %v5097_v54  ;;  %v14026_v57 = vld [vmem:[#allocation91_spill] sm:$0xff]  ;;  %v14027_v39 = vld [vmem:[#allocation92_spill] sm:$0xff] }
 0x247   :  { %14020 = vst [vmem:[#allocation35_spill] sm:$0xff] %v12225_v63  ;;  %14021 = vst [vmem:[#allocation39_spill] sm:$0xff] %v12229_v27  ;;  %v5162_v38 = vcombine.low %v5153_v36, %v5160_v14  ;;  %v5283_v45 = vsel %vm884_vm1, %v12023_v15, %v14024_v8  ;;  %v12241_v30 = vcombine.high %v12114_v0, %v12114_v0  ;;  %9158 = vmatmul.mubr.msk.f32.gmra.mrb[2].mxu1 %vm1410_vm6, %v4916_v62  ;;  %v14029_v14 = vld [vmem:[#allocation113_spill] sm:$0xff]  ;;  %v14030_v15 = vld [vmem:[#allocation114_spill] sm:$0xff] }
 0x248   :  { %v5161_v5 = vcombine.low %v5139_v22, %v5146_v34  ;;  %v5178_v49 = vcombine.low %v12225_v63, %v12229_v27  ;;  %v14028_v54 = vcombine.low %v14026_v57, %v14027_v39  ;;  %v5368_v58 = vrot.slane %v5340_v31, %v10132_v59  ;;  %9160 = vmatprep.mubr.msk.f32.mxu1 %vm9805_vm0, %v13778_v32  ;;  %v14032_v62 = vld [vmem:[#allocation89_spill] sm:$0xff]  ;;  %v14033_v22 = vld [vmem:[#allocation86_spill] sm:$0xff]  ;;  %v14042_v23 = vld [vmem:[#allocation16_spill] sm:$0xff] }
 0x249   :  { %14025 = vst [vmem:[#allocation34_spill] sm:$0xff] %v12241_v30  ;;  %v14031_v36 = vcombine.low %v14029_v14, %v14030_v15  ;;  %v9429_v34 = vpack.c.bf16 %v8579_v28, %v8578_v56  ;;  %v5337_v40 = vcombine.low %v14033_v22, %v14032_v62  ;;  %v5285_v27 = vsel %vm897_vm2, %v5283_v45, %v11091_v21  ;;  %v14035_v56 = vld [vmem:[#allocation98_spill] sm:$0xff]  ;;  %v14036_v45 = vld [vmem:[#allocation51_spill] sm:$0xff] }
 0x24a   :  { %v5361_v13 = vrot.slane %v14028_v54, %v10132_v59  ;;  %v4931_v57 = vrot.slane %v4924_v43, %v10132_v59  ;;  %v5127_v31 = vrot.slane %v5113_v10, %v10132_v59  ;;  %v12266_v54 = vrot.slane %v5338_v2, %v10132_v59 }
 0x24b   :  { %v12255_v8 = vrot.slane %v14031_v36, %v10132_v59  ;;  %v5176_v15 = vrot.slane %v5162_v38, %v10132_v59  ;;  %v5317_v36 = vrot.slane %v5285_v27, %v10132_v59  ;;  %v5387_v28 = vcombine.low %v14035_v56, %v14034_v19  ;;  %v14041_v56 = vld [vmem:[#allocation96_spill] sm:$0xff] }
 0x24c   :  { %v5370_v14 = vcombine.low %v5361_v13, %v5368_v58  ;;  %9161 = vmatmul.mubr.msk.f32.gmra.mrb[4].mxu1 %vm1410_vm6, %v4931_v57  ;;  %v5120_v43 = vrot.slane %v5112_v35, %v10132_v59  ;;  %v5169_v10 = vrot.slane %v5161_v5, %v10132_v59  ;;  %v5185_v2 = vrot.slane %v5178_v49, %v10132_v59  ;;  %v14038_v13 = vld [vmem:[#allocation95_spill] sm:$0xff]  ;;  %v14040_v57 = vld [vmem:[#allocation22_spill] sm:$0xff] }
 0x24d   :  { %v5551_v38 = vsel %vm897_vm2, %v14036_v45, %v11900_v20  ;;  %9167 = vmatprep.mubr.msk.f32.mxu1 %vm9805_vm0, %v13778_v32  ;;  %v5347_v19 = vrot.slane %v5337_v40, %v10132_v59  ;;  %v12285_v27 = vrot.slane %v5317_v36, %v10132_v59  ;;  %v5386_v58 = vcombine.low %v12241_v30, %v14038_v13 }
 0x24e   :  { %v14039_v5 = vcombine.low %v11526_v12, %v11568_v7  ;;  %v5128_v22 = vcombine.low %v5120_v43, %v5127_v31  ;;  %v5388_v45 = vcombine.low %v14041_v56, %v14040_v57  ;;  %v5561_v40 = vrot.slane %v5551_v38, %v10132_v59  ;;  %v14045_v38 = vld [vmem:[#allocation106_spill] sm:$0xff]  ;;  %v14047_v57 = vld [vmem:[#allocation17_spill] sm:$0xff] }
 0x24f   :  { %14037 = vst [vmem:[#allocation38_spill] sm:$0xff] %v12285_v27  ;;  %v5177_v62 = vcombine.low %v5169_v10, %v5176_v15  ;;  %v5369_v63 = vcombine.low %v5347_v19, %v12266_v54  ;;  %v5389_v13 = vcombine.low %v14042_v23, %v12285_v27  ;;  %v5403_v35 = vrot.slane %v5387_v28, %v10132_v59  ;;  %v14049_v56 = vld [vmem:[#allocation102_spill] sm:$0xff] }
 0x250   :  { %v12294_v49 = vrot.slane %v14039_v5, %v10132_v59  ;;  %9168 = vmatmul.mubr.msk.f32.vlgmr.msra.gmra.mrb[0].mxu1 %vm1410_vm6, %v5128_v22  ;;  %v5192_v12 = vrot.slane %v5185_v2, %v10132_v59  ;;  %v5318_v7 = vcombine.high %v5317_v36, %v5317_v36  ;;  %v5562_v5 = vcombine.high %v5561_v40, %v5561_v40  ;;  %v14044_v2 = vld [vmem:[#allocation107_spill] sm:$0xff]  ;;  %v14046_v22 = vld [vmem:[#allocation101_spill] sm:$0xff] }
 0x251   :  { %v5569_v31 = vrot.slane %v5561_v40, %v10132_v59  ;;  %9430 = vmatpush3.bf16.msra.mxu1 %v9429_v34  ;;  %9170 = vmatprep.mubr.msk.f32.mxu1 %vm9805_vm0, %v13778_v32  ;;  %v5396_v15 = vrot.slane %v5386_v58, %v10132_v59  ;;  %v5417_v54 = vrot.slane %v5389_v13, %v10132_v59  ;;  %v12311_v23 = vrot.slane %v12211_v52, 2  ;;  %v14048_v13 = vld [vmem:[#allocation29_spill] sm:$0xff] }
 0x252   :  { %v14043_v28 = vrot.slane %v12211_v52, 1  ;;  %9431 = vmatprep.subr.bf16.mxu1 %v13810_v41  ;;  %v5410_v36 = vrot.slane %v5388_v45, %v10132_v59  ;;  %v5576_v34 = vrot.slane %v5562_v5, %v10132_v59  ;;  %v5654_v19 = vcombine.low %v14045_v38, %v14044_v2  ;;  %v14050_v2 = vld [vmem:[#allocation104_spill] sm:$0xff] }
 0x253   :  { %v5577_v10 = vcombine.high %v5569_v31, %v5569_v31  ;;  %v5384_v58 = vrot.slane %v5370_v14, %v10132_v59  ;;  %v5604_v40 = vcombine.low %v14047_v57, %v14046_v22  ;;  %v5605_v30 = vcombine.low %v14049_v56, %v14048_v13  ;;  %v8583_v56 = vld [vmem:[%s13546_s4 + $0xf0] sm:$0xff] }
 0x254   :  { %v5550_v43 = vsel %vm884_vm1, %v12211_v52, %v14043_v28  ;;  %9171 = vmatmul.mubr.msk.f32.gmra.mrb[2].mxu1 %vm1410_vm6, %v5177_v62  ;;  %v12331_v45 = vrot.slane %v5318_v7, %v10132_v59  ;;  %v5607_v5 = vcombine.low %v5569_v31, %v5576_v34  ;;  %v8584_v62 = vld [vmem:[%s13546_s4 + $0xf8] sm:$0xff]  ;;  %v12347_v7 = vcombine.high %v12285_v27, %v12285_v27  ;;  %v14053_v13 = vld [vmem:[#allocation30_spill] sm:$0xff] }
 0x255   :  { %v5552_v28 = vsel %vm897_vm2, %v5550_v43, %v12311_v23  ;;  %v5653_v14 = vcombine.low %v5577_v10, %v14050_v2  ;;  %9173 = vmatprep.mubr.msk.f32.mxu1 %vm9805_vm0, %v13778_v32  ;;  %v5419_v43 = vcombine.low %v5410_v36, %v5417_v54  ;;  %v5670_v31 = vrot.slane %v5654_v19, %v10132_v59  ;;  %v14054_v54 = vld [vmem:[#allocation105_spill] sm:$0xff] }
 0x256   :  { %v12334_v39 = vrot.slane %v5552_v28, %v10132_v59  ;;  %14051 = vst [vmem:[#allocation41_spill] sm:$0xff] %v12347_v7  ;;  %v14052_v34 = vrot.slane %v13957_v26, 1  ;;  %v5418_v38 = vcombine.low %v5396_v15, %v5403_v35  ;;  %v5635_v22 = vrot.slane %v5607_v5, %v10132_v59 }
 0x257   :  { %v5655_v36 = vcombine.low %v14054_v54, %v14053_v13  ;;  %v5435_v28 = vcombine.low %v12331_v45, %v12347_v7  ;;  %v12364_v19 = vrot.slane %v5605_v30, %v10132_v59  ;;  %v5663_v2 = vrot.slane %v5653_v14, %v10132_v59  ;;  %v14055_v13 = vld [vmem:[#allocation108_spill] sm:$0xff] }
 0x258   :  { %v5810_v10 = vsel %vm884_vm1, %v14052_v34, %v11900_v20  ;;  %v12357_v57 = vrot.slane %v12334_v39, %v10132_v59  ;;  %9174 = vmatmul.mubr.msk.f32.gmra.mrb[4].mxu1 %vm1410_vm6, %v5192_v12  ;;  %v5377_v15 = vrot.slane %v5369_v63, %v10132_v59  ;;  %v9432_v5 = vpack.c.bf16 %v8584_v62, %v8583_v56 }
 0x259   :  { %v5812_v35 = vsel %vm897_vm2, %v5810_v10, %v12004_v42  ;;  %v5637_v34 = vcombine.low %v12196_v29, %v5635_v22  ;;  %9180 = vmatprep.mubr.msk.f32.mxu1 %vm9805_vm0, %v13778_v32  ;;  %v5433_v30 = vrot.slane %v5419_v43, %v10132_v59  ;;  %v5614_v14 = vrot.slane %v5604_v40, %v10132_v59 }
 0x25a   :  { %v5656_v54 = vcombine.low %v14055_v13, %v12357_v57  ;;  %v5685_v7 = vcombine.low %v5663_v2, %v5670_v31  ;;  %v5822_v10 = vrot.slane %v5812_v35, %v10132_v59  ;;  %v5385_v27 = vcombine.low %v5377_v15, %v5384_v58 }
 0x25b   :  { %v5426_v12 = vrot.slane %v5418_v38, %v10132_v59  ;;  %v5677_v63 = vrot.slane %v5655_v36, %v10132_v59  ;;  %v5442_v56 = vrot.slane %v5435_v28, %v10132_v59  ;;  %v5636_v62 = vcombine.low %v5614_v14, %v12364_v19  ;;  %v7995_v36 = vld [vmem:[%s13543_s1] sm:$0x3]  ;;  %s9808_s1 = smov 64  }
 0x25c   :  { %v5684_v29 = vrot.slane %v5656_v54, %v10132_v59  ;;  %v5823_v22 = vcombine.high %v5822_v10, %v5822_v10  ;;  %v5830_v13 = vrot.slane %v5822_v10, %v10132_v59  ;;  %9181 = vmatmul.mubr.msk.f32.vlgmr.msra.gmra.mrb[0].mxu1 %vm1410_vm6, %v5385_v27  ;;  %v5585_v43 = vcombine.high %v12334_v39, %v12334_v39  ;;  %v14057_v14 = vld [vmem:[#allocation112_spill] sm:$0xff]  ;;  %v14058_v10 = vld [vmem:[#allocation109_spill] sm:$0xff] }
 0x25d   :  { %v12389_v58 = vrot.slane %v12211_v52, 3  ;;  %v14056_v31 = vrot.slane %v12211_v52, 1  ;;  %v12399_v28 = vrot.slane %v13957_v26, 4  ;;  %9433 = vmatpush3.bf16.msra.mxu1 %v9432_v5  ;;  %9183 = vmatprep.mubr.msk.f32.mxu1 %vm9805_vm0, %v13778_v32  ;;  %v5434_v39 = vcombine.low %v5426_v12, %v5433_v30 }
 0x25e   :  { %v5686_v40 = vcombine.low %v5677_v63, %v5684_v29  ;;  %v5693_v27 = vrot.slane %v5685_v7, %v10132_v59  ;;  %v5837_v19 = vrot.slane %v5823_v22, %v10132_v59  ;;  %9434 = vmatprep.subr.bf16.mxu1 %v13810_v41  ;;  %v5838_v15 = vcombine.high %v5830_v13, %v5830_v13  ;;  %v14059_v29 = vld [vmem:[#allocation110_spill] sm:$0xff]  ;;  %v14060_v22 = vld [vmem:[#allocation69_spill] sm:$0xff] }
 0x25f   :  { %v5811_v38 = vsel %vm884_vm1, %v14056_v31, %v12311_v23  ;;  %v5915_v54 = vcombine.low %v11474_v1, %v11478_v55  ;;  %v5449_v5 = vrot.slane %v5442_v56, %v10132_v59  ;;  %v5866_v30 = vcombine.low %v14058_v10, %v14057_v14  ;;  %8003 = vrot.lane.b32.xlu0 %v7995_v36, %s9808_s1  ;;  %v14061_v31 = vld [vmem:[#allocation23_spill] sm:$0xff]  ;;  %v8588_v55 = vld [vmem:[%s13546_s4 + $0x100] sm:$0xff]  ;;  %v8589_v56 = vld [vmem:[%s13546_s4 + $0x108] sm:$0xff] }
 0x260   :  { %v5700_v2 = vrot.slane %v5686_v40, %v10132_v59  ;;  %v5813_v35 = vsel %vm897_vm2, %v5811_v38, %v12389_v58  ;;  %v5868_v12 = vcombine.low %v5830_v13, %v5837_v19  ;;  %9184 = vmatmul.mubr.msk.f32.gmra.mrb[2].mxu1 %vm1410_vm6, %v5434_v39  ;;  %v5865_v40 = vcombine.low %v14060_v22, %v14059_v29  ;;  %v14062_v39 = vld [vmem:[#allocation116_spill] sm:$0xff] }
 0x261   :  { %v12415_v7 = vrot.slane %v5813_v35, %v10132_v59  ;;  %v5914_v38 = vcombine.low %v5838_v15, %v14061_v31  ;;  %v6071_v1 = vsel %vm884_vm1, %v11900_v20, %v12004_v42  ;;  %9186 = vmatprep.mubr.msk.f32.mxu1 %vm9805_vm0, %v13778_v32  ;;  %v14063_v20 = vld [vmem:[#allocation115_spill] sm:$0xff]  ;;  %v5931_v19 = vrot.slane %v5915_v54, %v10132_v59  ;;  %v14064_v29 = vld [vmem:[#allocation32_spill] sm:$0xff] }
 0x262   :  { %v5701_v63 = vcombine.low %v5693_v27, %v5700_v2  ;;  %v12433_v13 = vrot.slane %v5868_v12, %v10132_v59  ;;  %v5916_v27 = vcombine.low %v14063_v20, %v14062_v39  ;;  %v5651_v2 = vrot.slane %v5637_v34, %v10132_v59 }
 0x263   :  { %v12437_v36 = vrot.slane %v12415_v7, %v10132_v59  ;;  %v5599_v35 = vrot.slane %v5585_v43, %v10132_v59  ;;  %v5600_v15 = vcombine.high %v12357_v57, %v12357_v57  ;;  %v6073_v14 = vsel %vm897_vm2, %v6071_v1, %v12399_v28 }
 0x264   :  { %v12449_v10 = vrot.slane %v5866_v30, %v10132_v59  ;;  %v5898_v12 = vcombine.low %v12255_v8, %v12433_v13  ;;  %v5924_v54 = vrot.slane %v5914_v38, %v10132_v59  ;;  %9187 = vmatmul.mubr.msk.f32.gmra.mrb[4].mxu1 %vm1410_vm6, %v5449_v5  ;;  %v5644_v34 = vrot.slane %v5636_v62, %v10132_v59 }
 0x265   :  { %v5917_v22 = vcombine.low %v14064_v29, %v12437_v36  ;;  %v9435_v43 = vpack.c.bf16 %v8589_v56, %v8588_v55  ;;  %v6083_v57 = vrot.slane %v6073_v14, %v10132_v59  ;;  %v12460_v31 = vrot.slane %v12211_v52, 4  ;;  %9193 = vmatprep.mubr.msk.f32.mxu1 %vm9805_vm0, %v13778_v32 }
 0x266   :  { %v5875_v8 = vrot.slane %v5865_v40, %v10132_v59  ;;  %v5938_v30 = vrot.slane %v5916_v27, %v10132_v59  ;;  %v5946_v38 = vcombine.low %v5924_v54, %v5931_v19  ;;  %v5652_v13 = vcombine.low %v5644_v34, %v5651_v2 }
 0x267   :  { %v5945_v1 = vrot.slane %v5917_v22, %v10132_v59  ;;  %v5702_v5 = vcombine.low %v5599_v35, %v5600_v15  ;;  %v6084_v39 = vcombine.high %v6083_v57, %v6083_v57  ;;  %v6091_v62 = vrot.slane %v6083_v57, %v10132_v59 }
 0x268   :  { %v14065_v55 = vcombine.low %v11662_v16, %v11683_v47  ;;  %v5897_v20 = vcombine.low %v5875_v8, %v12449_v10  ;;  %v6072_v40 = vsel %vm884_vm1, %v12311_v23, %v12389_v58  ;;  %9194 = vmatmul.mubr.msk.f32.vlgmr.msra.gmra.mrb[0].mxu1 %vm1410_vm6, %v5652_v13  ;;  %v5846_v27 = vcombine.high %v12415_v7, %v12415_v7  ;;  %v14066_v8 = vld [vmem:[#allocation120_spill] sm:$0xff] }
 0x269   :  { %v5947_v14 = vcombine.low %v5938_v30, %v5945_v1  ;;  %v6098_v19 = vrot.slane %v6084_v39, %v10132_v59  ;;  %v6074_v2 = vsel %vm897_vm2, %v6072_v40, %v12460_v31  ;;  %v6099_v16 = vcombine.high %v6091_v62, %v6091_v62  ;;  %9436 = vmatpush3.bf16.msra.mxu1 %v9435_v43  ;;  %v14067_v30 = vld [vmem:[#allocation119_spill] sm:$0xff] }
 0x26a   :  { %v12472_v56 = vrot.slane %v14065_v55, %v10132_v59  ;;  %v6328_v47 = vrot.slane %v13957_v26, 5  ;;  %9196 = vmatprep.mubr.msk.f32.mxu1 %vm9805_vm0, %v13778_v32  ;;  %v5954_v35 = vrot.slane %v5946_v38, %v10132_v59  ;;  %v12490_v15 = vrot.slane %v6074_v2, %v10132_v59  ;;  %9437 = vmatprep.subr.bf16.mxu1 %v13810_v41 }
 0x26b   :  { %v5961_v23 = vrot.slane %v5947_v14, %v10132_v59  ;;  %v5709_v7 = vrot.slane %v5702_v5, %v10132_v59  ;;  %v6129_v10 = vcombine.low %v6091_v62, %v6098_v19  ;;  %v6175_v29 = vcombine.low %v6099_v16, %v11591_v46  ;;  %v14068_v16 = vld [vmem:[#allocation118_spill] sm:$0xff] }
 0x26c   :  { %v6176_v22 = vcombine.low %v11602_v37, %v11606_v11  ;;  %v12501_v34 = vrot.slane %v12490_v15, %v10132_v59  ;;  %v6177_v43 = vcombine.low %v11596_v17, %v11615_v51  ;;  %v6332_v57 = vsel %vm884_vm1, %v12004_v42, %v12399_v28  ;;  %9197 = vmatmul.mubr.msk.f32.gmra.mrb[2].mxu1 %vm1410_vm6, %v5701_v63  ;;  %v8593_v51 = vld [vmem:[%s13546_s4 + $0x110] sm:$0xff]  ;;  %v8594_v17 = vld [vmem:[%s13546_s4 + $0x118] sm:$0xff] }
 0x26d   :  { %v12497_v54 = vcombine.low %v5954_v35, %v5961_v23  ;;  %v5860_v46 = vrot.slane %v5846_v27, %v10132_v59  ;;  %v6127_v37 = vcombine.low %v14067_v30, %v14066_v8  ;;  %v12513_v11 = vrot.slane %v6129_v10, %v10132_v59  ;;  %9199 = vmatprep.mubr.msk.f32.mxu1 %vm9805_vm0, %v13778_v32  ;;  %v14069_v35 = vld [vmem:[#allocation117_spill] sm:$0xff] }
 0x26e   :  { %v6192_v1 = vrot.slane %v6176_v22, %v10132_v59  ;;  %v5861_v42 = vcombine.high %v12437_v36, %v12437_v36  ;;  %v6178_v63 = vcombine.low %v11619_v50, %v12501_v34  ;;  %v6185_v38 = vrot.slane %v6175_v29, %v10132_v59 }
 0x26f   :  { %v6334_v13 = vsel %vm897_vm2, %v6332_v57, %v6328_v47  ;;  %v5716_v5 = vrot.slane %v5709_v7, %v10132_v59  ;;  %v5912_v39 = vrot.slane %v5898_v12, %v10132_v59  ;;  %v6159_v62 = vcombine.low %v12294_v49, %v12513_v11 }
 0x270   :  { %v6344_v55 = vrot.slane %v6334_v13, %v10132_v59  ;;  %v6199_v36 = vrot.slane %v6177_v43, %v10132_v59  ;;  %v6206_v14 = vrot.slane %v6178_v63, %v10132_v59  ;;  %v6207_v50 = vcombine.low %v6185_v38, %v6192_v1 }
 0x271   :  { %v6329_v40 = vrot.slane %v12211_v52, 5  ;;  %9200 = vmatmul.mubr.msk.f32.gmra.mrb[4].mxu1 %vm1410_vm6, %v5716_v5  ;;  %v5905_v27 = vrot.slane %v5897_v20, %v10132_v59  ;;  %v9438_v19 = vpack.c.bf16 %v8594_v17, %v8593_v51  ;;  %v5963_v49 = vcombine.low %v5860_v46, %v5861_v42  ;;  %v8598_v17 = vld [vmem:[%s13546_s4 + $0x120] sm:$0xff] }
 0x272   :  { %v6345_v2 = vcombine.high %v6344_v55, %v6344_v55  ;;  %v6352_v12 = vrot.slane %v6344_v55, %v10132_v59  ;;  %9206 = vmatprep.mubr.msk.f32.mxu1 %vm9805_vm0, %v13778_v32  ;;  %v6126_v23 = vcombine.low %v14069_v35, %v14068_v16  ;;  %v6143_v7 = vrot.slane %v6127_v37, %v10132_v59 }
 0x273   :  { %v6208_v10 = vcombine.low %v6199_v36, %v6206_v14  ;;  %v5913_v29 = vcombine.low %v5905_v27, %v5912_v39  ;;  %v6333_v20 = vsel %vm884_vm1, %v12389_v58, %v12460_v31  ;;  %v6215_v43 = vrot.slane %v6207_v50, %v10132_v59 }
 0x274   :  { %v6359_v52 = vrot.slane %v6345_v2, %v10132_v59  ;;  %v6360_v22 = vcombine.high %v6352_v12, %v6352_v12  ;;  %v6107_v46 = vcombine.high %v12490_v15, %v12490_v15  ;;  %v6335_v8 = vsel %vm897_vm2, %v6333_v20, %v6329_v40  ;;  %v14073_v2 = vld [vmem:[#allocation121_spill] sm:$0xff] }
 0x275   :  { %v6222_v57 = vrot.slane %v6208_v10, %v10132_v59  ;;  %9207 = vmatmul.mubr.msk.f32.vlgmr.msra.gmra.mrb[0].mxu1 %vm1410_vm6, %v5913_v29  ;;  %v12559_v37 = vrot.slane %v6335_v8, %v10132_v59  ;;  %v6437_v58 = vcombine.low %v11705_v44, %v11709_v53  ;;  %v5970_v1 = vrot.slane %v5963_v49, %v10132_v59  ;;  %v14074_v49 = vld [vmem:[#allocation122_spill] sm:$0xff] }
 0x276   :  { %v6390_v30 = vcombine.low %v6352_v12, %v6359_v52  ;;  %v6436_v11 = vcombine.low %v6360_v22, %v11692_v6  ;;  %9439 = vmatpush3.bf16.msra.mxu1 %v9438_v19  ;;  %9209 = vmatprep.mubr.msk.f32.mxu1 %vm9805_vm0, %v13778_v32  ;;  %v6136_v15 = vrot.slane %v6126_v23, %v10132_v59  ;;  %v8599_v6 = vld [vmem:[%s13546_s4 + $0x128] sm:$0xff]  ;;  %v14072_v19 = vld [vmem:[#allocation123_spill] sm:$0xff] }
 0x277   :  { %v12568_v51 = vcombine.low %v6215_v43, %v6222_v57  ;;  %9440 = vmatprep.subr.bf16.mxu1 %v13810_v41  ;;  %v12582_v53 = vrot.slane %v12559_v37, %v10132_v59  ;;  %v6438_v42 = vcombine.low %v11696_v48, %v11724_v4  ;;  %v6453_v63 = vrot.slane %v6437_v58, %v10132_v59  ;;  %v14076_v43 = vld [vmem:[#allocation133_spill] sm:$0xff]  ;;  %v14077_v57 = vld [vmem:[#allocation132_spill] sm:$0xff]  ;;  %v14079_v58 = vld [vmem:[#allocation26_spill] sm:$0xff] }
 0x278   :  { %v12578_v44 = vrot.slane %v6390_v30, %v10132_v59  ;;  %v14070_v38 = vcombine.low %v11788_v25, %v11800_v33  ;;  %v6158_v5 = vcombine.low %v6136_v15, %v6143_v7  ;;  %v6446_v39 = vrot.slane %v6436_v11, %v10132_v59  ;;  %v14071_v33 = vld [vmem:[#allocation125_spill] sm:$0xff]  ;;  %v14078_v11 = vld [vmem:[#allocation136_spill] sm:$0xff] }
 0x279   :  { %v6589_v55 = vsel %vm884_vm1, %v12399_v28, %v6328_v47  ;;  %9210 = vmatmul.mubr.msk.f32.gmra.mrb[2].mxu1 %vm1410_vm6, %v12497_v54  ;;  %v6121_v48 = vrot.slane %v6107_v46, %v10132_v59  ;;  %v6122_v4 = vcombine.high %v12501_v34, %v12501_v34  ;;  %v6439_v36 = vcombine.low %v14071_v33, %v12582_v53  ;;  %v14084_v33 = vld [vmem:[#allocation46_spill] sm:$0xff] }
 0x27a   :  { %v12591_v13 = vrot.slane %v14070_v38, %v10132_v59  ;;  %v6420_v25 = vcombine.low %v12472_v56, %v12578_v44  ;;  %9212 = vmatprep.mubr.msk.f32.mxu1 %vm9805_vm0, %v13778_v32  ;;  %v6173_v26 = vrot.slane %v6159_v62, %v10132_v59  ;;  %v9441_v28 = vpack.c.bf16 %v8599_v6, %v8598_v17  ;;  %v14075_v62 = vld [vmem:[#allocation124_spill] sm:$0xff]  ;;  %v14081_v6 = vld [vmem:[#allocation135_spill] sm:$0xff] }
 0x27b   :  { %v6468_v47 = vcombine.low %v6446_v39, %v6453_v63  ;;  %v6591_v54 = vsel %vm897_vm2, %v6589_v55, %v11091_v21  ;;  %v5977_v14 = vrot.slane %v5970_v1, %v10132_v59  ;;  %v6460_v34 = vrot.slane %v6438_v42, %v10132_v59  ;;  %v14083_v39 = vld [vmem:[#allocation130_spill] sm:$0xff] }
 0x27c   :  { %v6467_v50 = vrot.slane %v6439_v36, %v10132_v59  ;;  %v6601_v56 = vrot.slane %v6591_v54, %v10132_v59  ;;  %v6166_v27 = vrot.slane %v6158_v5, %v10132_v59  ;;  %v6387_v12 = vcombine.low %v14073_v2, %v14072_v19  ;;  %v14085_v36 = vld [vmem:[#allocation111_spill] sm:$0xff] }
 0x27d   :  { %v6388_v16 = vcombine.low %v14075_v62, %v14074_v49  ;;  %v6590_v35 = vsel %vm884_vm1, %v12460_v31, %v6329_v40  ;;  %9213 = vmatmul.mubr.msk.f32.gmra.mrb[4].mxu1 %vm1410_vm6, %v5977_v14  ;;  %v6224_v23 = vcombine.low %v6121_v48, %v6122_v4  ;;  %v6476_v20 = vrot.slane %v6468_v47, %v10132_v59  ;;  %v14089_v2 = vld [vmem:[#allocation15_spill] sm:$0xff] }
 0x27e   :  { %v6469_v7 = vcombine.low %v6460_v34, %v6467_v50  ;;  %v6602_v10 = vcombine.high %v6601_v56, %v6601_v56  ;;  %v6609_v29 = vrot.slane %v6601_v56, %v10132_v59  ;;  %9219 = vmatprep.mubr.msk.f32.mxu1 %vm9805_vm0, %v13778_v32  ;;  %v6174_v52 = vcombine.low %v6166_v27, %v6173_v26  ;;  %v14088_v27 = vld [vmem:[#allocation47_spill] sm:$0xff] }
 0x27f   :  { %v6592_v22 = vsel %vm897_vm2, %v6590_v35, %v11091_v21  ;;  %v6694_v46 = vcombine.low %v14077_v57, %v14076_v43  ;;  %v14080_v1 = vcombine.low %v14078_v11, %v14079_v58  ;;  %v6404_v17 = vrot.slane %v6388_v16, %v10132_v59  ;;  %v14082_v21 = vld [vmem:[#allocation131_spill] sm:$0xff]  ;;  %v14090_v35 = vld [vmem:[#allocation42_spill] sm:$0xff] }
 0x280   :  { %v6483_v31 = vrot.slane %v6469_v7, %v10132_v59  ;;  %v6616_v40 = vrot.slane %v6602_v10, %v10132_v59  ;;  %v6617_v8 = vcombine.high %v6609_v29, %v6609_v29  ;;  %v12635_v30 = vrot.slane %v6592_v22, %v10132_v59  ;;  %v8604_v22 = vld [vmem:[%s13546_s4 + $0x138] sm:$0xff] }
 0x281   :  { %v6864_v15 = vrot.slane %v14080_v1, %v10132_v59  ;;  %v6695_v44 = vcombine.low %v14082_v21, %v14081_v6  ;;  %v6710_v42 = vrot.slane %v6694_v46, %v10132_v59  ;;  %9220 = vmatmul.mubr.msk.f32.vlgmr.msra.gmra.mrb[0].mxu1 %vm1410_vm6, %v6174_v52  ;;  %v6231_v48 = vrot.slane %v6224_v23, %v10132_v59  ;;  %v14091_v23 = vld [vmem:[#allocation48_spill] sm:$0xff]  ;;  %v14095_v58 = vld [vmem:[#allocation127_spill] sm:$0xff]  ;;  %v14096_v1 = vld [vmem:[#allocation129_spill] sm:$0xff] }
 0x282   :  { %v12646_v63 = vcombine.low %v6476_v20, %v6483_v31  ;;  %v6647_v38 = vcombine.low %v6609_v29, %v6616_v40  ;;  %v12650_v5 = vrot.slane %v12635_v30, %v10132_v59  ;;  %v6693_v55 = vcombine.low %v6617_v8, %v14083_v39  ;;  %9442 = vmatpush3.bf16.msra.mxu1 %v9441_v28  ;;  %v14087_v28 = vld [vmem:[#allocation134_spill] sm:$0xff]  ;;  %v14093_v31 = vld [vmem:[#allocation52_spill] sm:$0xff] }
 0x283   :  { %9222 = vmatprep.mubr.msk.f32.mxu1 %vm9805_vm0, %v13778_v32  ;;  %v6397_v4 = vrot.slane %v6387_v12, %v10132_v59  ;;  %v14086_v26 = vcombine.low %v14084_v33, %v14085_v36  ;;  %9443 = vmatprep.subr.bf16.mxu1 %v13810_v41  ;;  %v6368_v54 = vcombine.high %v12559_v37, %v12559_v37  ;;  %v8603_v20 = vld [vmem:[%s13546_s4 + $0x130] sm:$0xff]  ;;  %v14094_v40 = vld [vmem:[#allocation64_spill] sm:$0xff] }
 0x284   :  { %v12665_v14 = vrot.slane %v6647_v38, %v10132_v59  ;;  %v6696_v34 = vcombine.low %v14087_v28, %v12650_v5  ;;  %v6703_v50 = vrot.slane %v6693_v55, %v10132_v59  ;;  %v6866_v12 = vcombine.low %v6864_v15, %v14089_v2 }
 0x285   :  { %v6857_v47 = vrot.slane %v14086_v26, %v10132_v59  ;;  %v6419_v56 = vcombine.low %v6397_v4, %v6404_v17  ;;  %9223 = vmatmul.mubr.msk.f32.gmra.mrb[2].mxu1 %vm1410_vm6, %v12568_v51  ;;  %v6717_v37 = vrot.slane %v6695_v44, %v10132_v59  ;;  %v14092_v7 = vcombine.low %v14090_v35, %v14091_v23  ;;  %v14100_v4 = vld [vmem:[#allocation126_spill] sm:$0xff]  ;;  %v14101_v26 = vld [vmem:[#allocation28_spill] sm:$0xff] }
 0x286   :  { %v6677_v49 = vcombine.low %v12591_v13, %v12665_v14  ;;  %v6724_v62 = vrot.slane %v6696_v34, %v10132_v59  ;;  %v6725_v16 = vcombine.low %v6703_v50, %v6710_v42  ;;  %9225 = vmatprep.mubr.msk.f32.mxu1 %vm9805_vm0, %v13778_v32  ;;  %v6238_v29 = vrot.slane %v6231_v48, %v10132_v59  ;;  %v14098_v42 = vld [vmem:[#allocation9_spill] sm:$0xff]  ;;  %v14099_v48 = vld [vmem:[#allocation128_spill] sm:$0xff] }
 0x287   :  { %v6865_v19 = vcombine.low %v14088_v27, %v6857_v47  ;;  %v7037_v10 = vrot.slane %v14092_v7, %v10132_v59  ;;  %v12689_v13 = vrot.slane %v6866_v12, %v10132_v59  ;;  %v6434_v52 = vrot.slane %v6420_v25, %v10132_v59  ;;  %v14102_v47 = vld [vmem:[#allocation33_spill] sm:$0xff]  ;;  %v14104_v27 = vld [vmem:[#allocation63_spill] sm:$0xff] }
 0x288   :  { %v6382_v43 = vrot.slane %v6368_v54, %v10132_v59  ;;  %v6383_v57 = vcombine.high %v12582_v53, %v12582_v53  ;;  %v6726_v46 = vcombine.low %v6717_v37, %v6724_v62  ;;  %v7195_v8 = vcombine.low %v14094_v40, %v14093_v31  ;;  %v14106_v37 = vld [vmem:[#allocation65_spill] sm:$0xff]  ;;  %v14112_v40 = vld [vmem:[#allocation79_spill] sm:$0xff] }
 0x289   :  { %v12686_v51 = vrot.slane %v6865_v19, %v10132_v59  ;;  %9226 = vmatmul.mubr.msk.f32.gmra.mrb[4].mxu1 %vm1410_vm6, %v6238_v29  ;;  %v6427_v11 = vrot.slane %v6419_v56, %v10132_v59  ;;  %v6645_v15 = vcombine.low %v14096_v1, %v14095_v58  ;;  %v6733_v17 = vrot.slane %v6725_v16, %v10132_v59 }
 0x28a   :  { %v6740_v6 = vrot.slane %v6726_v46, %v10132_v59  ;;  %v14097_v53 = vcombine.low %v12031_v60, %v12063_v61  ;;  %9232 = vmatprep.mubr.msk.f32.mxu1 %vm9805_vm0, %v13778_v32  ;;  %v9444_v44 = vpack.c.bf16 %v8604_v22, %v8603_v20  ;;  %v7039_v38 = vcombine.low %v7037_v10, %v14098_v42  ;;  %v14108_v22 = vld [vmem:[#allocation78_spill] sm:$0xff]  ;;  %v14116_v42 = vld [vmem:[#allocation40_spill] sm:$0xff] }
 0x28b   :  { %v6881_v25 = vcombine.low %v12686_v51, %v12689_v13  ;;  %v6435_v39 = vcombine.low %v6427_v11, %v6434_v52  ;;  %v6485_v55 = vcombine.low %v6382_v43, %v6383_v57  ;;  %v6644_v33 = vcombine.low %v14100_v4, %v14099_v48  ;;  %v8608_v52 = vld [vmem:[%s13546_s4 + $0x140] sm:$0xff]  ;;  %v14110_v57 = vld [vmem:[#allocation34_spill] sm:$0xff] }
 0x28c   :  { %v7210_v21 = vrot.slane %v14097_v53, %v10132_v59  ;;  %v12720_v36 = vcombine.low %v6733_v17, %v6740_v6  ;;  %v14103_v54 = vcombine.low %v14101_v26, %v14102_v47  ;;  %v12729_v60 = vrot.slane %v7039_v38, %v10132_v59  ;;  %v14113_v6 = vld [vmem:[#allocation45_spill] sm:$0xff]  ;;  %v14114_v53 = vld [vmem:[#allocation44_spill] sm:$0xff]  ;;  %v14118_v26 = vld [vmem:[#allocation94_spill] sm:$0xff] }
 0x28d   :  { %v7368_v61 = vcombine.low %v14002_v18, %v12075_v9  ;;  %9233 = vmatmul.mubr.msk.f32.vlgmr.msra.gmra.mrb[0].mxu1 %vm1410_vm6, %v6435_v39  ;;  %v6661_v28 = vrot.slane %v6645_v15, %v10132_v59  ;;  %v7203_v34 = vrot.slane %v7195_v8, %v10132_v59  ;;  %v6625_v50 = vcombine.high %v12635_v30, %v12635_v30  ;;  %v14117_v48 = vld [vmem:[#allocation93_spill] sm:$0xff] }
 0x28e   :  { %v12726_v14 = vrot.slane %v14103_v54, %v10132_v59  ;;  %9445 = vmatpush3.bf16.msra.mxu1 %v9444_v44  ;;  %9235 = vmatprep.mubr.msk.f32.mxu1 %vm9805_vm0, %v13778_v32  ;;  %v7212_v19 = vcombine.low %v7210_v21, %v14104_v27  ;;  %v14105_v9 = vcombine.low %v12120_v24, %v12153_v3  ;;  %v14107_v24 = vld [vmem:[#allocation92_spill] sm:$0xff]  ;;  %v14115_v44 = vld [vmem:[#allocation13_spill] sm:$0xff] }
 0x28f   :  { %v6492_v2 = vrot.slane %v6485_v55, %v10132_v59  ;;  %9446 = vmatprep.subr.bf16.mxu1 %v13810_v41  ;;  %v6654_v12 = vrot.slane %v6644_v33, %v10132_v59  ;;  %v7211_v62 = vcombine.low %v14106_v37, %v7203_v34  ;;  %v7541_v3 = vcombine.low %v14107_v24, %v12114_v0  ;;  %v8609_v0 = vld [vmem:[%s13546_s4 + $0x148] sm:$0xff]  ;;  %v8010_v54 = vld [vmem:[%s13548_s6 + $0x18] sm:$0xff] }
 0x290   :  { %v7054_v56 = vcombine.low %v12726_v14, %v12729_v60  ;;  %v7383_v18 = vrot.slane %v14105_v9, %v10132_v59  ;;  %v12752_v30 = vrot.slane %v7212_v19, %v10132_v59  ;;  %v6639_v23 = vrot.slane %v6625_v50, %v10132_v59  ;;  %v8008_v33 = vld [vmem:[%s13548_s6 + $0x8] sm:$0xff]  ;;  %v14136_v60 = vld [vmem:[#allocation11_spill] sm:$0xff] }
 0x291   :  { %9236 = vmatmul.mubr.msk.f32.gmra.mrb[2].mxu1 %vm1410_vm6, %v12646_v63  ;;  %v6676_v16 = vcombine.low %v6654_v12, %v6661_v28  ;;  %v12757_v35 = vrot.slane %v7211_v62, %v10132_v59  ;;  %v6640_v7 = vcombine.high %v12650_v5, %v12650_v5  ;;  %v7376_v10 = vrot.slane %v7368_v61, %v10132_v59  ;;  %v14109_v5 = vld [vmem:[#allocation36_spill] sm:$0xff]  ;;  %v8009_v28 = vld [vmem:[%s13548_s6 + $0x10] sm:$0xff]  ;;  %v14119_v34 = vld [vmem:[#allocation49_spill] sm:$0xff] }
 0x292   :  { %9238 = vmatprep.mubr.msk.f32.mxu1 %vm9805_vm0, %v13778_v32  ;;  %v6499_v29 = vrot.slane %v6492_v2, %v10132_v59  ;;  %v6691_v63 = vrot.slane %v6677_v49, %v10132_v59  ;;  %v7385_v43 = vcombine.low %v7383_v18, %v14108_v22  ;;  %v14111_v46 = vcombine.low %v14109_v5, %v14110_v57  ;;  %v8007_v61 = vld [vmem:[%s13548_s6] sm:$0xff]  ;;  %v14120_v50 = vld [vmem:[#allocation14_spill] sm:$0xff]  ;;  %v8014_v18 = vld [vmem:[%s13548_s6 + $0x38] sm:$0xff] }
 0x293   :  { %v7227_v20 = vcombine.low %v12757_v35, %v12752_v30  ;;  %v7384_v49 = vcombine.low %v14112_v40, %v7376_v10  ;;  %v6684_v8 = vrot.slane %v6676_v16, %v10132_v59  ;;  %v9447_v58 = vpack.c.bf16 %v8609_v0, %v8608_v52  ;;  %v8012_v9 = vld [vmem:[%s13548_s6 + $0x28] sm:$0xff]  ;;  %v8614_v0 = vld [vmem:[%s13546_s4 + $0x158] sm:$0xff] }
 0x294   :  { %v7556_v31 = vrot.slane %v14111_v46, %v10132_v59  ;;  %v12786_v11 = vrot.slane %v7385_v43, %v10132_v59  ;;  %v6742_v1 = vcombine.low %v6639_v23, %v6640_v7  ;;  %v6883_v21 = vcombine.low %v14114_v53, %v14113_v6  ;;  %v8013_v23 = vld [vmem:[%s13548_s6 + $0x30] sm:$0xff]  ;;  %v8015_v46 = vld [vmem:[%s13548_s6 + $0x40] sm:$0xff] }
 0x295   :  { %9239 = vmatmul.mubr.msk.f32.gmra.mrb[4].mxu1 %vm1410_vm6, %v6499_v29  ;;  %v12791_v15 = vrot.slane %v7384_v49, %v10132_v59  ;;  %v6692_v17 = vcombine.low %v6684_v8, %v6691_v63  ;;  %v6884_v38 = vcombine.low %v14116_v42, %v14115_v44  ;;  %v7549_v39 = vrot.slane %v7541_v3, %v10132_v59  ;;  %v8011_v3 = vld [vmem:[%s13548_s6 + $0x20] sm:$0xff]  ;;  %v8016_v29 = vld [vmem:[%s13548_s6 + $0x48] sm:$0xff]  ;;  %v8018_v63 = vld [vmem:[%s13548_s6 + $0x58] sm:$0xff] }
 0x296   :  { %9245 = vmatprep.mubr.msk.f32.mxu1 %vm9805_vm0, %v13778_v32  ;;  %v7558_v4 = vcombine.low %v7556_v31, %v14117_v48  ;;  %v6882_v27 = vcombine.low %v14120_v50, %v14119_v34  ;;  %v6749_v2 = vrot.slane %v6742_v1, %v10132_v59  ;;  %v6898_v12 = vrot.slane %v6883_v21, %v10132_v59  ;;  %v8017_v31 = vld [vmem:[%s13548_s6 + $0x50] sm:$0xff]  ;;  %v14121_v40 = vld [vmem:[#allocation12_spill] sm:$0xff]  ;;  %v8020_v8 = vld [vmem:[%s13548_s6 + $0x68] sm:$0xff] }
 0x297   :  { %v7400_v55 = vcombine.low %v12791_v15, %v12786_v11  ;;  %v7557_v47 = vcombine.low %v14118_v26, %v7549_v39  ;;  %v6905_v37 = vrot.slane %v6884_v38, %v10132_v59  ;;  %v9461_v16 = vpack.c.bf16 %v8010_v54, %v8008_v33  ;;  %v14123_v6 = vld [vmem:[#allocation53_spill] sm:$0xff]  ;;  %v14124_v44 = vld [vmem:[#allocation6_spill] sm:$0xff]  ;;  %v14125_v42 = vld [vmem:[#allocation27_spill] sm:$0xff] }
 0x298   :  { %v12820_v19 = vrot.slane %v7558_v4, %v10132_v59  ;;  %v9463_v24 = vpack.c.bf16 %v8009_v28, %v8007_v61  ;;  %v9465_v10 = vpack.c.bf16 %v8014_v18, %v8012_v9  ;;  %v6756_v52 = vrot.slane %v6749_v2, %v10132_v59  ;;  %v8019_v4 = vld [vmem:[%s13548_s6 + $0x60] sm:$0xff]  ;;  %v8021_v33 = vld [vmem:[%s13548_s6 + $0x70] sm:$0xff]  ;;  %v8026_v54 = vld [vmem:[%s13548_s6 + $0x98] sm:$0xff] }
 0x299   :  { %9246 = vmatmul.mubr.msk.f32.vlgmr.msra.gmra.mrb[0].mxu1 %vm1410_vm6, %v6692_v17  ;;  %v12833_v62 = vrot.slane %v7557_v47, %v10132_v59  ;;  %9462 = vmatprep.subr.bf16.mxu0 %v9461_v16  ;;  %v6891_v22 = vrot.slane %v6882_v27, %v10132_v59  ;;  %v6907_v43 = vcombine.low %v6898_v12, %v6905_v37  ;;  %v14122_v17 = vld [vmem:[#allocation55_spill] sm:$0xff]  ;;  %v8024_v47 = vld [vmem:[%s13548_s6 + $0x88] sm:$0xff]  ;;  %v8023_v9 = vld [vmem:[%s13548_s6 + $0x80] sm:$0xff] }
 0x29a   :  { %9448 = vmatpush3.bf16.msra.mxu1 %v9447_v58  ;;  %9248 = vmatprep.mubr.msk.f32.mxu1 %vm9805_vm0, %v13778_v32  ;;  %v9467_v5 = vpack.c.bf16 %v8013_v23, %v8011_v3  ;;  %v9469_v57 = vpack.c.bf16 %v8018_v63, %v8016_v29  ;;  %v8022_v58 = vld [vmem:[%s13548_s6 + $0x78] sm:$0xff]  ;;  %v7056_v53 = vcombine.low %v14123_v6, %v14122_v17  ;;  %v14126_v61 = vld [vmem:[#allocation37_spill] sm:$0xff]  ;;  %v8025_v18 = vld [vmem:[%s13548_s6 + $0x90] sm:$0xff] }
 0x29b   :  { %9449 = vmatprep.subr.bf16.mxu1 %v13810_v41  ;;  %v7573_v7 = vcombine.low %v12833_v62, %v12820_v19  ;;  %9464 = vmatpush1.bf16.msra.mxu0 %v9463_v24  ;;  %v6906_v49 = vcombine.low %v6891_v22, %v14121_v40  ;;  %v6921_v21 = vrot.slane %v6907_v43, %v10132_v59  ;;  %v14127_v28 = vld [vmem:[#allocation7_spill] sm:$0xff]  ;;  %v14128_v2 = vld [vmem:[#allocation50_spill] sm:$0xff]  ;;  %v8618_v24 = vld [vmem:[%s13546_s4 + $0x160] sm:$0xff] }
 0x29c   :  { %9466 = vmatprep.subr.bf16.mxu0 %v9465_v10  ;;  %v7057_v38 = vcombine.low %v14125_v42, %v14124_v44  ;;  %v9471_v39 = vpack.c.bf16 %v8017_v31, %v8015_v46  ;;  %v9473_v48 = vpack.c.bf16 %v8022_v58, %v8020_v8  ;;  %v7055_v34 = vcombine.low %v14127_v28, %v14126_v61  ;;  %v8028_v37 = vld [vmem:[%s13548_s6 + $0xa8] sm:$0xff]  ;;  %v8030_v16 = vld [vmem:[%s13548_s6 + $0xb8] sm:$0xff] }
 0x29d   :  { %9249 = vmatmul.mubr.msk.f32.gmra.mrb[2].mxu1 %vm1410_vm6, %v12720_v36  ;;  %v8613_v36 = vld [vmem:[%s13546_s4 + $0x150] sm:$0xff]  ;;  %v6914_v26 = vrot.slane %v6906_v49, %v10132_v59  ;;  %v7071_v51 = vrot.slane %v7056_v53, %v10132_v59  ;;  %v9475_v50 = vpack.c.bf16 %v8021_v33, %v8019_v4  ;;  %v9477_v27 = vpack.c.bf16 %v8026_v54, %v8024_v47  ;;  %v8619_v3 = vld [vmem:[%s13546_s4 + $0x168] sm:$0xff]  ;;  %v14132_v8 = vld [vmem:[#allocation56_spill] sm:$0xff] }
 0x29e   :  { %9251 = vmatprep.mubr.msk.f32.mxu1 %vm9805_vm0, %v13778_v32  ;;  %v9450_v1 = vpack.c.bf16 %v8614_v0, %v8613_v36  ;;  %v6929_v12 = vrot.slane %v14128_v2, %v10132_v59  ;;  %v7064_v23 = vrot.slane %v7055_v34, %v10132_v59  ;;  %v9479_v29 = vpack.c.bf16 %v8025_v18, %v8023_v9  ;;  %v8029_v36 = vld [vmem:[%s13548_s6 + $0xb0] sm:$0xff]  ;;  %v8032_v43 = vld [vmem:[%s13548_s6 + $0xc8] sm:$0xff]  ;;  %v8031_v53 = vld [vmem:[%s13548_s6 + $0xc0] sm:$0xff] }
 0x29f   :  { %9468 = vmatpush1.bf16.msra.mxu0 %v9467_v5  ;;  %v6922_v13 = vcombine.low %v6914_v26, %v6921_v21  ;;  %v9481_v63 = vpack.c.bf16 %v8030_v16, %v8028_v37  ;;  %v14129_v0 = vld [vmem:[#allocation43_spill] sm:$0xff]  ;;  %v14131_v31 = vld [vmem:[#allocation54_spill] sm:$0xff]  ;;  %v14133_v58 = vld [vmem:[#allocation25_spill] sm:$0xff] }
 0x2a0   :  { %9470 = vmatprep.subr.bf16.mxu0 %v9469_v57  ;;  %v7079_v22 = vcombine.low %v7064_v23, %v14129_v0  ;;  %v8034_v5 = vld [vmem:[%s13548_s6 + $0xd8] sm:$0xff]  ;;  %v9453_v57 = vpack.c.bf16 %v8619_v3, %v8618_v24  ;;  %v8033_v21 = vld [vmem:[%s13548_s6 + $0xd0] sm:$0xff]  ;;  %v14151_v11 = vld [vmem:[#allocation81_spill] sm:$0xff] }
 0x2a1   :  { %9252 = vmatmul.mubr.msk.f32.gmra.mrb[4].mxu1 %vm1410_vm6, %v6756_v52  ;;  %v8027_v52 = vld [vmem:[%s13548_s6 + $0xa0] sm:$0xff]  ;;  %v14130_v46 = vld [vmem:[#allocation31_spill] sm:$0xff]  ;;  %v9485_v6 = vpack.c.bf16 %v8034_v5, %v8032_v43  ;;  %v9487_v14 = vpack.c.bf16 %v8033_v21, %v8031_v53  ;;  %v14137_v28 = vld [vmem:[#allocation74_spill] sm:$0xff]  ;;  %v7448_v15 = vrot.slane %v14151_v11, %v10132_v59 }
 0x2a2   :  { %9258 = vmatprep.mubr.msk.f32.mxu1 %vm9805_vm0, %v13778_v32  ;;  %v7229_v40 = vcombine.low %v14131_v31, %v14130_v46  ;;  %v9483_v17 = vpack.c.bf16 %v8029_v36, %v8027_v52  ;;  %v7087_v44 = vrot.slane %v7079_v22, %v10132_v59  ;;  %v14134_v42 = vld [vmem:[#allocation67_spill] sm:$0xff]  ;;  %v14140_v9 = vld [vmem:[#allocation24_spill] sm:$0xff]  ;;  %v14146_v5 = vld [vmem:[#allocation38_spill] sm:$0xff] }
 0x2a3   :  { %9472 = vmatpush1.bf16.msra.mxu0 %v9471_v39  ;;  %v8623_v26 = vld [vmem:[%s13546_s4 + $0x170] sm:$0xff]  ;;  %v8624_v47 = vld [vmem:[%s13546_s4 + $0x178] sm:$0xff]  ;;  %v14147_v46 = vld [vmem:[#allocation85_spill] sm:$0xff] }
 0x2a4   :  { %9474 = vmatprep.subr.bf16.mxu0 %v9473_v48  ;;  %v7244_v48 = vrot.slane %v7229_v40, %v10132_v59  ;;  %v14141_v18 = vld [vmem:[#allocation39_spill] sm:$0xff]  ;;  %v14142_v16 = vld [vmem:[#allocation80_spill] sm:$0xff]  ;;  %v14148_v31 = vld [vmem:[#allocation41_spill] sm:$0xff] }
 0x2a5   :  { %9259 = vmatmul.mubr.msk.f32.vlgmr.msra.gmra.mrb[0].mxu1 %vm1410_vm6, %v6881_v25  ;;  %v7078_v25 = vrot.slane %v7057_v38, %v10132_v59  ;;  %v14135_v38 = vld [vmem:[#allocation59_spill] sm:$0xff]  ;;  %v7403_v2 = vcombine.low %v14141_v18, %v14140_v9  ;;  %v14144_v30 = vld [vmem:[#allocation68_spill] sm:$0xff]  ;;  %v7576_v40 = vcombine.low %v14148_v31, %v14147_v46  ;;  %v8036_v19 = vld [vmem:[%s13548_s6 + $0xe8] sm:$0xff] }
 0x2a6   :  { %9451 = vmatpush3.bf16.msra.mxu1 %v9450_v1  ;;  %9261 = vmatprep.mubr.msk.f32.mxu1 %vm9805_vm0, %v13778_v32  ;;  %v7230_v1 = vcombine.low %v14133_v58, %v14132_v8  ;;  %v7228_v39 = vcombine.low %v14135_v38, %v14134_v42  ;;  %v14143_v24 = vld [vmem:[#allocation19_spill] sm:$0xff]  ;;  %v7275_v35 = vrot.slane %v14144_v30, %v10132_v59  ;;  %v14145_v36 = vld [vmem:[#allocation8_spill] sm:$0xff] }
 0x2a7   :  { %9452 = vmatprep.subr.bf16.mxu1 %v13810_v41  ;;  %v7080_v10 = vcombine.low %v7071_v51, %v7078_v25  ;;  %9476 = vmatpush1.bf16.msra.mxu0 %v9475_v50  ;;  %v9456_v51 = vpack.c.bf16 %v8624_v47, %v8623_v26  ;;  %v14138_v25 = vld [vmem:[#allocation35_spill] sm:$0xff]  ;;  %v14139_v50 = vld [vmem:[#allocation10_spill] sm:$0xff]  ;;  %v7401_v3 = vcombine.low %v14143_v24, %v14142_v16  ;;  %v14149_v58 = vld [vmem:[#allocation96_spill] sm:$0xff] }
 0x2a8   :  { %9478 = vmatprep.subr.bf16.mxu0 %v9477_v27  ;;  %v7251_v33 = vrot.slane %v7230_v1, %v10132_v59  ;;  %v7237_v54 = vrot.slane %v7228_v39, %v10132_v59  ;;  %v7402_v27 = vcombine.low %v14139_v50, %v14138_v25  ;;  %v14150_v1 = vld [vmem:[#allocation87_spill] sm:$0xff]  ;;  %v14152_v21 = vld [vmem:[#allocation100_spill] sm:$0xff]  ;;  %v8052_v16 = vld [vmem:[%s13548_s6 + $0x168] sm:$0xff] }
 0x2a9   :  { %9262 = vmatmul.mubr.msk.f32.gmra.mrb[2].mxu1 %vm1410_vm6, %v6922_v13  ;;  %v7094_v49 = vrot.slane %v7080_v10, %v10132_v59  ;;  %v7424_v10 = vrot.slane %v7403_v2, %v10132_v59  ;;  %v8038_v62 = vld [vmem:[%s13548_s6 + $0xf8] sm:$0xff]  ;;  %v8039_v47 = vld [vmem:[%s13548_s6 + $0x100] sm:$0xff]  ;;  %v8045_v50 = vld [vmem:[%s13548_s6 + $0x130] sm:$0xff] }
 0x2aa   :  { %9264 = vmatprep.mubr.msk.f32.mxu1 %vm9805_vm0, %v13778_v32  ;;  %v7253_v61 = vcombine.low %v7244_v48, %v7251_v33  ;;  %v7252_v34 = vcombine.low %v7237_v54, %v14137_v28  ;;  %v7417_v23 = vrot.slane %v7402_v27, %v10132_v59  ;;  %v14153_v48 = vld [vmem:[#allocation97_spill] sm:$0xff]  ;;  %v9489_v33 = vpack.c.bf16 %v8038_v62, %v8036_v19  ;;  %v8042_v26 = vld [vmem:[%s13548_s6 + $0x118] sm:$0xff]  ;;  %v8053_v30 = vld [vmem:[%s13548_s6 + $0x170] sm:$0xff] }
 0x2ab   :  { %9480 = vmatpush1.bf16.msra.mxu0 %v9479_v29  ;;  %v7095_v4 = vcombine.low %v7087_v44, %v7094_v49  ;;  %v8629_v29 = vld [vmem:[%s13546_s4 + $0x188] sm:$0xff]  ;;  %v8043_v25 = vld [vmem:[%s13548_s6 + $0x120] sm:$0xff]  ;;  %v8050_v9 = vld [vmem:[%s13548_s6 + $0x158] sm:$0xff] }
 0x2ac   :  { %9482 = vmatprep.subr.bf16.mxu0 %v9481_v63  ;;  %v7267_v13 = vrot.slane %v7253_v61, %v10132_v59  ;;  %v7410_v63 = vrot.slane %v7401_v3, %v10132_v59  ;;  %v7426_v52 = vcombine.low %v7417_v23, %v7424_v10  ;;  %v8041_v61 = vld [vmem:[%s13548_s6 + $0x110] sm:$0xff]  ;;  %v8044_v28 = vld [vmem:[%s13548_s6 + $0x128] sm:$0xff]  ;;  %v9499_v18 = vpack.c.bf16 %v8045_v50, %v8043_v25  ;;  %v8054_v24 = vld [vmem:[%s13548_s6 + $0x178] sm:$0xff] }
 0x2ad   :  { %9265 = vmatmul.mubr.msk.f32.gmra.mrb[4].mxu1 %vm1410_vm6, %v6929_v12  ;;  %v7260_v12 = vrot.slane %v7252_v34, %v10132_v59  ;;  %v8046_v34 = vld [vmem:[%s13548_s6 + $0x138] sm:$0xff]  ;;  %v8048_v27 = vld [vmem:[%s13548_s6 + $0x148] sm:$0xff]  ;;  %v9505_v23 = vpack.c.bf16 %v8054_v24, %v8052_v16  ;;  %v8051_v10 = vld [vmem:[%s13548_s6 + $0x160] sm:$0xff] }
 0x2ae   :  { %9271 = vmatprep.mubr.msk.f32.mxu1 %vm9805_vm0, %v13778_v32  ;;  %v7425_v0 = vcombine.low %v7410_v63, %v14145_v36  ;;  %v7440_v43 = vrot.slane %v7426_v52, %v10132_v59  ;;  %v9501_v2 = vpack.c.bf16 %v8050_v9, %v8048_v27  ;;  %v8145_v63 = vld [vmem:[%s13550_s8 + $0x18] sm:$0xff] }
 0x2af   :  { %9484 = vmatpush1.bf16.msra.mxu0 %v9483_v17  ;;  %v7268_v37 = vcombine.low %v7260_v12, %v7267_v13  ;;  %v7574_v17 = vcombine.low %v14150_v1, %v14149_v58  ;;  %v9497_v13 = vpack.c.bf16 %v8046_v34, %v8044_v28  ;;  %v8047_v12 = vld [vmem:[%s13548_s6 + $0x140] sm:$0xff] }
 0x2b0   :  { %9486 = vmatprep.subr.bf16.mxu0 %v9485_v6  ;;  %v7433_v49 = vrot.slane %v7425_v0, %v10132_v59  ;;  %v7597_v6 = vrot.slane %v7576_v40, %v10132_v59 }
 0x2b1   :  { %9272 = vmatmul.mubr.msk.f32.vlgmr.msra.gmra.mrb[0].mxu1 %vm1410_vm6, %v7054_v56  ;;  %v7102_v56 = vrot.slane %v14136_v60, %v10132_v59 }
 0x2b2   :  { %9454 = vmatpush3.bf16.msra.mxu1 %v9453_v57  ;;  %9274 = vmatprep.mubr.msk.f32.mxu1 %vm9805_vm0, %v13778_v32  ;;  %v7575_v57 = vcombine.low %v14146_v5, %v12331_v45  ;;  %v7441_v8 = vcombine.low %v7433_v49, %v7440_v43 }
 0x2b3   :  { %9455 = vmatprep.subr.bf16.mxu1 %v13810_v41  ;;  %9488 = vmatpush1.bf16.msra.mxu0 %v9487_v14  ;;  %v8037_v14 = vld [vmem:[%s13548_s6 + $0xf0] sm:$0xff] }
 0x2b4   :  { %v7590_v45 = vrot.slane %v7575_v57, %v10132_v59  ;;  %9490 = vmatprep.subr.bf16.mxu0 %v9489_v33 }
 0x2b5   :  { %9275 = vmatmul.mubr.msk.f32.gmra.mrb[2].mxu1 %vm1410_vm6, %v7095_v4  ;;  %v7621_v4 = vrot.slane %v14153_v48, %v10132_v59 }
 0x2b6   :  { %9277 = vmatprep.mubr.msk.f32.mxu1 %vm9805_vm0, %v13778_v32  ;;  %v7599_v53 = vcombine.low %v7590_v45, %v7597_v6 }
 0x2b8   :  { %v7613_v42 = vrot.slane %v7599_v53, %v10132_v59 }
 0x2b9   :  { %9278 = vmatmul.mubr.msk.f32.gmra.mrb[4].mxu1 %vm1410_vm6, %v7102_v56  ;;  %v8040_v56 = vld [vmem:[%s13548_s6 + $0x108] sm:$0xff] }
 0x2ba   :  { %9284 = vmatprep.mubr.msk.f32.mxu1 %vm9805_vm0, %v13778_v32  ;;  %v9493_v54 = vpack.c.bf16 %v8042_v26, %v8040_v56 }
 0x2bd   :  { %9285 = vmatmul.mubr.msk.f32.vlgmr.msra.gmra.mrb[0].mxu1 %vm1410_vm6, %v7227_v20  ;;  %v8628_v20 = vld [vmem:[%s13546_s4 + $0x180] sm:$0xff] }
 0x2be   :  { %9457 = vmatpush3.bf16.msra.mxu1 %v9456_v51  ;;  %9287 = vmatprep.mubr.msk.f32.mxu1 %vm9805_vm0, %v13778_v32  ;;  %v9459_v22 = vpack.c.bf16 %v8629_v29, %v8628_v20  ;;  %v9495_v51 = vpack.c.bf16 %v8041_v61, %v8039_v47  ;;  %v8143_v29 = vld [vmem:[%s13550_s8 + $0x8] sm:$0xff] }
 0x2bf   :  { %9458 = vmatprep.subr.bf16.mxu1 %v13810_v41  ;;  %v9509_v52 = vpack.c.bf16 %v8145_v63, %v8143_v29 }
 0x2c1   :  { %9288 = vmatmul.mubr.msk.f32.gmra.mrb[2].mxu1 %vm1410_vm6, %v7268_v37  ;;  %v8049_v37 = vld [vmem:[%s13548_s6 + $0x150] sm:$0xff] }
 0x2c2   :  { %9290 = vmatprep.mubr.msk.f32.mxu1 %vm9805_vm0, %v13778_v32  ;;  %v9503_v3 = vpack.c.bf16 %v8049_v37, %v8047_v12 }
 0x2c5   :  { %9291 = vmatmul.mubr.msk.f32.gmra.mrb[4].mxu1 %vm1410_vm6, %v7275_v35  ;;  %v9507_v35 = vpack.c.bf16 %v8053_v30, %v8051_v10 }
 0x2c6   :  { %9297 = vmatprep.mubr.msk.f32.mxu1 %vm9805_vm0, %v13778_v32 }
 0x2c9   :  { %9298 = vmatmul.mubr.msk.f32.vlgmr.msra.gmra.mrb[0].mxu1 %vm1410_vm6, %v7400_v55  ;;  %v7583_v55 = vrot.slane %v7574_v17, %v10132_v59 }
 0x2ca   :  { %9460 = vmatpush3.bf16.msra.mxu1 %v9459_v22  ;;  %9300 = vmatprep.mubr.msk.f32.mxu1 %vm9805_vm0, %v13778_v32 }
 0x2cb   :  { %v7598_v44 = vcombine.low %v7583_v55, %v14152_v21 }
 0x2cd   :  { %9301 = vmatmul.mubr.msk.f32.gmra.mrb[2].mxu1 %vm1410_vm6, %v7441_v8  ;;  %v7606_v38 = vrot.slane %v7598_v44, %v10132_v59 }
 0x2ce   :  { %9303 = vmatprep.mubr.msk.f32.mxu1 %vm9805_vm0, %v13778_v32 }
 0x2cf   :  { %v7614_v39 = vcombine.low %v7606_v38, %v7613_v42 }
 0x2d1   :  { %9304 = vmatmul.mubr.msk.f32.gmra.mrb[4].mxu1 %vm1410_vm6, %v7448_v15  ;;  %v13118_v20 = vpop.permute.xlu0 %8003 }
 0x2d2   :  { %9310 = vmatprep.mubr.msk.f32.mxu1 %vm9805_vm0, %v13778_v32  ;;  %8636 = vmatprep.mubr.msk.f32.mxu0 %vm7964_vm7, %v13118_v20 }
 0x2d5   :  { %9311 = vmatmul.mubr.msk.f32.vlgmr.msra.gmra.mrb[0].mxu1 %vm1410_vm6, %v7573_v7  ;;  %v8035_v7 = vld [vmem:[%s13548_s6 + $0xe0] sm:$0xff] }
 0x2d6   :  { %9313 = vmatprep.mubr.msk.f32.mxu1 %vm9805_vm0, %v13778_v32  ;;  %v9491_v60 = vpack.c.bf16 %v8037_v14, %v8035_v7 }
 0x2d8   :  { %9492 = vmatpush1.bf16.msra.mxu0 %v9491_v60 }
 0x2d9   :  { %9314 = vmatmul.mubr.msk.f32.gmra.mrb[2].mxu1 %vm1410_vm6, %v7614_v39  ;;  %9494 = vmatprep.subr.bf16.mxu0 %v9493_v54 }
 0x2da   :  { %9316 = vmatprep.mubr.msk.f32.mxu1 %vm9805_vm0, %v13778_v32 }
 0x2dc   :  { %9496 = vmatpush1.bf16.msra.mxu0 %v9495_v51 }
 0x2dd   :  { %9317 = vmatmul.mubr.msk.f32.gmra.mrb[4].mxu1 %vm1410_vm6, %v7621_v4  ;;  %9498 = vmatprep.subr.bf16.mxu0 %v9497_v13 }
 0x2e0   :  { %9500 = vmatpush1.bf16.msra.mxu0 %v9499_v18 }
 0x2e1   :  { %9502 = vmatprep.subr.bf16.mxu0 %v9501_v2 }
 0x2e4   :  { %9504 = vmatpush1.bf16.msra.mxu0 %v9503_v3 }
 0x2e5   :  { %9506 = vmatprep.subr.bf16.mxu0 %v9505_v23 }
 0x2e8   :  { %9508 = vmatpush1.bf16.msra.mxu0 %v9507_v35 }
 0x2e9   :  { %9510 = vmatprep.subr.bf16.mxu0 %v9509_v52 }
 0x3a8   :  { %v7694_v36 = vpop.f32.mrb[0].mxu1 }
 0x3a9   :  { %v7714_v0 = vcombine.high %v7694_v36, %v7694_v36  ;;  %v7721_v22 = vrot.slane %v7694_v36, %v10132_v59  ;;  %v9312_v43 = vpop.f32.mrb[1].mxu1 }
 0x3ab   :  { %v7728_v5 = vrot.slane %v7714_v0, %v10132_v59  ;;  %v7729_v57 = vcombine.high %v7721_v22, %v7721_v22  ;;  %v7737_v40 = vrot.slane %v7721_v22, %v10132_v59 }
 0x3ac   :  { %v7699_v46 = vpop.f32.mrb[2].mxu1 }
 0x3ad   :  { %v7730_v31 = vcombine.high %v7728_v5, %v7728_v5  ;;  %v7751_v49 = vrot.slane %v7729_v57, %v10132_v59  ;;  %v7763_v8 = vcombine.high %v7699_v46, %v7699_v46  ;;  %v9315_v58 = vpop.f32.mrb[3].mxu1  ;;  %v7744_v1 = vrot.slane %v7728_v5, %v10132_v59 }
 0x3ae   :  { %v7770_v17 = vrot.slane %v7699_v46, %v10132_v59 }
 0x3af   :  { %v7758_v45 = vrot.slane %v7730_v31, %v10132_v59  ;;  %v7834_v6 = vcombine.low %v7737_v40, %v7751_v49  ;;  %v8633_v11 = vcombine.high %v7737_v40, %v7751_v49  ;;  %v7777_v15 = vrot.slane %v7763_v8, %v10132_v59 }
 0x3b0   :  { %v7778_v55 = vcombine.high %v7770_v17, %v7770_v17  ;;  %v7786_v53 = vrot.slane %v7770_v17, %v10132_v59  ;;  %v7704_v21 = vpop.f32.mrb[4].mxu1 }
 0x3b1   :  { %v7836_v44 = vcombine.low %v7744_v1, %v7758_v45  ;;  %v8634_v42 = vcombine.high %v7744_v1, %v7758_v45  ;;  %v7844_v38 = vrot.slane %v7834_v6, %v10132_v59  ;;  %v7851_v39 = vrot.slane %v8633_v11, %v10132_v59  ;;  %v9318_v48 = vpop.f32.mrb[5].mxu1 }
 0x3b2   :  { %v7779_v4 = vcombine.high %v7777_v15, %v7777_v15  ;;  %v7793_v19 = vrot.slane %v7777_v15, %v10132_v59  ;;  %v7800_v62 = vrot.slane %v7778_v55, %v10132_v59  ;;  %v7808_v7 = vcombine.high %v7786_v53, %v7786_v53  ;;  %v8147_v48 = vld [vmem:[%s13550_s8 + $0x28] sm:$0xff] }
 0x3b3   :  { %v7858_v33 = vrot.slane %v7836_v44, %v10132_v59  ;;  %v7865_v14 = vrot.slane %v8634_v42, %v10132_v59  ;;  %v7866_v60 = vcombine.low %v7844_v38, %v7851_v39  ;;  %v7889_v56 = vrot.slane %v7786_v53, %v10132_v59  ;;  %v8142_v38 = vld [vmem:[%s13550_s8] sm:$0xff]  ;;  %v8144_v39 = vld [vmem:[%s13550_s8 + $0x10] sm:$0xff] }
 0x3b4   :  { %v7807_v26 = vrot.slane %v7779_v4, %v10132_v59  ;;  %v7809_v47 = vcombine.high %v7793_v19, %v7793_v19  ;;  %v7810_v54 = vcombine.high %v7800_v62, %v7800_v62  ;;  %v7897_v28 = vcombine.low %v7800_v62, %v7808_v7  ;;  %v8149_v4 = vld [vmem:[%s13550_s8 + $0x38] sm:$0xff] }
 0x3b5   :  { %v7867_v61 = vcombine.low %v7858_v33, %v7865_v14  ;;  %v7818_v34 = vrot.slane %v7704_v21, %v10132_v59  ;;  %v7896_v51 = vrot.slane %v7889_v56, %v10132_v59  ;;  %v7874_v27 = vrot.slane %v7866_v60, %v10132_v59  ;;  %v8146_v60 = vld [vmem:[%s13550_s8 + $0x20] sm:$0xff]  ;;  %v8148_v56 = vld [vmem:[%s13550_s8 + $0x30] sm:$0xff] }
 0x3b6   :  { %v7898_v13 = vcombine.low %v7810_v54, %v7793_v19  ;;  %v7899_v25 = vcombine.low %v7807_v26, %v7809_v47  ;;  %v7811_v50 = vcombine.high %v7807_v26, %v7807_v26  ;;  %v7907_v37 = vrot.slane %v7897_v28, %v10132_v59  ;;  %v8151_v47 = vld [vmem:[%s13550_s8 + $0x48] sm:$0xff]  ;;  %v8153_v54 = vld [vmem:[%s13550_s8 + $0x58] sm:$0xff] }
 0x3b7   :  { %v7819_v9 = vcombine.high %v7818_v34, %v7818_v34  ;;  %v7826_v18 = vrot.slane %v7818_v34, %v10132_v59  ;;  %v7881_v2 = vrot.slane %v7867_v61, %v10132_v59  ;;  %v7967_v23 = vsel %vm7966_vm8, %v7896_v51, -inf  ;;  %v8150_v34 = vld [vmem:[%s13550_s8 + $0x40] sm:$0xff]  ;;  %v8155_v51 = vld [vmem:[%s13550_s8 + $0x68] sm:$0xff] }
 0x3b8   :  { %v7914_v12 = vrot.slane %v7898_v13, %v10132_v59  ;;  %v7921_v10 = vrot.slane %v7899_v25, %v10132_v59  ;;  %v9511_v7 = vpack.c.bf16 %v8144_v39, %v8142_v38  ;;  %v9513_v14 = vpack.c.bf16 %v8149_v4, %v8147_v48  ;;  %v8157_v13 = vld [vmem:[%s13550_s8 + $0x78] sm:$0xff]  ;;  %v8182_v48 = vld [vmem:[%s13550_s8 + $0x140] sm:$0xff]  ;;  %v8184_v4 = vld [vmem:[%s13550_s8 + $0x150] sm:$0xff] }
 0x3b9   :  { %v7833_v16 = vrot.slane %v7819_v9, %v10132_v59  ;;  %v7900_v24 = vcombine.low %v7811_v50, %v7826_v18  ;;  %v7882_v3 = vcombine.low %v7874_v27, %v7881_v2  ;;  %v9515_v61 = vpack.c.bf16 %v8148_v56, %v8146_v60  ;;  %v8154_v27 = vld [vmem:[%s13550_s8 + $0x60] sm:$0xff]  ;;  %v8156_v9 = vld [vmem:[%s13550_s8 + $0x70] sm:$0xff]  ;;  %v8159_v18 = vld [vmem:[%s13550_s8 + $0x88] sm:$0xff] }
 0x3ba   :  { %v7929_v30 = vcombine.low %v7907_v37, %v7914_v12  ;;  %v9517_v28 = vpack.c.bf16 %v8153_v54, %v8151_v47  ;;  %v9521_v50 = vpack.c.bf16 %v8157_v13, %v8155_v51  ;;  %v8161_v2 = vld [vmem:[%s13550_s8 + $0x98] sm:$0xff]  ;;  %v9523_v12 = vpack.c.bf16 %v8156_v9, %v8154_v27  ;;  %v8188_v60 = vld [vmem:[%s13550_s8 + $0x170] sm:$0xff]  ;;  %v8191_v56 = vld [vmem:[%s13550_s8 + $0x188] sm:$0xff] }
 0x3bb   :  { %v7928_v35 = vrot.slane %v7900_v24, %v10132_v59  ;;  %v7952_v29 = vrot.slane %v7833_v16, %v10132_v59  ;;  %v7965_v63 = vsel %vm7964_vm7, %v7882_v3, -inf  ;;  %v9525_v37 = vpack.c.bf16 %v8161_v2, %v8159_v18  ;;  %v8158_v16 = vld [vmem:[%s13550_s8 + $0x80] sm:$0xff]  ;;  %v8160_v24 = vld [vmem:[%s13550_s8 + $0x90] sm:$0xff]  ;;  %v8163_v3 = vld [vmem:[%s13550_s8 + $0xa8] sm:$0xff] }
 0x3bc   :  { %v7968_v52 = vmax.f32 %v7965_v63, %v7967_v23  ;;  %v7937_v5 = vrot.slane %v7929_v30, %v10132_v59  ;;  %v8165_v23 = vld [vmem:[%s13550_s8 + $0xb8] sm:$0xff]  ;;  %v8167_v63 = vld [vmem:[%s13550_s8 + $0xc8] sm:$0xff] }
 0x3bd   :  { %v7930_v36 = vcombine.low %v7921_v10, %v7928_v35  ;;  %v7959_v43 = vrot.slane %v7952_v29, %v10132_v59  ;;  %v9527_v10 = vpack.c.bf16 %v8160_v24, %v8158_v16  ;;  %v9529_v30 = vpack.c.bf16 %v8165_v23, %v8163_v3  ;;  %v8162_v35 = vld [vmem:[%s13550_s8 + $0xa0] sm:$0xff]  ;;  %v8164_v29 = vld [vmem:[%s13550_s8 + $0xb0] sm:$0xff]  ;;  %v8199_v27 = vld [vmem:[%s13550_s8 + $0x1c8] sm:$0xff] }
 0x3be   :  { %v7969_v0 = vrot.slane %v7968_v52, 4  ;;  %v8201_v9 = vld [vmem:[%s13550_s8 + $0x1d8] sm:$0xff]  ;;  %v8203_v24 = vld [vmem:[%s13550_s8 + $0x1e8] sm:$0xff]  ;;  %v8202_v23 = vld [vmem:[%s13550_s8 + $0x1e0] sm:$0xff] }
 0x3bf   :  { %v7944_v22 = vrot.slane %v7930_v36, %v10132_v59  ;;  %v7976_v40 = vsel %vm7966_vm8, %v7959_v43, -inf  ;;  %v8635_v59 = vld [vmem:[%s13547_s5] ss:$0 sm:$0xff]  ;;  %v9531_v36 = vpack.c.bf16 %v8164_v29, %v8162_v35  ;;  %v8168_v43 = vld [vmem:[%s13550_s8 + $0xd0] sm:$0xff]  ;;  %v9565_v2 = vpack.c.bf16 %v8201_v9, %v8199_v27  ;;  %v8205_v3 = vld [vmem:[%s13550_s8 + $0x1f8] sm:$0xff] }
 0x3c0   :  { %v7970_v57 = vmax.f32 %v7968_v52, %v7969_v0  ;;  %v8169_v52 = vld [vmem:[%s13550_s8 + $0xd8] sm:$0xff]  ;;  %v8307_v29 = vld [vmem:[%s13552_s10 + $0x80] sm:$0xff] }
 0x3c1   :  { %v7945_v46 = vcombine.low %v7937_v5, %v7944_v22  ;;  %v9533_v0 = vpack.c.bf16 %v8169_v52, %v8167_v63  ;;  %v8166_v22 = vld [vmem:[%s13550_s8 + $0xc0] sm:$0xff]  ;;  %v8171_v5 = vld [vmem:[%s13550_s8 + $0xe8] sm:$0xff] }
 0x3c2   :  { %v7971_v31 = vrot.slane %v7970_v57, 2  ;;  %v8308_v63 = vld [vmem:[%s13552_s10 + $0x88] sm:$0xff] }
 0x3c3   :  { %v7975_v49 = vsel %vm7964_vm7, %v7945_v46, -inf  ;;  %v9535_v46 = vpack.c.bf16 %v8168_v43, %v8166_v22  ;;  %v9573_v52 = vpack.c.bf16 %v8308_v63, %v8307_v29  ;;  %v8055_v22 = vld [vmem:[%s13549_s7] sm:$0x3] }
 0x3c4   :  { %v7977_v8 = vmax.f32 %v7975_v49, %v7976_v40  ;;  %v7972_v58 = vmax.f32 %v7970_v57, %v7971_v31  ;;  %v8173_v57 = vld [vmem:[%s13550_s8 + $0xf8] sm:$0xff]  ;;  %v8170_v40 = vld [vmem:[%s13550_s8 + $0xe0] sm:$0xff]  ;;  %v8172_v49 = vld [vmem:[%s13550_s8 + $0xf0] sm:$0xff] }
 0x3c5   :  { %v9537_v31 = vpack.c.bf16 %v8173_v57, %v8171_v5 }
 0x3c6   :  { %v7978_v1 = vrot.slane %v7977_v8, 4  ;;  %v7973_v45 = vrot.slane %v7972_v58, 1 }
 0x3c8   :  { %v7979_v17 = vmax.f32 %v7977_v8, %v7978_v1  ;;  %v7974_v15 = vmax.f32 %v7972_v58, %v7973_v45  ;;  %v8175_v8 = vld [vmem:[%s13550_s8 + $0x108] sm:$0xff]  ;;  %v8177_v58 = vld [vmem:[%s13550_s8 + $0x118] sm:$0xff]  ;;  %v9539_v1 = vpack.c.bf16 %v8172_v49, %v8170_v40  ;;  %v8174_v45 = vld [vmem:[%s13550_s8 + $0x100] sm:$0xff] }
 0x3c9   :  { %v8291_v49 = vld [vmem:[%s13552_s10] sm:$0xff] }
 0x3ca   :  { %v7980_v6 = vrot.slane %v7979_v17, 2  ;;  %v7991_v21 = vadd.f32 %v8635_v59, %v7974_v15  ;;  %v8181_v15 = vld [vmem:[%s13550_s8 + $0x138] sm:$0xff] }
 0x3cc   :  { %v7981_v11 = vmax.f32 %v7979_v17, %v7980_v6  ;;  %v7993_v19 = vmax.f32 %v7991_v21, 0.0  ;;  %v9541_v17 = vpack.c.bf16 %v8177_v58, %v8175_v8  ;;  %v8176_v6 = vld [vmem:[%s13550_s8 + $0x110] sm:$0xff]  ;;  %v8292_v8 = vld [vmem:[%s13552_s10 + $0x8] sm:$0xff] }
 0x3cd   :  { %v8180_v21 = vld [vmem:[%s13550_s8 + $0x130] sm:$0xff] }
 0x3ce   :  { %v7982_v55 = vrot.slane %v7981_v11, 1 }
 0x3d0   :  { %v7983_v53 = vmax.f32 %v7981_v11, %v7982_v55  ;;  %v8179_v11 = vld [vmem:[%s13550_s8 + $0x128] sm:$0xff]  ;;  %v9543_v55 = vpack.c.bf16 %v8176_v6, %v8174_v45  ;;  %v9575_v6 = vpack.c.bf16 %v8292_v8, %v8291_v49  ;;  %v8405_v8 = vld [vmem:[%s13554_s12 + $0x20] sm:$0xff] }
 0x3d2   :  { %v7992_v44 = vadd.f32 %v8635_v59, %v7983_v53  ;;  %v9545_v59 = vpack.c.bf16 %v8181_v15, %v8179_v11  ;;  %v8178_v53 = vld [vmem:[%s13550_s8 + $0x120] sm:$0xff] }
 0x3d3   :  { %v9547_v38 = vpack.c.bf16 %v8180_v21, %v8178_v53  ;;  %v8311_v53 = vld [vmem:[%s13552_s10 + $0xa0] sm:$0xff]  ;;  %v8312_v21 = vld [vmem:[%s13552_s10 + $0xa8] sm:$0xff] }
 0x3d4   :  { %v7994_v42 = vmax.f32 %v7992_v44, 0.0  ;;  %v8183_v44 = vld [vmem:[%s13550_s8 + $0x148] sm:$0xff] }
 0x3d6   :  { %v7998_v62 = vrot.slane %v7994_v42, 7  ;;  %v8185_v42 = vld [vmem:[%s13550_s8 + $0x158] sm:$0xff] }
 0x3d7   :  { %v9549_v39 = vpack.c.bf16 %v8185_v42, %v8183_v44  ;;  %v9581_v42 = vpack.c.bf16 %v8312_v21, %v8311_v53  ;;  %v8413_v21 = vld [vmem:[%s13554_s12 + $0x60] sm:$0xff] }
 0x3d8   :  { %v8000_v33 = vsel %vm7999_vm9, %v7998_v62, %v7993_v19  ;;  %v8187_v19 = vld [vmem:[%s13550_s8 + $0x168] sm:$0xff]  ;;  %v8189_v62 = vld [vmem:[%s13550_s8 + $0x178] sm:$0xff] }
 0x3d9   :  { %v8006_v26 = vsel %vm7964_vm7, %v8000_v33, %v13118_v20  ;;  %v8152_v20 = vld [vmem:[%s13550_s8 + $0x50] sm:$0xff]  ;;  %v9553_v33 = vpack.c.bf16 %v8189_v62, %v8187_v19 }
 0x3da   :  { %8134 = vmatmul.mubr.f32.vlgmr.msra.gmra.mrb[52].mxu0 %v8006_v26  ;;  %v9519_v25 = vpack.c.bf16 %v8152_v20, %v8150_v34  ;;  %v8193_v26 = vld [vmem:[%s13550_s8 + $0x198] sm:$0xff]  ;;  %v8195_v34 = vld [vmem:[%s13550_s8 + $0x1a8] sm:$0xff] }
 0x3db   :  { %9512 = vmatpush1.bf16.msra.mxu0 %v9511_v7  ;;  %v9551_v7 = vpack.c.bf16 %v8184_v4, %v8182_v48  ;;  %v9557_v54 = vpack.c.bf16 %v8193_v26, %v8191_v56  ;;  %v8197_v20 = vld [vmem:[%s13550_s8 + $0x1b8] sm:$0xff]  ;;  %v8313_v48 = vld [vmem:[%s13552_s10 + $0xb0] sm:$0xff] }
 0x3dc   :  { %9514 = vmatprep.subr.bf16.mxu0 %v9513_v14  ;;  %v8186_v14 = vld [vmem:[%s13550_s8 + $0x160] sm:$0xff]  ;;  %v9561_v13 = vpack.c.bf16 %v8197_v20, %v8195_v34  ;;  %v8314_v4 = vld [vmem:[%s13552_s10 + $0xb8] sm:$0xff] }
 0x3dd   :  { %v9555_v47 = vpack.c.bf16 %v8188_v60, %v8186_v14  ;;  %v9585_v62 = vpack.c.bf16 %v8314_v4, %v8313_v48  ;;  %v8315_v14 = vld [vmem:[%s13552_s10 + $0xc0] sm:$0xff]  ;;  %v8316_v60 = vld [vmem:[%s13552_s10 + $0xc8] sm:$0xff] }
 0x3de   :  { %v9589_v26 = vpack.c.bf16 %v8316_v60, %v8315_v14  ;;  %v8638_v60 = vld [vmem:[%s13555_s13] ss:$0 sm:$0xff] }
 0x3df   :  { %9516 = vmatpush1.bf16.msra.mxu0 %v9515_v61  ;;  %v8190_v61 = vld [vmem:[%s13550_s8 + $0x180] sm:$0xff] }
 0x3e0   :  { %9518 = vmatprep.subr.bf16.mxu0 %v9517_v28  ;;  %v8192_v28 = vld [vmem:[%s13550_s8 + $0x190] sm:$0xff] }
 0x3e1   :  { %v9559_v51 = vpack.c.bf16 %v8192_v28, %v8190_v61  ;;  %v8317_v61 = vld [vmem:[%s13552_s10 + $0xd0] sm:$0xff]  ;;  %v8318_v28 = vld [vmem:[%s13552_s10 + $0xd8] sm:$0xff] }
 0x3e2   :  { %v9593_v20 = vpack.c.bf16 %v8318_v28, %v8317_v61 }
 0x3e3   :  { %9520 = vmatpush1.bf16.msra.mxu0 %v9519_v25  ;;  %v8194_v25 = vld [vmem:[%s13550_s8 + $0x1a0] sm:$0xff] }
 0x3e4   :  { %9522 = vmatprep.subr.bf16.mxu0 %v9521_v50  ;;  %v8196_v50 = vld [vmem:[%s13550_s8 + $0x1b0] sm:$0xff] }
 0x3e5   :  { %v9563_v18 = vpack.c.bf16 %v8196_v50, %v8194_v25  ;;  %v8319_v25 = vld [vmem:[%s13552_s10 + $0xe0] sm:$0xff]  ;;  %v8320_v50 = vld [vmem:[%s13552_s10 + $0xe8] sm:$0xff] }
 0x3e6   :  { %v9597_v9 = vpack.c.bf16 %v8320_v50, %v8319_v25 }
 0x3e7   :  { %9524 = vmatpush1.bf16.msra.mxu0 %v9523_v12  ;;  %v8198_v12 = vld [vmem:[%s13550_s8 + $0x1c0] sm:$0xff] }
 0x3e8   :  { %9526 = vmatprep.subr.bf16.mxu0 %v9525_v37  ;;  %v8200_v37 = vld [vmem:[%s13550_s8 + $0x1d0] sm:$0xff] }
 0x3e9   :  { %v9567_v16 = vpack.c.bf16 %v8200_v37, %v8198_v12  ;;  %v8321_v37 = vld [vmem:[%s13552_s10 + $0xf0] sm:$0xff] }
 0x3eb   :  { %9528 = vmatpush1.bf16.msra.mxu0 %v9527_v10  ;;  %v9569_v10 = vpack.c.bf16 %v8205_v3, %v8203_v24  ;;  %v8305_v24 = vld [vmem:[%s13552_s10 + $0x70] sm:$0xff] }
 0x3ec   :  { %9530 = vmatprep.subr.bf16.mxu0 %v9529_v30  ;;  %v8204_v30 = vld [vmem:[%s13550_s8 + $0x1f0] sm:$0xff] }
 0x3ed   :  { %v9571_v35 = vpack.c.bf16 %v8204_v30, %v8202_v23  ;;  %v8306_v23 = vld [vmem:[%s13552_s10 + $0x78] sm:$0xff]  ;;  %v8206_v30 = vld [vmem:[%s13551_s9] sm:$0x3] }
 0x3ef   :  { %9532 = vmatpush1.bf16.msra.mxu0 %v9531_v36  ;;  %v14154_v36 = vld [vmem:[#allocation5_spill] sm:$0xff] }
 0x3f0   :  { %9534 = vmatprep.subr.bf16.mxu0 %v9533_v0  ;;  %v8059_v0 = vsub.s32 0, %v14154_v36  ;;  %v8063_v43 = vsub.s32 1, %v14154_v36  ;;  %v8403_v36 = vld [vmem:[%s13554_s12 + $0x10] sm:$0xff] }
 0x3f2   :  { %v8060_v5 = vrot.slane %v8055_v22, %v8059_v0  ;;  %v8064_v57 = vrot.slane %v8055_v22, %v8063_v43  ;;  %v8215_v29 = vrot.slane %v8206_v30, %v8063_v43 }
 0x3f3   :  { %9536 = vmatpush1.bf16.msra.mxu0 %v9535_v46 }
 0x3f4   :  { %9538 = vmatprep.subr.bf16.mxu0 %v9537_v31 }
 0x3f7   :  { %9540 = vmatpush1.bf16.msra.mxu0 %v9539_v1  ;;  %v8309_v1 = vld [vmem:[%s13552_s10 + $0x90] sm:$0xff] }
 0x3f8   :  { %9542 = vmatprep.subr.bf16.mxu0 %v9541_v17  ;;  %v8310_v17 = vld [vmem:[%s13552_s10 + $0x98] sm:$0xff] }
 0x3f9   :  { %v9577_v15 = vpack.c.bf16 %v8310_v17, %v8309_v1  ;;  %v8407_v17 = vld [vmem:[%s13554_s12 + $0x30] sm:$0xff] }
 0x3fb   :  { %9544 = vmatpush1.bf16.msra.mxu0 %v9543_v55  ;;  %v8293_v55 = vld [vmem:[%s13552_s10 + $0x10] sm:$0xff] }
 0x3fc   :  { %9546 = vmatprep.subr.bf16.mxu0 %v9545_v59  ;;  %v8294_v59 = vld [vmem:[%s13552_s10 + $0x18] sm:$0xff] }
 0x3fd   :  { %v9579_v44 = vpack.c.bf16 %v8294_v59, %v8293_v55  ;;  %v8411_v55 = vld [vmem:[%s13554_s12 + $0x50] sm:$0xff]  ;;  %v8412_v59 = vld [vmem:[%s13554_s12 + $0x58] sm:$0xff] }
 0x3fe   :  { %v9621_v53 = vpack.c.bf16 %v8412_v59, %v8411_v55 }
 0x3ff   :  { %9548 = vmatpush1.bf16.msra.mxu0 %v9547_v38  ;;  %v8295_v38 = vld [vmem:[%s13552_s10 + $0x20] sm:$0xff] }
 0x400   :  { %9550 = vmatprep.subr.bf16.mxu0 %v9549_v39  ;;  %v8296_v39 = vld [vmem:[%s13552_s10 + $0x28] sm:$0xff] }
 0x401   :  { %v9583_v19 = vpack.c.bf16 %v8296_v39, %v8295_v38  ;;  %v8416_v39 = vld [vmem:[%s13554_s12 + $0x78] sm:$0xff] }
 0x403   :  { %9552 = vmatpush1.bf16.msra.mxu0 %v9551_v7  ;;  %v8297_v7 = vld [vmem:[%s13552_s10 + $0x30] sm:$0xff] }
 0x404   :  { %9554 = vmatprep.subr.bf16.mxu0 %v9553_v33  ;;  %v8298_v33 = vld [vmem:[%s13552_s10 + $0x38] sm:$0xff] }
 0x405   :  { %v9587_v56 = vpack.c.bf16 %v8298_v33, %v8297_v7 }
 0x407   :  { %9556 = vmatpush1.bf16.msra.mxu0 %v9555_v47  ;;  %v8299_v47 = vld [vmem:[%s13552_s10 + $0x40] sm:$0xff] }
 0x408   :  { %9558 = vmatprep.subr.bf16.mxu0 %v9557_v54  ;;  %v8300_v54 = vld [vmem:[%s13552_s10 + $0x48] sm:$0xff] }
 0x409   :  { %v9591_v34 = vpack.c.bf16 %v8300_v54, %v8299_v47 }
 0x40b   :  { %9560 = vmatpush1.bf16.msra.mxu0 %v9559_v51  ;;  %v8301_v51 = vld [vmem:[%s13552_s10 + $0x50] sm:$0xff] }
 0x40c   :  { %9562 = vmatprep.subr.bf16.mxu0 %v9561_v13  ;;  %v8302_v13 = vld [vmem:[%s13552_s10 + $0x58] sm:$0xff] }
 0x40d   :  { %v9595_v27 = vpack.c.bf16 %v8302_v13, %v8301_v51 }
 0x40f   :  { %9564 = vmatpush1.bf16.msra.mxu0 %v9563_v18  ;;  %v8303_v18 = vld [vmem:[%s13552_s10 + $0x60] sm:$0xff] }
 0x410   :  { %9566 = vmatprep.subr.bf16.mxu0 %v9565_v2  ;;  %v8304_v2 = vld [vmem:[%s13552_s10 + $0x68] sm:$0xff] }
 0x411   :  { %v9599_v12 = vpack.c.bf16 %v8304_v2, %v8303_v18 }
 0x413   :  { %9568 = vmatpush1.bf16.msra.mxu0 %v9567_v16  ;;  %v8322_v16 = vld [vmem:[%s13552_s10 + $0xf8] sm:$0xff] }
 0x414   :  { %9570 = vmatprep.subr.bf16.mxu0 %v9569_v10  ;;  %v9601_v3 = vpack.c.bf16 %v8322_v16, %v8321_v37  ;;  %v9603_v10 = vpack.c.bf16 %v8306_v23, %v8305_v24 }
 0x417   :  { %9572 = vmatpush1.bf16.msra.mxu0 %v9571_v35  ;;  %v8211_v35 = vrot.slane %v8206_v30, %v8059_v0  ;;  %v8404_v0 = vld [vmem:[%s13554_s12 + $0x18] sm:$0xff] }
 0x418   :  { %9574 = vmatprep.subr.bf16.mxu0 %v9573_v52  ;;  %v9609_v43 = vpack.c.bf16 %v8404_v0, %v8403_v36 }
 0x4ad   :  { %v8135_v46 = vpop.f32.mrb[52].mxu0 }
 0x4ae   :  { %v8136_v31 = vadd.f32 %v8135_v46, %v8060_v5  ;;  %v8137_v40 = vpop.f32.mrb[53].mxu0  ;;  %v8401_v5 = vld [vmem:[%s13554_s12] sm:$0xff] }
 0x4af   :  { %v8138_v58 = vadd.f32 %v8137_v40, %v8064_v57  ;;  %v8402_v57 = vld [vmem:[%s13554_s12 + $0x8] sm:$0xff] }
 0x4b0   :  { %v8140_v11 = vmax.f32 %v8136_v31, 0.0  ;;  %v9606_v40 = vpack.c.bf16 %v8402_v57, %v8401_v5 }
 0x4b1   :  { %v8141_v45 = vmax.f32 %v8138_v58, 0.0  ;;  %v8406_v58 = vld [vmem:[%s13554_s12 + $0x28] sm:$0xff] }
 0x4b2   :  { %v9612_v1 = vpack.c.bf16 %v8406_v58, %v8405_v8 }
 0x4b3   :  { %8282 = vmatprep.mubr.f32.mxu0 %v8141_v45 }
 0x4b4   :  { %8283 = vmatmul.mubr.f32.vlgmr.msra.gmra.mrb[54].mxu0 %v8140_v11  ;;  %v8410_v11 = vld [vmem:[%s13554_s12 + $0x48] sm:$0xff] }
 0x4b5   :  { %9576 = vmatpush3.bf16.msra.mxu0 %v9575_v6  ;;  %v8409_v6 = vld [vmem:[%s13554_s12 + $0x40] sm:$0xff] }
 0x4b6   :  { %9578 = vmatprep.subr.bf16.mxu0 %v9577_v15  ;;  %v9618_v15 = vpack.c.bf16 %v8410_v11, %v8409_v6 }
 0x4b9   :  { %9580 = vmatpush3.bf16.msra.mxu0 %v9579_v44  ;;  %v8414_v44 = vld [vmem:[%s13554_s12 + $0x68] sm:$0xff] }
 0x4ba   :  { %9582 = vmatprep.subr.bf16.mxu0 %v9581_v42  ;;  %v8415_v42 = vld [vmem:[%s13554_s12 + $0x70] sm:$0xff]  ;;  %v9624_v38 = vpack.c.bf16 %v8414_v44, %v8413_v21 }
 0x4bb   :  { %v9627_v48 = vpack.c.bf16 %v8416_v39, %v8415_v42 }
 0x4bd   :  { %9584 = vmatpush3.bf16.msra.mxu0 %v9583_v19  ;;  %v8637_v19 = vld [vmem:[%s13553_s11] ss:$0 sm:$0xff] }
 0x4be   :  { %9586 = vmatprep.subr.bf16.mxu0 %v9585_v62 }
 0x4c1   :  { %9588 = vmatpush3.bf16.msra.mxu0 %v9587_v56 }
 0x4c2   :  { %9590 = vmatprep.subr.bf16.mxu0 %v9589_v26 }
 0x4c5   :  { %9592 = vmatpush3.bf16.msra.mxu0 %v9591_v34 }
 0x4c6   :  { %9594 = vmatprep.subr.bf16.mxu0 %v9593_v20 }
 0x4c9   :  { %9596 = vmatpush3.bf16.msra.mxu0 %v9595_v27 }
 0x4ca   :  { %9598 = vmatprep.subr.bf16.mxu0 %v9597_v9 }
 0x4cd   :  { %9600 = vmatpush3.bf16.msra.mxu0 %v9599_v12 }
 0x4ce   :  { %9602 = vmatprep.subr.bf16.mxu0 %v9601_v3 }
 0x4d1   :  { %9604 = vmatpush3.bf16.msra.mxu0 %v9603_v10 }
 0x4d2   :  { %9605 = vmatprep.subr.bf16.mxu0 %v13810_v41 }
 0x587   :  { %v8284_v63 = vpop.f32.mrb[54].mxu0 }
 0x588   :  { %v8285_v52 = vadd.f32 %v8284_v63, %v8211_v35  ;;  %v8286_v22 = vpop.f32.mrb[55].mxu0 }
 0x589   :  { %v8287_v46 = vadd.f32 %v8286_v22, %v8215_v29 }
 0x58a   :  { %v8289_v49 = vmax.f32 %v8285_v52, 0.0 }
 0x58b   :  { %v8290_v31 = vmax.f32 %v8287_v46, 0.0 }
 0x58d   :  { %8394 = vmatprep.mubr.f32.mxu0 %v8290_v31 }
 0x58e   :  { %8395 = vmatmul.mubr.f32.vlgmr.msra.gmra.mrb[56].mxu0 %v8289_v49 }
 0x58f   :  { %9607 = vmatpush3.bf16.msra.mxu0 %v9606_v40  ;;  %9351 = vmatprep.mubr.msk.f32.mxu0 %vm9805_vm0, %v13778_v32  ;;  %v8408_v32 = vld [vmem:[%s13554_s12 + $0x38] sm:$0xff]  ;;  %s9809_s12 = smov [#allocation2]  }
 0x590   :  { %9608 = vmatprep.subr.bf16.mxu0 %v13810_v41  ;;  %v9615_v45 = vpack.c.bf16 %v8408_v32, %v8407_v17  ;;  %s8501_s27 = sshll.u32 %s9809_s12, 4  ;;  %s8502_s27 = int_to_ptr.vmem [resolvable:$true] %s8501_s27 }
 0x591   :  { %s9780_s28 = scalar_lea.vmem %s8502_s27, 32  ;;  %p9785_p1 = scmp.lt.s32.totalorder %s8502_s27, %s8502_s27 }
 0x592   :  { %p9781_p0 = scmp.ne.s32.totalorder %s8502_s27, %s9780_s28  ;;  %p9786_p2 = scmp.lt.s32.totalorder %s9780_s28, %s9780_s28 }
 0x593   :  { %9610 = vmatpush3.bf16.msra.mxu0 %v9609_v43 }
 0x594   :  { %9611 = vmatprep.subr.bf16.mxu0 %v13810_v41  ;;  %p9787_p3 = por %p9786_p2, %p9785_p1 }
 0x596   :  { %p9788_p4 = pnand %p9787_p3, %p9781_p0 }
 0x597   :  { %9613 = vmatpush3.bf16.msra.mxu0 %v9612_v1 }
 0x598   :  { %9614 = vmatprep.subr.bf16.mxu0 %v13810_v41 }
 0x59b   :  { %9616 = vmatpush3.bf16.msra.mxu0 %v9615_v45 }
 0x59c   :  { %9617 = vmatprep.subr.bf16.mxu0 %v13810_v41 }
 0x59f   :  { %9619 = vmatpush3.bf16.msra.mxu0 %v9618_v15 }
 0x5a0   :  { %9620 = vmatprep.subr.bf16.mxu0 %v13810_v41 }
 0x5a3   :  { %9622 = vmatpush3.bf16.msra.mxu0 %v9621_v53 }
 0x5a4   :  { %9623 = vmatprep.subr.bf16.mxu0 %v13810_v41 }
 0x5a7   :  { %9625 = vmatpush3.bf16.msra.mxu0 %v9624_v38 }
 0x5a8   :  { %9626 = vmatprep.subr.bf16.mxu0 %v13810_v41 }
 0x5ab   :  { %9628 = vmatpush3.bf16.msra.mxu0 %v9627_v48 }
 0x661   :  { %v8864_v4 = vpop.f32.mrb[56].mxu0 }
 0x662   :  { %v8865_v62 = vpop.f32.mrb[57].mxu0 }
 0x663   :  { %v8866_v7 = vadd.f32 %v8865_v62, %v8864_v4 }
 0x665   :  { %v8397_v33 = vadd.f32 %v8866_v7, %v8637_v19 }
 0x667   :  { %v8400_v14 = vmax.f32 %v8397_v33, 0.0 }
 0x669   :  { %9352 = vmatmul.mubr.f32.vlgmr.msra.gmra.mrb[58].mxu0 %v8400_v14 }
 0x73c   :  { %v8490_v56 = vpop.f32.mrb[58].mxu0 }
 0x73d   :  { %v8491_v26 = vadd.f32 %v8638_v60, %v8490_v56  ;;  %v9353_v41 = vpop.f32.mrb[59].mxu0 }
 0x73f   :  { %8494 = vst [vmem:[#allocation2] sm:$0x3] %v8491_v26 }
 0x740   :  { %9791 = shalt.err (!%p9788_p4)
}
 0x741   :  { %s9792_s30 = scalar_lea.hbm %s13556_s14, 32 }
 0x742   :  { %p9793_p5 = scmp.ne.s32.totalorder %s13556_s14, %s9792_s30  ;;  %p9796_p6 = scmp.lt.u32.totalorder %s9792_s30, %s13556_s14 }
 0x744   :  { %p9798_p7 = pnand %p9796_p6, %p9793_p5 }
 0x746   :  { %9801 = shalt.err (!%p9798_p7)
}
 0x747   :  { %8504 = dma.vmem_to_hbm [thread:$0]  %s8502_s27, 32, %s13556_s14, [#allocation3]  }
 0x748   :  { %9802 = dma.done.wait [#allocation3], 32  }
 0x749   :  { %9803 = vsyncadd [#allocation3], 4294967264 }
 0x74a   :  { %8508 = vsyncpa [#allocation3], 1 }

</bundles_post_ra>
